<compile_context>
chip_gen: v6e
topology: v6e:2x2x1
jax: 0.10.0
libtpu: 0.0.40
codegen_flags: <defaults>
</compile_context>

<pallas_src>
import functools

import jax
import jax.numpy as jnp
from jax import lax
from jax.experimental import pallas as pl
from jax.experimental.pallas import tpu as pltpu


_LANE = 128


def _round_up(x, m):
    return (x + m - 1) // m * m


def _vmem_limit_bytes():
    """Per-generation scoped VMEM limit (75% of capacity; safe fallback = v7x 64 MiB)."""
    try:
        cap = int(pltpu.get_tpu_info().vmem_capacity_bytes)
    except Exception:
        cap = 64 * 1024 * 1024
    return max(cap * 3 // 4, 32 * 1024 * 1024)


def _pad2(x, rows, cols):
    return jnp.pad(x, ((0, rows - x.shape[0]), (0, cols - x.shape[1])))


def _pad_w(w, fin_p, fout_p):
    # (order+1, F_in, F_out) -> (order+1, fin_p, fout_p), bf16, zero padded.
    w = w.astype(jnp.bfloat16)
    return jnp.pad(w, ((0, 0), (0, fin_p - w.shape[1]), (0, fout_p - w.shape[2])))


# ----------------------------------------------------------------------------------
# Fused higher-order graph-conv layer kernel.
#
# grid = (order, n_row_tiles, n_red_tiles), all "arbitrary" (hop axis is sequential).
#   kk : hop index, computes P_{kk+1} = A @ P_{kk}
#   i  : output row tile
#   r  : reduction tile over A columns (collapsed to 1 when A is VMEM-resident)
# ----------------------------------------------------------------------------------
def _make_layer_kernel(*, order, tile, n_kred, num_class, a_resident, with_head):
    def kernel(*refs):
        if with_head:
            (a_ref, h_ref, w_ref, b_ref, wfc_ref, bfc_ref,
             o_ref, p_ref, pacc_ref, acc_ref) = refs
        else:
            (a_ref, h_ref, w_ref, b_ref,
             o_ref, p_ref, pacc_ref, acc_ref) = refs
            wfc_ref = bfc_ref = None

        kk = pl.program_id(0)
        i = pl.program_id(1)
        r = pl.program_id(2)
        rs = kk % 2          # ping-pong slot holding P_kk
        ws = 1 - rs          # slot receiving P_{kk+1}
        row_start = pl.multiple_of(i * tile, tile)
        rows = pl.ds(row_start, tile)

        # Seed P_0 = H once, at the very first grid step (H is VMEM-resident).
        @pl.when((kk == 0) & (i == 0) & (r == 0))
        def _():
            p_ref[0] = h_ref[...]

        # f32 accumulator for this row tile of P_{kk+1}.
        @pl.when(r == 0)
        def _():
            pacc_ref[...] = jnp.zeros_like(pacc_ref)

        # One reduction step: P_{kk+1}[rows] += A[rows, cols] @ P_kk[cols, :].
        if a_resident:
            a_blk = a_ref[rows, :]                 # (tile, N_pad) bf16, from resident A
            p_prev = p_ref[rs]                     # (N_pad, F_in_pad) bf16
        else:
            col_start = pl.multiple_of(r * tile, tile)
            a_blk = a_ref[...]                     # (tile, tile) streamed A block
            p_prev = p_ref[rs, pl.ds(col_start, tile), :]
        pacc_ref[...] += jnp.dot(a_blk, p_prev, preferred_element_type=jnp.float32)

        # Reduction complete for this row tile: commit P_{kk+1}[rows], fold its W term
        # into the layer accumulator, and run the epilogue on the last hop.
        @pl.when(r == n_kred - 1)
        def _():
            pk = pacc_ref[...].astype(jnp.bfloat16)
            p_ref[ws, rows, :] = pk
            term = jnp.dot(pk, w_ref[kk + 1], preferred_element_type=jnp.float32)

            @pl.when(kk == 0)
            def _():
                acc_ref[rows, :] = term + jnp.dot(
                    h_ref[rows, :], w_ref[0], preferred_element_type=jnp.float32)

            @pl.when(kk > 0)
            def _():
                acc_ref[rows, :] += term

            @pl.when(kk == order - 1)
            def _():
                h_act = jnp.maximum(acc_ref[rows, :] + b_ref[...], 0.0)
                if not with_head:
                    o_ref[rows, :] = h_act.astype(o_ref.dtype)
                else:
                    logits = jnp.dot(h_act.astype(jnp.bfloat16), wfc_ref[...],
                                     preferred_element_type=jnp.float32) + bfc_ref[...]
                    col = lax.broadcasted_iota(jnp.int32, logits.shape, 1)
                    logits = jnp.where(col < num_class, logits, -1e30)
                    m = jnp.max(logits, axis=1, keepdims=True)
                    e = jnp.exp(logits - m)
                    probs = e / jnp.sum(e, axis=1, keepdims=True)   # exact normalization
                    o_ref[rows, :] = probs.astype(o_ref.dtype)

    return kernel


def _fused_layer(a, h, w, b, head, *, order, tile, vmem_limit):
    """One graph-conv layer: relu(sum_k A^k H W_k + b); optionally fused FC+softmax."""
    n_pad = a.shape[0]
    fin = h.shape[1]
    fout = w.shape[-1]
    n_row = n_pad // tile

    a_bytes = a.size * a.dtype.itemsize
    a_resident = a_bytes <= vmem_limit // 8
    n_kred = 1 if a_resident else n_pad // tile
    grid = (order, n_row, n_kred)

    with_head = head is not None
    if with_head:
        wfc, bfc, num_class = head
        out_cols = wfc.shape[1]
        out_dtype = jnp.float32
        extra_in = [wfc, bfc]
        extra_specs = [pl.BlockSpec(wfc.shape, lambda kk, i, r: (0, 0)),
                       pl.BlockSpec(bfc.shape, lambda kk, i, r: (0, 0))]
    else:
        num_class = fout
        out_cols = fout
        out_dtype = jnp.bfloat16
        extra_in = []
        extra_specs = []

    if a_resident:
        a_spec = pl.BlockSpec((n_pad, n_pad), lambda kk, i, r: (0, 0))   # DMA'd once
    else:
        a_spec = pl.BlockSpec((tile, tile), lambda kk, i, r: (i, r))     # streamed

    kernel = _make_layer_kernel(order=order, tile=tile, n_kred=n_kred,
                                num_class=num_class, a_resident=a_resident,
                                with_head=with_head)

    flops = 2 * order * n_pad * n_pad * fin + 2 * (order + 1) * n_pad * fin * fout
    if with_head:
        flops += 2 * n_pad * fout * out_cols
    bytes_accessed = (a_bytes * (1 if a_resident else order)
                      + h.size * 2 + w.size * 2
                      + n_pad * out_cols * (4 if with_head else 2))
    cost = pl.CostEstimate(flops=flops,
                           transcendentals=n_pad * out_cols if with_head else 0,
                           bytes_accessed=bytes_accessed)

    return pl.pallas_call(
        kernel,
        out_shape=jax.ShapeDtypeStruct((n_pad, out_cols), out_dtype),
        grid_spec=pltpu.PrefetchScalarGridSpec(
            num_scalar_prefetch=0,
            grid=grid,
            in_specs=[a_spec,
                      pl.BlockSpec((n_pad, fin), lambda kk, i, r: (0, 0)),   # H resident
                      pl.BlockSpec(w.shape, lambda kk, i, r: (0, 0, 0)),     # stacked W
                      pl.BlockSpec(b.shape, lambda kk, i, r: (0, 0))]        # bias
                     + extra_specs,
            out_specs=pl.BlockSpec((n_pad, out_cols), lambda kk, i, r: (0, 0)),
            scratch_shapes=[
                pltpu.VMEM((2, n_pad, fin), jnp.bfloat16),   # P_k ping-pong
                pltpu.VMEM((tile, fin), jnp.float32),        # per-row-tile prop accumulator
                pltpu.VMEM((n_pad, fout), jnp.float32),      # layer pre-activation accumulator
            ]),
        compiler_params=pltpu.CompilerParams(
            dimension_semantics=("arbitrary", "arbitrary", "arbitrary"),
            vmem_limit_bytes=vmem_limit),
        cost_estimate=cost,
    )(a, h, w, b, *extra_in)


# ----------------------------------------------------------------------------------
# Full forward pass
# ----------------------------------------------------------------------------------
def higher_order_gcn_2layer(A, X, params, *, order, tile=None):
    assert order >= 1
    n = A.shape[0]
    f_in = X.shape[1]
    hid = params["w1"].shape[-1]
    f_out = params["w2"].shape[-1]
    n_class = params["wfc"].shape[-1]

    # Tile choice: one full row tile for small N; 512 (multiple of 256 for the
    # v6e/v7x MXU, 128-aligned for v5e) for large N.  N is padded to a tile multiple.
    if tile is None:
        tile = _round_up(n, _LANE) if n <= 512 else 512
    n_pad = _round_up(n, tile)
    fin_p = _round_up(f_in, _LANE)
    hid_p = _round_up(hid, _LANE)
    fout_p = _round_up(f_out, _LANE)
    c_p = _round_up(n_class, _LANE)

    vmem_limit = _vmem_limit_bytes()

    a_p = _pad2(A.astype(jnp.bfloat16), n_pad, n_pad)
    x_p = _pad2(X.astype(jnp.bfloat16), n_pad, fin_p)
    w1_p = _pad_w(params["w1"], fin_p, hid_p)
    b1_p = _pad2(params["b1"].astype(jnp.float32), 1, hid_p)
    w2_p = _pad_w(params["w2"], hid_p, fout_p)
    b2_p = _pad2(params["b2"].astype(jnp.float32), 1, fout_p)
    wfc_p = _pad2(params["wfc"].astype(jnp.bfloat16), fout_p, c_p)
    bfc_p = _pad2(params["bfc"].astype(jnp.float32), 1, c_p)

    # gcl1 (relu) — one fused pallas_call.
    h1 = _fused_layer(a_p, x_p, w1_p, b1_p, None,
                      order=order, tile=tile, vmem_limit=vmem_limit)
    # gcl2 (relu) + fully_connected + softmax(dim=1) — one fused pallas_call.
    out = _fused_layer(a_p, h1, w2_p, b2_p, (wfc_p, bfc_p, n_class),
                       order=order, tile=tile, vmem_limit=vmem_limit)
    return out[:n, :n_class]


# ----------------------------------------------------------------------------------
# Pure-JAX reference mirroring the kernel numerics (bf16 MXU inputs, f32 accumulation)
# ----------------------------------------------------------------------------------
def _reference(A, X, params, *, order):
    bf16 = jnp.bfloat16
    a16 = A.astype(bf16)

    def dot32(a, b):
        return jnp.dot(a, b, preferred_element_type=jnp.float32)

    def layer(h16, w, b):
        p = h16
        acc = dot32(p, w[0].astype(bf16))
        for k in range(1, w.shape[0]):
            p = dot32(a16, p).astype(bf16)
            acc = acc + dot32(p, w[k].astype(bf16))
        return jnp.maximum(acc + b, 0.0)

    h1 = layer(X.astype(bf16), params["w1"], params["b1"]).astype(bf16)
    h2 = layer(h1, params["w2"], params["b2"])
    logits = dot32(h2.astype(bf16), params["wfc"].astype(bf16)) + params["bfc"]
    return jax.nn.softmax(logits, axis=1)


if __name__ == "__main__":
    # Small deterministic problem: 256 nodes, in=8, hidden=32, out=16, 8 classes, order=2.
    N, F_IN, HID, F_OUT, NUM_CLASS, ORDER = 256, 8, 32, 16, 8, 2

    key = jax.random.PRNGKey(0)
    k_a, k_x, k_w1, k_b1, k_w2, k_b2, k_wfc, k_bfc = jax.random.split(key, 8)

    # Symmetric, row-normalized adjacency with self loops.
    raw = jax.random.uniform(k_a, (N, N), dtype=jnp.float32)
    adj = ((raw + raw.T) > 1.0).astype(jnp.float32) + jnp.eye(N, dtype=jnp.float32)
    A = adj / jnp.sum(adj, axis=1, keepdims=True)

    X = jax.random.normal(k_x, (N, F_IN), dtype=jnp.float32)

    params = {
        "w1":  0.1 * jax.random.normal(k_w1, (ORDER + 1, F_IN, HID), dtype=jnp.float32),
        "b1":  0.1 * jax.random.normal(k_b1, (1, HID), dtype=jnp.float32),
        "w2":  0.1 * jax.random.normal(k_w2, (ORDER + 1, HID, F_OUT), dtype=jnp.float32),
        "b2":  0.1 * jax.random.normal(k_b2, (1, F_OUT), dtype=jnp.float32),
        "wfc": 0.1 * jax.random.normal(k_wfc, (F_OUT, NUM_CLASS), dtype=jnp.float32),
        "bfc": 0.1 * jax.random.normal(k_bfc, (1, NUM_CLASS), dtype=jnp.float32),
    }

    fwd = jax.jit(functools.partial(higher_order_gcn_2layer, order=ORDER))
    out = jax.block_until_ready(fwd(A, X, params))

    ref = jax.block_until_ready(_reference(A, X, params, order=ORDER))

    assert out.shape == (N, NUM_CLASS)
    assert bool(jnp.all(jnp.isfinite(out)))
    assert jnp.allclose(jnp.sum(out, axis=1), 1.0, atol=1e-3)
    err = float(jnp.max(jnp.abs(out - ref)))
    assert jnp.allclose(out, ref, atol=2e-3, rtol=2e-2), err

    print("KERNEL_OK")
</pallas_src>

<mosaic_0001>
module attributes {stable_mosaic.version = 11 : i64} {
  func.func @kernel(%arg0: i32, %arg1: i32, %arg2: i32, %arg3: memref<256x256xbf16, #tpu.memory_space<vmem>>, %arg4: memref<256x128xbf16, #tpu.memory_space<vmem>>, %arg5: memref<3x128x128xbf16, #tpu.memory_space<vmem>>, %arg6: memref<1x128xf32, #tpu.memory_space<vmem>>, %arg7: memref<256x128xbf16, #tpu.memory_space<vmem>>, %arg8: memref<2x256x128xbf16, #tpu.memory_space<vmem>>, %arg9: memref<256x128xf32, #tpu.memory_space<vmem>>, %arg10: memref<256x128xf32, #tpu.memory_space<vmem>>) attributes {dimension_semantics = [#tpu.dimension_semantics<arbitrary>, #tpu.dimension_semantics<arbitrary>, #tpu.dimension_semantics<arbitrary>], iteration_bounds = array<i64: 2, 1, 1>, scalar_prefetch = 0 : i64, scratch_operands = 3 : i64, tpu.core_type = #tpu.core_type<tc>, window_params = [{pipeline_mode = #tpu.pipeline_mode<synchronous>, transform_indices = @transform_0, window_bounds = array<i64: 256, 256>}, {pipeline_mode = #tpu.pipeline_mode<synchronous>, transform_indices = @transform_1, window_bounds = array<i64: 256, 128>}, {pipeline_mode = #tpu.pipeline_mode<synchronous>, transform_indices = @transform_2, window_bounds = array<i64: 3, 128, 128>}, {pipeline_mode = #tpu.pipeline_mode<synchronous>, transform_indices = @transform_3, window_bounds = array<i64: 1, 128>}, {pipeline_mode = #tpu.pipeline_mode<synchronous>, transform_indices = @transform_4, window_bounds = array<i64: 256, 128>}]} {
    %c2_i32 = arith.constant 2 : i32
    %c0_i32 = arith.constant 0 : i32
    %0 = arith.cmpi eq, %c2_i32, %c0_i32 : i32
    %c1_i32 = arith.constant 1 : i32
    %1 = arith.select %0, %c1_i32, %c2_i32 : i32
    %2 = arith.remsi %arg0, %1 : i32
    %c0_i32_0 = arith.constant 0 : i32
    %3 = arith.cmpi ne, %2, %c0_i32_0 : i32
    %c0_i32_1 = arith.constant 0 : i32
    %4 = arith.cmpi slt, %2, %c0_i32_1 : i32
    %c0_i32_2 = arith.constant 0 : i32
    %5 = arith.cmpi slt, %1, %c0_i32_2 : i32
    %6 = arith.xori %4, %5 : i1
    %7 = arith.andi %6, %3 : i1
    %8 = arith.addi %2, %1 : i32
    %9 = arith.select %7, %8, %2 : i32
    %c1_i32_3 = arith.constant 1 : i32
    %10 = arith.subi %c1_i32_3, %9 : i32
    %c256_i32 = arith.constant 256 : i32
    %11 = arith.muli %arg1, %c256_i32 : i32
    %12 = tpu.assume_multiple %11, 256 : i32
    %c0_i32_4 = arith.constant 0 : i32
    %13 = arith.cmpi eq, %arg0, %c0_i32_4 : i32
    %c0_i32_5 = arith.constant 0 : i32
    %14 = arith.cmpi eq, %arg1, %c0_i32_5 : i32
    %15 = arith.andi %13, %14 : i1
    %c0_i32_6 = arith.constant 0 : i32
    %16 = arith.cmpi eq, %arg2, %c0_i32_6 : i32
    %17 = arith.andi %15, %16 : i1
    %18 = arith.extui %17 : i1 to i32
    %c0_i32_7 = arith.constant 0 : i32
    %19 = arith.cmpi ne, %18, %c0_i32_7 : i32
    scf.if %19 {
      %c0_18 = arith.constant 0 : index
      %c0_19 = arith.constant 0 : index
      %35 = vector.load %arg4[%c0_18, %c0_19] : memref<256x128xbf16, #tpu.memory_space<vmem>>, vector<256x128xbf16>
      %c0_20 = arith.constant 0 : index
      %c0_21 = arith.constant 0 : index
      %c0_22 = arith.constant 0 : index
      %36 = vector.load %arg8[%c0_20, %c0_21, %c0_22] : memref<2x256x128xbf16, #tpu.memory_space<vmem>>, vector<1x256x128xbf16>
      %37 = vector.shape_cast %36 : vector<1x256x128xbf16> to vector<256x128xbf16>
      %38 = vector.shape_cast %35 : vector<256x128xbf16> to vector<1x256x128xbf16>
      tpu.vector_store %arg8[%c0_20, %c0_21, %c0_22], %38 {strides = array<i32>} : memref<2x256x128xbf16, #tpu.memory_space<vmem>>, vector<1x256x128xbf16>,
    } else {
    }
    %c0_i32_8 = arith.constant 0 : i32
    %20 = arith.cmpi eq, %arg2, %c0_i32_8 : i32
    %21 = arith.extui %20 : i1 to i32
    %c0_i32_9 = arith.constant 0 : i32
    %22 = arith.cmpi ne, %21, %c0_i32_9 : i32
    scf.if %22 {
      %cst_18 = arith.constant 0.000000e+00 : f32
      %35 = vector.broadcast %cst_18 : f32 to vector<256x128xf32>
      %c0_19 = arith.constant 0 : index
      %c0_20 = arith.constant 0 : index
      %36 = vector.load %arg9[%c0_19, %c0_20] : memref<256x128xf32, #tpu.memory_space<vmem>>, vector<256x128xf32>
      tpu.vector_store %arg9[%c0_19, %c0_20], %35 {strides = array<i32>} : memref<256x128xf32, #tpu.memory_space<vmem>>, vector<256x128xf32>,
    } else {
    }
    %23 = arith.index_cast %12 : i32 to index
    %c0 = arith.constant 0 : index
    %24 = vector.load %arg3[%23, %c0] : memref<256x256xbf16, #tpu.memory_space<vmem>>, vector<256x256xbf16>
    %25 = arith.index_cast %9 : i32 to index
    %c0_10 = arith.constant 0 : index
    %c0_11 = arith.constant 0 : index
    %26 = vector.load %arg8[%25, %c0_10, %c0_11] : memref<2x256x128xbf16, #tpu.memory_space<vmem>>, vector<1x256x128xbf16>
    %27 = vector.shape_cast %26 : vector<1x256x128xbf16> to vector<256x128xbf16>
    %c0_12 = arith.constant 0 : index
    %c0_13 = arith.constant 0 : index
    %28 = vector.load %arg9[%c0_12, %c0_13] : memref<256x128xf32, #tpu.memory_space<vmem>>, vector<256x128xf32>
    %cst = arith.constant dense<0.000000e+00> : vector<256x128xf32>
    %29 = tpu.matmul %24, %27, %cst {dimension_numbers = #tpu.dot_dimension_numbers<[1], [0], [0], [1], [0, 0, 1, 1], [], []>} : vector<256x256xbf16>, vector<256x128xbf16>, vector<256x128xf32> -> vector<256x128xf32>
    %30 = arith.addf %28, %29 : vector<256x128xf32>
    %c0_14 = arith.constant 0 : index
    %c0_15 = arith.constant 0 : index
    %31 = vector.load %arg9[%c0_14, %c0_15] : memref<256x128xf32, #tpu.memory_space<vmem>>, vector<256x128xf32>
    tpu.vector_store %arg9[%c0_14, %c0_15], %30 {strides = array<i32>} : memref<256x128xf32, #tpu.memory_space<vmem>>, vector<256x128xf32>,
    %c0_i32_16 = arith.constant 0 : i32
    %32 = arith.cmpi eq, %arg2, %c0_i32_16 : i32
    %33 = arith.extui %32 : i1 to i32
    %c0_i32_17 = arith.constant 0 : i32
    %34 = arith.cmpi ne, %33, %c0_i32_17 : i32
    scf.if %34 {
      %c0_18 = arith.constant 0 : index
      %c0_19 = arith.constant 0 : index
      %35 = vector.load %arg9[%c0_18, %c0_19] : memref<256x128xf32, #tpu.memory_space<vmem>>, vector<256x128xf32>
      %36 = arith.truncf %35 : vector<256x128xf32> to vector<256x128xbf16>
      %37 = arith.index_cast %10 : i32 to index
      %38 = arith.index_cast %12 : i32 to index
      %c0_20 = arith.constant 0 : index
      %39 = vector.load %arg8[%37, %38, %c0_20] : memref<2x256x128xbf16, #tpu.memory_space<vmem>>, vector<1x256x128xbf16>
      %40 = vector.shape_cast %39 : vector<1x256x128xbf16> to vector<256x128xbf16>
      %41 = vector.shape_cast %36 : vector<256x128xbf16> to vector<1x256x128xbf16>
      tpu.vector_store %arg8[%37, %38, %c0_20], %41 {strides = array<i32>} : memref<2x256x128xbf16, #tpu.memory_space<vmem>>, vector<1x256x128xbf16>,
      %c1_i32_21 = arith.constant 1 : i32
      %42 = arith.addi %arg0, %c1_i32_21 : i32
      %43 = arith.index_cast %42 : i32 to index
      %c0_22 = arith.constant 0 : index
      %c0_23 = arith.constant 0 : index
      %44 = vector.load %arg5[%43, %c0_22, %c0_23] : memref<3x128x128xbf16, #tpu.memory_space<vmem>>, vector<1x128x128xbf16>
      %45 = vector.shape_cast %44 : vector<1x128x128xbf16> to vector<128x128xbf16>
      %cst_24 = arith.constant dense<0.000000e+00> : vector<256x128xf32>
      %46 = tpu.matmul %36, %45, %cst_24 {dimension_numbers = #tpu.dot_dimension_numbers<[1], [0], [0], [1], [0, 0, 1, 1], [], []>} : vector<256x128xbf16>, vector<128x128xbf16>, vector<256x128xf32> -> vector<256x128xf32>
      %c0_i32_25 = arith.constant 0 : i32
      %47 = arith.cmpi eq, %arg0, %c0_i32_25 : i32
      %48 = arith.extui %47 : i1 to i32
      %c0_i32_26 = arith.constant 0 : i32
      %49 = arith.cmpi ne, %48, %c0_i32_26 : i32
      scf.if %49 {
        %56 = arith.index_cast %12 : i32 to index
        %c0_31 = arith.constant 0 : index
        %57 = vector.load %arg4[%56, %c0_31] : memref<256x128xbf16, #tpu.memory_space<vmem>>, vector<256x128xbf16>
        %c0_32 = arith.constant 0 : index
        %c0_33 = arith.constant 0 : index
        %c0_34 = arith.constant 0 : index
        %58 = vector.load %arg5[%c0_32, %c0_33, %c0_34] : memref<3x128x128xbf16, #tpu.memory_space<vmem>>, vector<1x128x128xbf16>
        %59 = vector.shape_cast %58 : vector<1x128x128xbf16> to vector<128x128xbf16>
        %cst_35 = arith.constant dense<0.000000e+00> : vector<256x128xf32>
        %60 = tpu.matmul %57, %59, %cst_35 {dimension_numbers = #tpu.dot_dimension_numbers<[1], [0], [0], [1], [0, 0, 1, 1], [], []>} : vector<256x128xbf16>, vector<128x128xbf16>, vector<256x128xf32> -> vector<256x128xf32>
        %61 = arith.addf %46, %60 : vector<256x128xf32>
        %62 = arith.index_cast %12 : i32 to index
        %c0_36 = arith.constant 0 : index
        %63 = vector.load %arg10[%62, %c0_36] : memref<256x128xf32, #tpu.memory_space<vmem>>, vector<256x128xf32>
        tpu.vector_store %arg10[%62, %c0_36], %61 {strides = array<i32>} : memref<256x128xf32, #tpu.memory_space<vmem>>, vector<256x128xf32>,
      } else {
      }
      %c0_i32_27 = arith.constant 0 : i32
      %50 = arith.cmpi sgt, %arg0, %c0_i32_27 : i32
      %51 = arith.extui %50 : i1 to i32
      %c0_i32_28 = arith.constant 0 : i32
      %52 = arith.cmpi ne, %51, %c0_i32_28 : i32
      scf.if %52 {
        %56 = arith.index_cast %12 : i32 to index
        %c0_31 = arith.constant 0 : index
        %57 = vector.load %arg10[%56, %c0_31] : memref<256x128xf32, #tpu.memory_space<vmem>>, vector<256x128xf32>
        %58 = arith.addf %57, %46 : vector<256x128xf32>
        %59 = arith.index_cast %12 : i32 to index
        %c0_32 = arith.constant 0 : index
        %60 = vector.load %arg10[%59, %c0_32] : memref<256x128xf32, #tpu.memory_space<vmem>>, vector<256x128xf32>
        tpu.vector_store %arg10[%59, %c0_32], %58 {strides = array<i32>} : memref<256x128xf32, #tpu.memory_space<vmem>>, vector<256x128xf32>,
      } else {
      }
      %c1_i32_29 = arith.constant 1 : i32
      %53 = arith.cmpi eq, %arg0, %c1_i32_29 : i32
      %54 = arith.extui %53 : i1 to i32
      %c0_i32_30 = arith.constant 0 : i32
      %55 = arith.cmpi ne, %54, %c0_i32_30 : i32
      scf.if %55 {
        %56 = arith.index_cast %12 : i32 to index
        %c0_31 = arith.constant 0 : index
        %57 = vector.load %arg10[%56, %c0_31] : memref<256x128xf32, #tpu.memory_space<vmem>>, vector<256x128xf32>
        %c0_32 = arith.constant 0 : index
        %c0_33 = arith.constant 0 : index
        %58 = vector.load %arg6[%c0_32, %c0_33] : memref<1x128xf32, #tpu.memory_space<vmem>>, vector<1x128xf32>
        %59 = vector.broadcast %58 : vector<1x128xf32> to vector<256x128xf32>
        %60 = arith.addf %57, %59 : vector<256x128xf32>
        %cst_34 = arith.constant 0.000000e+00 : f32
        %61 = vector.broadcast %cst_34 : f32 to vector<256x128xf32>
        %62 = arith.maximumf %60, %61 : vector<256x128xf32>
        %63 = arith.truncf %62 : vector<256x128xf32> to vector<256x128xbf16>
        %64 = arith.index_cast %12 : i32 to index
        %c0_35 = arith.constant 0 : index
        %65 = vector.load %arg7[%64, %c0_35] : memref<256x128xbf16, #tpu.memory_space<vmem>>, vector<256x128xbf16>
        tpu.vector_store %arg7[%64, %c0_35], %63 {strides = array<i32>} : memref<256x128xbf16, #tpu.memory_space<vmem>>, vector<256x128xbf16>,
      } else {
      }
    } else {
    }
    return
  }
  func.func @transform_0(%arg0: i32, %arg1: i32, %arg2: i32) -> (i32, i32) {
    %c0_i32 = arith.constant 0 : i32
    %c0_i32_0 = arith.constant 0 : i32
    %c0_i32_1 = arith.constant 0 : i32
    return %c0_i32, %c0_i32_0 : i32, i32
  }
  func.func @transform_1(%arg0: i32, %arg1: i32, %arg2: i32) -> (i32, i32) {
    %c0_i32 = arith.constant 0 : i32
    %c0_i32_0 = arith.constant 0 : i32
    %c0_i32_1 = arith.constant 0 : i32
    return %c0_i32, %c0_i32_0 : i32, i32
  }
  func.func @transform_2(%arg0: i32, %arg1: i32, %arg2: i32) -> (i32, i32, i32) {
    %c0_i32 = arith.constant 0 : i32
    %c0_i32_0 = arith.constant 0 : i32
    %c0_i32_1 = arith.constant 0 : i32
    %c0_i32_2 = arith.constant 0 : i32
    return %c0_i32, %c0_i32_0, %c0_i32_1 : i32, i32, i32
  }
  func.func @transform_3(%arg0: i32, %arg1: i32, %arg2: i32) -> (i32, i32) {
    %c0_i32 = arith.constant 0 : i32
    %c0_i32_0 = arith.constant 0 : i32
    %c0_i32_1 = arith.constant 0 : i32
    return %c0_i32, %c0_i32_0 : i32, i32
  }
  func.func @transform_4(%arg0: i32, %arg1: i32, %arg2: i32) -> (i32, i32) {
    %c0_i32 = arith.constant 0 : i32
    %c0_i32_0 = arith.constant 0 : i32
    %c0_i32_1 = arith.constant 0 : i32
    return %c0_i32, %c0_i32_0 : i32, i32
  }
}

module attributes {stable_mosaic.version = 11 : i64} {
  func.func @kernel(%arg0: i32, %arg1: i32, %arg2: i32, %arg3: memref<256x256xbf16, #tpu.memory_space<vmem>>, %arg4: memref<256x128xbf16, #tpu.memory_space<vmem>>, %arg5: memref<3x128x128xbf16, #tpu.memory_space<vmem>>, %arg6: memref<1x128xf32, #tpu.memory_space<vmem>>, %arg7: memref<128x128xbf16, #tpu.memory_space<vmem>>, %arg8: memref<1x128xf32, #tpu.memory_space<vmem>>, %arg9: memref<256x128xf32, #tpu.memory_space<vmem>>, %arg10: memref<2x256x128xbf16, #tpu.memory_space<vmem>>, %arg11: memref<256x128xf32, #tpu.memory_space<vmem>>, %arg12: memref<256x128xf32, #tpu.memory_space<vmem>>) attributes {dimension_semantics = [#tpu.dimension_semantics<arbitrary>, #tpu.dimension_semantics<arbitrary>, #tpu.dimension_semantics<arbitrary>], iteration_bounds = array<i64: 2, 1, 1>, scalar_prefetch = 0 : i64, scratch_operands = 3 : i64, tpu.core_type = #tpu.core_type<tc>, window_params = [{pipeline_mode = #tpu.pipeline_mode<synchronous>, transform_indices = @transform_0, window_bounds = array<i64: 256, 256>}, {pipeline_mode = #tpu.pipeline_mode<synchronous>, transform_indices = @transform_1, window_bounds = array<i64: 256, 128>}, {pipeline_mode = #tpu.pipeline_mode<synchronous>, transform_indices = @transform_2, window_bounds = array<i64: 3, 128, 128>}, {pipeline_mode = #tpu.pipeline_mode<synchronous>, transform_indices = @transform_3, window_bounds = array<i64: 1, 128>}, {pipeline_mode = #tpu.pipeline_mode<synchronous>, transform_indices = @transform_4, window_bounds = array<i64: 128, 128>}, {pipeline_mode = #tpu.pipeline_mode<synchronous>, transform_indices = @transform_5, window_bounds = array<i64: 1, 128>}, {pipeline_mode = #tpu.pipeline_mode<synchronous>, transform_indices = @transform_6, window_bounds = array<i64: 256, 128>}]} {
    %c2_i32 = arith.constant 2 : i32
    %c0_i32 = arith.constant 0 : i32
    %0 = arith.cmpi eq, %c2_i32, %c0_i32 : i32
    %c1_i32 = arith.constant 1 : i32
    %1 = arith.select %0, %c1_i32, %c2_i32 : i32
    %2 = arith.remsi %arg0, %1 : i32
    %c0_i32_0 = arith.constant 0 : i32
    %3 = arith.cmpi ne, %2, %c0_i32_0 : i32
    %c0_i32_1 = arith.constant 0 : i32
    %4 = arith.cmpi slt, %2, %c0_i32_1 : i32
    %c0_i32_2 = arith.constant 0 : i32
    %5 = arith.cmpi slt, %1, %c0_i32_2 : i32
    %6 = arith.xori %4, %5 : i1
    %7 = arith.andi %6, %3 : i1
    %8 = arith.addi %2, %1 : i32
    %9 = arith.select %7, %8, %2 : i32
    %c1_i32_3 = arith.constant 1 : i32
    %10 = arith.subi %c1_i32_3, %9 : i32
    %c256_i32 = arith.constant 256 : i32
    %11 = arith.muli %arg1, %c256_i32 : i32
    %12 = tpu.assume_multiple %11, 256 : i32
    %c0_i32_4 = arith.constant 0 : i32
    %13 = arith.cmpi eq, %arg0, %c0_i32_4 : i32
    %c0_i32_5 = arith.constant 0 : i32
    %14 = arith.cmpi eq, %arg1, %c0_i32_5 : i32
    %15 = arith.andi %13, %14 : i1
    %c0_i32_6 = arith.constant 0 : i32
    %16 = arith.cmpi eq, %arg2, %c0_i32_6 : i32
    %17 = arith.andi %15, %16 : i1
    %18 = arith.extui %17 : i1 to i32
    %c0_i32_7 = arith.constant 0 : i32
    %19 = arith.cmpi ne, %18, %c0_i32_7 : i32
    scf.if %19 {
      %c0_18 = arith.constant 0 : index
      %c0_19 = arith.constant 0 : index
      %35 = vector.load %arg4[%c0_18, %c0_19] : memref<256x128xbf16, #tpu.memory_space<vmem>>, vector<256x128xbf16>
      %c0_20 = arith.constant 0 : index
      %c0_21 = arith.constant 0 : index
      %c0_22 = arith.constant 0 : index
      %36 = vector.load %arg10[%c0_20, %c0_21, %c0_22] : memref<2x256x128xbf16, #tpu.memory_space<vmem>>, vector<1x256x128xbf16>
      %37 = vector.shape_cast %36 : vector<1x256x128xbf16> to vector<256x128xbf16>
      %38 = vector.shape_cast %35 : vector<256x128xbf16> to vector<1x256x128xbf16>
      tpu.vector_store %arg10[%c0_20, %c0_21, %c0_22], %38 {strides = array<i32>} : memref<2x256x128xbf16, #tpu.memory_space<vmem>>, vector<1x256x128xbf16>,
    } else {
    }
    %c0_i32_8 = arith.constant 0 : i32
    %20 = arith.cmpi eq, %arg2, %c0_i32_8 : i32
    %21 = arith.extui %20 : i1 to i32
    %c0_i32_9 = arith.constant 0 : i32
    %22 = arith.cmpi ne, %21, %c0_i32_9 : i32
    scf.if %22 {
      %cst_18 = arith.constant 0.000000e+00 : f32
      %35 = vector.broadcast %cst_18 : f32 to vector<256x128xf32>
      %c0_19 = arith.constant 0 : index
      %c0_20 = arith.constant 0 : index
      %36 = vector.load %arg11[%c0_19, %c0_20] : memref<256x128xf32, #tpu.memory_space<vmem>>, vector<256x128xf32>
      tpu.vector_store %arg11[%c0_19, %c0_20], %35 {strides = array<i32>} : memref<256x128xf32, #tpu.memory_space<vmem>>, vector<256x128xf32>,
    } else {
    }
    %23 = arith.index_cast %12 : i32 to index
    %c0 = arith.constant 0 : index
    %24 = vector.load %arg3[%23, %c0] : memref<256x256xbf16, #tpu.memory_space<vmem>>, vector<256x256xbf16>
    %25 = arith.index_cast %9 : i32 to index
    %c0_10 = arith.constant 0 : index
    %c0_11 = arith.constant 0 : index
    %26 = vector.load %arg10[%25, %c0_10, %c0_11] : memref<2x256x128xbf16, #tpu.memory_space<vmem>>, vector<1x256x128xbf16>
    %27 = vector.shape_cast %26 : vector<1x256x128xbf16> to vector<256x128xbf16>
    %c0_12 = arith.constant 0 : index
    %c0_13 = arith.constant 0 : index
    %28 = vector.load %arg11[%c0_12, %c0_13] : memref<256x128xf32, #tpu.memory_space<vmem>>, vector<256x128xf32>
    %cst = arith.constant dense<0.000000e+00> : vector<256x128xf32>
    %29 = tpu.matmul %24, %27, %cst {dimension_numbers = #tpu.dot_dimension_numbers<[1], [0], [0], [1], [0, 0, 1, 1], [], []>} : vector<256x256xbf16>, vector<256x128xbf16>, vector<256x128xf32> -> vector<256x128xf32>
    %30 = arith.addf %28, %29 : vector<256x128xf32>
    %c0_14 = arith.constant 0 : index
    %c0_15 = arith.constant 0 : index
    %31 = vector.load %arg11[%c0_14, %c0_15] : memref<256x128xf32, #tpu.memory_space<vmem>>, vector<256x128xf32>
    tpu.vector_store %arg11[%c0_14, %c0_15], %30 {strides = array<i32>} : memref<256x128xf32, #tpu.memory_space<vmem>>, vector<256x128xf32>,
    %c0_i32_16 = arith.constant 0 : i32
    %32 = arith.cmpi eq, %arg2, %c0_i32_16 : i32
    %33 = arith.extui %32 : i1 to i32
    %c0_i32_17 = arith.constant 0 : i32
    %34 = arith.cmpi ne, %33, %c0_i32_17 : i32
    scf.if %34 {
      %c0_18 = arith.constant 0 : index
      %c0_19 = arith.constant 0 : index
      %35 = vector.load %arg11[%c0_18, %c0_19] : memref<256x128xf32, #tpu.memory_space<vmem>>, vector<256x128xf32>
      %36 = arith.truncf %35 : vector<256x128xf32> to vector<256x128xbf16>
      %37 = arith.index_cast %10 : i32 to index
      %38 = arith.index_cast %12 : i32 to index
      %c0_20 = arith.constant 0 : index
      %39 = vector.load %arg10[%37, %38, %c0_20] : memref<2x256x128xbf16, #tpu.memory_space<vmem>>, vector<1x256x128xbf16>
      %40 = vector.shape_cast %39 : vector<1x256x128xbf16> to vector<256x128xbf16>
      %41 = vector.shape_cast %36 : vector<256x128xbf16> to vector<1x256x128xbf16>
      tpu.vector_store %arg10[%37, %38, %c0_20], %41 {strides = array<i32>} : memref<2x256x128xbf16, #tpu.memory_space<vmem>>, vector<1x256x128xbf16>,
      %c1_i32_21 = arith.constant 1 : i32
      %42 = arith.addi %arg0, %c1_i32_21 : i32
      %43 = arith.index_cast %42 : i32 to index
      %c0_22 = arith.constant 0 : index
      %c0_23 = arith.constant 0 : index
      %44 = vector.load %arg5[%43, %c0_22, %c0_23] : memref<3x128x128xbf16, #tpu.memory_space<vmem>>, vector<1x128x128xbf16>
      %45 = vector.shape_cast %44 : vector<1x128x128xbf16> to vector<128x128xbf16>
      %cst_24 = arith.constant dense<0.000000e+00> : vector<256x128xf32>
      %46 = tpu.matmul %36, %45, %cst_24 {dimension_numbers = #tpu.dot_dimension_numbers<[1], [0], [0], [1], [0, 0, 1, 1], [], []>} : vector<256x128xbf16>, vector<128x128xbf16>, vector<256x128xf32> -> vector<256x128xf32>
      %c0_i32_25 = arith.constant 0 : i32
      %47 = arith.cmpi eq, %arg0, %c0_i32_25 : i32
      %48 = arith.extui %47 : i1 to i32
      %c0_i32_26 = arith.constant 0 : i32
      %49 = arith.cmpi ne, %48, %c0_i32_26 : i32
      scf.if %49 {
        %56 = arith.index_cast %12 : i32 to index
        %c0_31 = arith.constant 0 : index
        %57 = vector.load %arg4[%56, %c0_31] : memref<256x128xbf16, #tpu.memory_space<vmem>>, vector<256x128xbf16>
        %c0_32 = arith.constant 0 : index
        %c0_33 = arith.constant 0 : index
        %c0_34 = arith.constant 0 : index
        %58 = vector.load %arg5[%c0_32, %c0_33, %c0_34] : memref<3x128x128xbf16, #tpu.memory_space<vmem>>, vector<1x128x128xbf16>
        %59 = vector.shape_cast %58 : vector<1x128x128xbf16> to vector<128x128xbf16>
        %cst_35 = arith.constant dense<0.000000e+00> : vector<256x128xf32>
        %60 = tpu.matmul %57, %59, %cst_35 {dimension_numbers = #tpu.dot_dimension_numbers<[1], [0], [0], [1], [0, 0, 1, 1], [], []>} : vector<256x128xbf16>, vector<128x128xbf16>, vector<256x128xf32> -> vector<256x128xf32>
        %61 = arith.addf %46, %60 : vector<256x128xf32>
        %62 = arith.index_cast %12 : i32 to index
        %c0_36 = arith.constant 0 : index
        %63 = vector.load %arg12[%62, %c0_36] : memref<256x128xf32, #tpu.memory_space<vmem>>, vector<256x128xf32>
        tpu.vector_store %arg12[%62, %c0_36], %61 {strides = array<i32>} : memref<256x128xf32, #tpu.memory_space<vmem>>, vector<256x128xf32>,
      } else {
      }
      %c0_i32_27 = arith.constant 0 : i32
      %50 = arith.cmpi sgt, %arg0, %c0_i32_27 : i32
      %51 = arith.extui %50 : i1 to i32
      %c0_i32_28 = arith.constant 0 : i32
      %52 = arith.cmpi ne, %51, %c0_i32_28 : i32
      scf.if %52 {
        %56 = arith.index_cast %12 : i32 to index
        %c0_31 = arith.constant 0 : index
        %57 = vector.load %arg12[%56, %c0_31] : memref<256x128xf32, #tpu.memory_space<vmem>>, vector<256x128xf32>
        %58 = arith.addf %57, %46 : vector<256x128xf32>
        %59 = arith.index_cast %12 : i32 to index
        %c0_32 = arith.constant 0 : index
        %60 = vector.load %arg12[%59, %c0_32] : memref<256x128xf32, #tpu.memory_space<vmem>>, vector<256x128xf32>
        tpu.vector_store %arg12[%59, %c0_32], %58 {strides = array<i32>} : memref<256x128xf32, #tpu.memory_space<vmem>>, vector<256x128xf32>,
      } else {
      }
      %c1_i32_29 = arith.constant 1 : i32
      %53 = arith.cmpi eq, %arg0, %c1_i32_29 : i32
      %54 = arith.extui %53 : i1 to i32
      %c0_i32_30 = arith.constant 0 : i32
      %55 = arith.cmpi ne, %54, %c0_i32_30 : i32
      scf.if %55 {
        %56 = arith.index_cast %12 : i32 to index
        %c0_31 = arith.constant 0 : index
        %57 = vector.load %arg12[%56, %c0_31] : memref<256x128xf32, #tpu.memory_space<vmem>>, vector<256x128xf32>
        %c0_32 = arith.constant 0 : index
        %c0_33 = arith.constant 0 : index
        %58 = vector.load %arg6[%c0_32, %c0_33] : memref<1x128xf32, #tpu.memory_space<vmem>>, vector<1x128xf32>
        %59 = vector.broadcast %58 : vector<1x128xf32> to vector<256x128xf32>
        %60 = arith.addf %57, %59 : vector<256x128xf32>
        %cst_34 = arith.constant 0.000000e+00 : f32
        %61 = vector.broadcast %cst_34 : f32 to vector<256x128xf32>
        %62 = arith.maximumf %60, %61 : vector<256x128xf32>
        %63 = arith.truncf %62 : vector<256x128xf32> to vector<256x128xbf16>
        %c0_35 = arith.constant 0 : index
        %c0_36 = arith.constant 0 : index
        %64 = vector.load %arg7[%c0_35, %c0_36] : memref<128x128xbf16, #tpu.memory_space<vmem>>, vector<128x128xbf16>
        %cst_37 = arith.constant dense<0.000000e+00> : vector<256x128xf32>
        %65 = tpu.matmul %63, %64, %cst_37 {dimension_numbers = #tpu.dot_dimension_numbers<[1], [0], [0], [1], [0, 0, 1, 1], [], []>} : vector<256x128xbf16>, vector<128x128xbf16>, vector<256x128xf32> -> vector<256x128xf32>
        %c0_38 = arith.constant 0 : index
        %c0_39 = arith.constant 0 : index
        %66 = vector.load %arg8[%c0_38, %c0_39] : memref<1x128xf32, #tpu.memory_space<vmem>>, vector<1x128xf32>
        %67 = vector.broadcast %66 : vector<1x128xf32> to vector<256x128xf32>
        %68 = arith.addf %65, %67 : vector<256x128xf32>
        %69 = tpu.iota {dimensions = array<i32: 1>} : vector<256x128xi32>
        %c8_i32 = arith.constant 8 : i32
        %70 = vector.broadcast %c8_i32 : i32 to vector<256x128xi32>
        %71 = arith.cmpi slt, %69, %70 : vector<256x128xi32>
        %cst_40 = arith.constant -1.000000e+30 : f32
        %72 = vector.broadcast %cst_40 : f32 to vector<256x128xf32>
        %73 = arith.select %71, %68, %72 : vector<256x128xi1>, vector<256x128xf32>
        %cst_41 = arith.constant dense<0xFF800000> : vector<256xf32>
        %74 = vector.multi_reduction <maximumf>, %73, %cst_41 [1] : vector<256x128xf32> to vector<256xf32>
        %75 = vector.shape_cast %74 : vector<256xf32> to vector<256x1xf32>
        %76 = vector.broadcast %75 : vector<256x1xf32> to vector<256x128xf32>
        %77 = arith.subf %73, %76 : vector<256x128xf32>
        %78 = math.exp %77 : vector<256x128xf32>
        %cst_42 = arith.constant dense<0.000000e+00> : vector<256xf32>
        %79 = vector.multi_reduction <add>, %78, %cst_42 [1] : vector<256x128xf32> to vector<256xf32>
        %80 = vector.shape_cast %79 : vector<256xf32> to vector<256x1xf32>
        %81 = vector.broadcast %80 : vector<256x1xf32> to vector<256x128xf32>
        %82 = arith.divf %78, %81 : vector<256x128xf32>
        %83 = arith.index_cast %12 : i32 to index
        %c0_43 = arith.constant 0 : index
        %84 = vector.load %arg9[%83, %c0_43] : memref<256x128xf32, #tpu.memory_space<vmem>>, vector<256x128xf32>
        tpu.vector_store %arg9[%83, %c0_43], %82 {strides = array<i32>} : memref<256x128xf32, #tpu.memory_space<vmem>>, vector<256x128xf32>,
      } else {
      }
    } else {
    }
    return
  }
  func.func @transform_0(%arg0: i32, %arg1: i32, %arg2: i32) -> (i32, i32) {
    %c0_i32 = arith.constant 0 : i32
    %c0_i32_0 = arith.constant 0 : i32
    %c0_i32_1 = arith.constant 0 : i32
    return %c0_i32, %c0_i32_0 : i32, i32
  }
  func.func @transform_1(%arg0: i32, %arg1: i32, %arg2: i32) -> (i32, i32) {
    %c0_i32 = arith.constant 0 : i32
    %c0_i32_0 = arith.constant 0 : i32
    %c0_i32_1 = arith.constant 0 : i32
    return %c0_i32, %c0_i32_0 : i32, i32
  }
  func.func @transform_2(%arg0: i32, %arg1: i32, %arg2: i32) -> (i32, i32, i32) {
    %c0_i32 = arith.constant 0 : i32
    %c0_i32_0 = arith.constant 0 : i32
    %c0_i32_1 = arith.constant 0 : i32
    %c0_i32_2 = arith.constant 0 : i32
    return %c0_i32, %c0_i32_0, %c0_i32_1 : i32, i32, i32
  }
  func.func @transform_3(%arg0: i32, %arg1: i32, %arg2: i32) -> (i32, i32) {
    %c0_i32 = arith.constant 0 : i32
    %c0_i32_0 = arith.constant 0 : i32
    %c0_i32_1 = arith.constant 0 : i32
    return %c0_i32, %c0_i32_0 : i32, i32
  }
  func.func @transform_4(%arg0: i32, %arg1: i32, %arg2: i32) -> (i32, i32) {
    %c0_i32 = arith.constant 0 : i32
    %c0_i32_0 = arith.constant 0 : i32
    %c0_i32_1 = arith.constant 0 : i32
    return %c0_i32, %c0_i32_0 : i32, i32
  }
  func.func @transform_5(%arg0: i32, %arg1: i32, %arg2: i32) -> (i32, i32) {
    %c0_i32 = arith.constant 0 : i32
    %c0_i32_0 = arith.constant 0 : i32
    %c0_i32_1 = arith.constant 0 : i32
    return %c0_i32, %c0_i32_0 : i32, i32
  }
  func.func @transform_6(%arg0: i32, %arg1: i32, %arg2: i32) -> (i32, i32) {
    %c0_i32 = arith.constant 0 : i32
    %c0_i32_0 = arith.constant 0 : i32
    %c0_i32_1 = arith.constant 0 : i32
    return %c0_i32, %c0_i32_0 : i32, i32
  }
}

</mosaic_0001>

<bundles_post_ra>
// kernel: higher_order_gcn_2layer.3
= control target key start
LH: loop header
LB: loop body
LE: loop exit
PB: predicated region body
PF: predicated region fallthrough
CT: control target
= control target key end

     0   :  { %s3634_s21 = smov 0   ;;  %s3636_s22 = smov 0   ;;  %s4603_s0 = inlined_call_operand.vmem [shape: bf16[256,256], index: 0, kind: input, shape index: {}]   ;;  %s4604_s1 = inlined_call_operand.vmem [shape: bf16[256,128], index: 1, kind: input, shape index: {}]   ;;  %s4605_s2 = inlined_call_operand.vmem [shape: bf16[3,128,128], index: 2, kind: input, shape index: {}]   ;;  %s4606_s3 = inlined_call_operand.vmem [shape: f32[1,128], index: 3, kind: input, shape index: {}]   ;;  %s4607_s4 = inlined_call_operand.vmem [shape: bf16[128,128], index: 4, kind: input, shape index: {}]   ;;  %s4608_s5 = inlined_call_operand.vmem [shape: f32[1,128], index: 5, kind: input, shape index: {}]   ;;  %s4609_s6 = inlined_call_operand.vmem [shape: f32[256,128], index: 6, kind: output, shape index: {}]  }
   0x1   :  { %s3638_s23 = smov 0  }
   0x2 LB: > { %s35_s24 = sadd.s32 1, %s3593_s22  ;;  %p2658_p0 = scmp.ge.s32.totalorder %s3597_s23, 1  ;;  %s3597_s23 = sphi %s3638_s23, %s16_s23   ;;  %s3593_s22 = sphi %s3636_s22, %s4611_s22   ;;  %s3589_s21 = sphi %s3634_s21, %s4610_s21  }
   0x3   : > { %p37_p1 = scmp.ge.s32.totalorder %s35_s24, 2  ;;  %p216_p2 = scmp.lt.s32.totalorder %s3597_s23, 3 }
   0x5   : > { %s4613_s24 = smov (%p37_p1, %s35_s24), 0  ;;  %p217_p3 = pnand %p2658_p0, %p216_p2 }
   0x6   : > { %p237_p4 = scmp.lt.s32.totalorder (!%p217_p3), %s3589_s21, 0  ;;  %s238_s25 = ssub.s32 (!%p217_p3), 0, %s3589_s21 }
   0x7   : > { %220 = sbr.rel (%p217_p3) target bundleno = 1462 (0x5b6), region = 44  ;;  %s2659_s26 = smin.u32 (!%p217_p3), %s3589_s21, %s238_s25 }
   0x8   : > { %p251_p5 = scmp.eq.s32.totalorder (!%p217_p3), %s3589_s21, 0  ;;  %s240_s27 = sand.u32 (!%p217_p3), 1, %s2659_s26  }
   0x9   : > { %s241_s28 = ssub.s32 (!%p217_p3), 0, %s240_s27 }
   0xc   : > { %s4615_s28 = smov (!%p237_p4, %s241_s28), %s240_s27  ;;  %259 = sbr.rel (!%p251_p5) target bundleno = 21 (0x15), region = 48  ;;  %v260_v0 = vld [vmem:[%s4604_s1] sm:$0xff] (%p251_p5)   ;;  %v262_v1 = vld [vmem:[%s4604_s1 + $0x8] sm:$0xff] (%p251_p5)   ;;  %v264_v2 = vld [vmem:[%s4604_s1 + $0x10] sm:$0xff] (%p251_p5)  }
   0xd   : > { %p2661_p6 = scmp.lt.s32.totalorder %s4615_s28, 0  ;;  %s247_s29 = sadd.s32 2, %s4615_s28  ;;  %292 = vst [vmem:[#allocation2] sm:$0xff] (%p251_p5), %v260_v0   ;;  %294 = vst [vmem:[#allocation2 + $0x8] sm:$0xff] (%p251_p5), %v262_v1   ;;  %v266_v3 = vld [vmem:[%s4604_s1 + $0x18] sm:$0xff] (%p251_p5)   ;;  %v268_v4 = vld [vmem:[%s4604_s1 + $0x20] sm:$0xff] (%p251_p5)  }
   0xe   : > { %296 = vst [vmem:[#allocation2 + $0x10] sm:$0xff] (%p251_p5), %v264_v2   ;;  %v270_v5 = vld [vmem:[%s4604_s1 + $0x28] sm:$0xff] (%p251_p5)   ;;  %298 = vst [vmem:[#allocation2 + $0x18] sm:$0xff] (%p251_p5), %v266_v3   ;;  %v272_v6 = vld [vmem:[%s4604_s1 + $0x30] sm:$0xff] (%p251_p5)  }
   0xf   : > { %s4617_s29 = smov (!%p2661_p6, %s247_s29), %s4615_s28  ;;  %300 = vst [vmem:[#allocation2 + $0x20] sm:$0xff] (%p251_p5), %v268_v4   ;;  %302 = vst [vmem:[#allocation2 + $0x28] sm:$0xff] (%p251_p5), %v270_v5   ;;  %v274_v7 = vld [vmem:[%s4604_s1 + $0x38] sm:$0xff] (%p251_p5)   ;;  %v276_v8 = vld [vmem:[%s4604_s1 + $0x40] sm:$0xff] (%p251_p5)  }
  0x10   : > { %s249_s30 = ssub.s32 1, %s4617_s29  ;;  %304 = vst [vmem:[#allocation2 + $0x30] sm:$0xff] (%p251_p5), %v272_v6   ;;  %306 = vst [vmem:[#allocation2 + $0x38] sm:$0xff] (%p251_p5), %v274_v7   ;;  %v278_v9 = vld [vmem:[%s4604_s1 + $0x48] sm:$0xff] (%p251_p5)   ;;  %v280_v10 = vld [vmem:[%s4604_s1 + $0x50] sm:$0xff] (%p251_p5)  }
  0x11   : > { %308 = vst [vmem:[#allocation2 + $0x40] sm:$0xff] %v276_v8   ;;  %v282_v11 = vld [vmem:[%s4604_s1 + $0x58] sm:$0xff]   ;;  %310 = vst [vmem:[#allocation2 + $0x48] sm:$0xff] %v278_v9   ;;  %v284_v12 = vld [vmem:[%s4604_s1 + $0x60] sm:$0xff]  }
  0x12   : > { %312 = vst [vmem:[#allocation2 + $0x50] sm:$0xff] %v280_v10   ;;  %314 = vst [vmem:[#allocation2 + $0x58] sm:$0xff] %v282_v11   ;;  %v286_v13 = vld [vmem:[%s4604_s1 + $0x68] sm:$0xff]   ;;  %v288_v14 = vld [vmem:[%s4604_s1 + $0x70] sm:$0xff]  }
  0x13   : > { %316 = vst [vmem:[#allocation2 + $0x60] sm:$0xff] %v284_v12   ;;  %318 = vst [vmem:[#allocation2 + $0x68] sm:$0xff] %v286_v13   ;;  %v290_v15 = vld [vmem:[%s4604_s1 + $0x78] sm:$0xff]  }
  0x14   : > { %320 = vst [vmem:[#allocation2 + $0x70] sm:$0xff] %v288_v14   ;;  %322 = vst [vmem:[#allocation2 + $0x78] sm:$0xff] %v290_v15  }
  0x15 PF: > { %s2814_s25 = sshll.u32 %s4617_s29, 7  ;;  %v3361_v16 = vld [vmem:[%s4603_s0 + $0x4] ss:$8 sps:$4 sm:$0xff]   ;;  %v3359_v34 = vld [vmem:[%s4603_s0] ss:$8 sps:$4 sm:$0xff]   ;;  %s2748_s15 = sshll.u32 %s3589_s21, 6 }
  0x16   : > { %s3713_s28 = scalar_lea.vmem [#allocation2], %s2814_s25  ;;  %751 = vmatprep.mubr.bf16.mxu0 %v3361_v16  ;;  %v3391_v33 = vld [vmem:[%s4603_s0 + $0xc4] ss:$8 sps:$4 sm:$0xff]   ;;  %v3362_v35 = vld [vmem:[%s4603_s0 + $0x14] ss:$8 sps:$4 sm:$0xff]   ;;  %s3750_s20 = scalar_lea.vmem %s4605_s2, %s2748_s15 }
  0x17   : > { %v3389_v36 = vld [vmem:[%s4603_s0 + $0xc0] ss:$8 sps:$4 sm:$0xff]   ;;  %847 = vmatprep.mubr.bf16.mxu1 %v3391_v33  ;;  %v3395_v37 = vld [vmem:[%s4603_s0 + $0xd4] ss:$8 sps:$4 sm:$0xff]   ;;  %v3364_v38 = vld [vmem:[%s4603_s0 + $0x10] ss:$8 sps:$4 sm:$0xff]  }
  0x18   : > { %v3397_v39 = vld [vmem:[%s4603_s0 + $0xd0] ss:$8 sps:$4 sm:$0xff]   ;;  %v3365_v41 = vld [vmem:[%s4603_s0 + $0x24] ss:$8 sps:$4 sm:$0xff]   ;;  %v3367_v46 = vld [vmem:[%s4603_s0 + $0x20] ss:$8 sps:$4 sm:$0xff]  }
  0x19   : > { %v3407_v40 = vld [vmem:[%s3750_s20 + $0x78] sm:$0xff]   ;;  %v3408_v42 = vld [vmem:[%s3750_s20 + $0x70] sm:$0xff]   ;;  %v3401_v43 = vld [vmem:[%s4603_s0 + $0xe4] ss:$8 sps:$4 sm:$0xff]   ;;  %s2847_s26 = sshll.u32 %s249_s30, 7  ;;  %p2773_p7 = scmp.ne.s32.totalorder %s3589_s21, 0 }
  0x1a   : > { %v3409_v44 = vld [vmem:[%s3750_s20 + $0x68] sm:$0xff]   ;;  %v3410_v45 = vld [vmem:[%s3750_s20 + $0x60] sm:$0xff]   ;;  %v3368_v48 = vld [vmem:[%s4603_s0 + $0x34] ss:$8 sps:$4 sm:$0xff]  }
  0x1b   : > { %v3343_v17 = vld [vmem:[%s3713_s28 + $0x78] sm:$0xff]   ;;  %v3345_v19 = vld [vmem:[%s3713_s28 + $0x70] sm:$0xff]   ;;  %v3347_v21 = vld [vmem:[%s3713_s28 + $0x68] sm:$0xff]  }
  0x1c   : > { %v3344_v18 = vld [vmem:[%s3713_s28 + $0x38] sm:$0xff]   ;;  %2943 = vmatprep.subr.bf16.mxu0 %v3343_v17  ;;  %3271 = vmatprep.subr.bf16.mxu1 %v3343_v17  ;;  %v3346_v20 = vld [vmem:[%s3713_s28 + $0x30] sm:$0xff]   ;;  %v3348_v22 = vld [vmem:[%s3713_s28 + $0x28] sm:$0xff]  }
  0x1d   : > { %2944 = vmatpush3.bf16.msra.mxu0 %v3344_v18  ;;  %3279 = vmatpush3.bf16.msra.mxu1 %v3344_v18  ;;  %v3349_v23 = vld [vmem:[%s3713_s28 + $0x60] sm:$0xff]   ;;  %v3351_v25 = vld [vmem:[%s3713_s28 + $0x58] sm:$0xff]   ;;  %v3353_v27 = vld [vmem:[%s3713_s28 + $0x50] sm:$0xff]  }
  0x1e   : > { %2945 = vmatprep.subr.bf16.mxu0 %v3345_v19  ;;  %3272 = vmatprep.subr.bf16.mxu1 %v3345_v19  ;;  %v3350_v24 = vld [vmem:[%s3713_s28 + $0x20] sm:$0xff]   ;;  %v3352_v26 = vld [vmem:[%s3713_s28 + $0x18] sm:$0xff]   ;;  %v3354_v28 = vld [vmem:[%s3713_s28 + $0x10] sm:$0xff]  }
  0x1f   : > { %v3355_v29 = vld [vmem:[%s3713_s28 + $0x48] sm:$0xff]   ;;  %v3357_v31 = vld [vmem:[%s3713_s28 + $0x40] sm:$0xff]   ;;  %v3404_v49 = vld [vmem:[%s4603_s0 + $0xf4] ss:$8 sps:$4 sm:$0xff]  }
  0x20   : > { %v3356_v30 = vld [vmem:[%s3713_s28 + $0x8] sm:$0xff]   ;;  %v3358_v32 = vld [vmem:[%s3713_s28] sm:$0xff]   ;;  %v3370_v50 = vld [vmem:[%s4603_s0 + $0x30] ss:$8 sps:$4 sm:$0xff]  }
  0x21   : > { %2946 = vmatpush3.bf16.msra.mxu0 %v3346_v20  ;;  %3280 = vmatpush3.bf16.msra.mxu1 %v3346_v20  ;;  %v3403_v47 = vld [vmem:[%s4603_s0 + $0xe0] ss:$8 sps:$4 sm:$0xff]   ;;  %v3406_v51 = vld [vmem:[%s4603_s0 + $0xf0] ss:$8 sps:$4 sm:$0xff]   ;;  %v3371_v52 = vld [vmem:[%s4603_s0 + $0x44] ss:$8 sps:$4 sm:$0xff]  }
  0x22   : > { %2947 = vmatprep.subr.bf16.mxu0 %v3347_v21  ;;  %3273 = vmatprep.subr.bf16.mxu1 %v3347_v21  ;;  %v3373_v53 = vld [vmem:[%s4603_s0 + $0x40] ss:$8 sps:$4 sm:$0xff]   ;;  %v3374_v54 = vld [vmem:[%s4603_s0 + $0x54] ss:$8 sps:$4 sm:$0xff]   ;;  %v3376_v55 = vld [vmem:[%s4603_s0 + $0x50] ss:$8 sps:$4 sm:$0xff]  }
  0x23   : > { %v3377_v56 = vld [vmem:[%s4603_s0 + $0x64] ss:$8 sps:$4 sm:$0xff]   ;;  %v3379_v57 = vld [vmem:[%s4603_s0 + $0x60] ss:$8 sps:$4 sm:$0xff]   ;;  %v3380_v58 = vld [vmem:[%s4603_s0 + $0x74] ss:$8 sps:$4 sm:$0xff]  }
  0x24   : > { %v3382_v59 = vld [vmem:[%s4603_s0 + $0x70] ss:$8 sps:$4 sm:$0xff]   ;;  %v3383_v60 = vld [vmem:[%s4603_s0 + $0x84] ss:$8 sps:$4 sm:$0xff]   ;;  %v3385_v61 = vld [vmem:[%s4603_s0 + $0x80] ss:$8 sps:$4 sm:$0xff]  }
  0x25   : > { %2948 = vmatpush3.bf16.msra.mxu0 %v3348_v22  ;;  %3281 = vmatpush3.bf16.msra.mxu1 %v3348_v22  ;;  %v3386_v62 = vld [vmem:[%s4603_s0 + $0x94] ss:$8 sps:$4 sm:$0xff]   ;;  %v3388_v0 = vld [vmem:[%s4603_s0 + $0x90] ss:$8 sps:$4 sm:$0xff]   ;;  %v3392_v1 = vld [vmem:[%s4603_s0 + $0xa4] ss:$8 sps:$4 sm:$0xff]  }
  0x26   : > { %2949 = vmatprep.subr.bf16.mxu0 %v3349_v23  ;;  %3274 = vmatprep.subr.bf16.mxu1 %v3349_v23  ;;  %v3411_v63 = vld [vmem:[%s3750_s20 + $0x58] sm:$0xff]   ;;  %v3412_v2 = vld [vmem:[%s3750_s20 + $0x50] sm:$0xff]   ;;  %v3413_v3 = vld [vmem:[%s3750_s20 + $0x48] sm:$0xff]  }
  0x27   : > { %v3394_v4 = vld [vmem:[%s4603_s0 + $0xa0] ss:$8 sps:$4 sm:$0xff]   ;;  %v3398_v5 = vld [vmem:[%s4603_s0 + $0xb4] ss:$8 sps:$4 sm:$0xff]   ;;  %v3400_v7 = vld [vmem:[%s4603_s0 + $0xb0] ss:$8 sps:$4 sm:$0xff]  }
  0x28   : > { %v3414_v6 = vld [vmem:[%s3750_s20 + $0x40] sm:$0xff]   ;;  %s3842_s20 = scalar_lea.vmem [#allocation2], %s2847_s26 }
  0x29   : > { %2950 = vmatpush3.bf16.msra.mxu0 %v3350_v24  ;;  %3282 = vmatpush3.bf16.msra.mxu1 %v3350_v24 }
  0x2a   : > { %2951 = vmatprep.subr.bf16.mxu0 %v3351_v25  ;;  %3275 = vmatprep.subr.bf16.mxu1 %v3351_v25 }
  0x2d   : > { %2952 = vmatpush3.bf16.msra.mxu0 %v3352_v26  ;;  %3283 = vmatpush3.bf16.msra.mxu1 %v3352_v26 }
  0x2e   : > { %2953 = vmatprep.subr.bf16.mxu0 %v3353_v27  ;;  %3276 = vmatprep.subr.bf16.mxu1 %v3353_v27 }
  0x31   : > { %2954 = vmatpush3.bf16.msra.mxu0 %v3354_v28  ;;  %3284 = vmatpush3.bf16.msra.mxu1 %v3354_v28 }
  0x32   : > { %2955 = vmatprep.subr.bf16.mxu0 %v3355_v29  ;;  %3277 = vmatprep.subr.bf16.mxu1 %v3355_v29 }
  0x35   : > { %2956 = vmatpush3.bf16.msra.mxu0 %v3356_v30  ;;  %3285 = vmatpush3.bf16.msra.mxu1 %v3356_v30 }
  0x36   : > { %2957 = vmatprep.subr.bf16.mxu0 %v3357_v31  ;;  %3278 = vmatprep.subr.bf16.mxu1 %v3357_v31 }
  0x39   : > { %2958 = vmatpush3.bf16.msra.mxu0 %v3358_v32  ;;  %3286 = vmatpush3.bf16.msra.mxu1 %v3358_v32 }
  0x3a   : > { %3127 = vmatprep.subr.bf16.mxu1 %v3407_v40 }
  0x3c   : > { %752 = vmatmul.mubr.bf16.vlgmr.msra.gmra.mxu0 %v3359_v34  ;;  %848 = vmatmul.mubr.bf16.vlgmr.msra.gmra.mxu1 %v3389_v36 }
  0x3d   : > { %759 = vmatprep.mubr.bf16.mxu0 %v3362_v35  ;;  %855 = vmatprep.mubr.bf16.mxu1 %v3395_v37 }
  0x3e   : > { %3128 = vmatpush3.bf16.msra.mxu1 %v3407_v40 }
  0x3f   : > { %3129 = vmatprep.subr.bf16.mxu1 %v3408_v42 }
  0x42   : > { %3130 = vmatpush3.bf16.msra.mxu1 %v3408_v42 }
  0x43   : > { %3131 = vmatprep.subr.bf16.mxu1 %v3409_v44 }
  0x44   : > { %760 = vmatmul.mubr.bf16.gmra.mxu0 %v3364_v38  ;;  %856 = vmatmul.mubr.bf16.gmra.mxu1 %v3397_v39 }
  0x45   : > { %767 = vmatprep.mubr.bf16.mxu0 %v3365_v41  ;;  %863 = vmatprep.mubr.bf16.mxu1 %v3401_v43 }
  0x46   : > { %3132 = vmatpush3.bf16.msra.mxu1 %v3409_v44 }
  0x47   : > { %3133 = vmatprep.subr.bf16.mxu1 %v3410_v45 }
  0x4a   : > { %3134 = vmatpush3.bf16.msra.mxu1 %v3410_v45 }
  0x4b   : > { %3135 = vmatprep.subr.bf16.mxu1 %v3411_v63 }
  0x4c   : > { %768 = vmatmul.mubr.bf16.gmra.mxu0 %v3367_v46  ;;  %864 = vmatmul.mubr.bf16.gmra.mxu1 %v3403_v47 }
  0x4d   : > { %775 = vmatprep.mubr.bf16.mxu0 %v3368_v48  ;;  %871 = vmatprep.mubr.bf16.mxu1 %v3404_v49 }
  0x4e   : > { %3136 = vmatpush3.bf16.msra.mxu1 %v3411_v63 }
  0x4f   : > { %3137 = vmatprep.subr.bf16.mxu1 %v3412_v2 }
  0x52   : > { %3138 = vmatpush3.bf16.msra.mxu1 %v3412_v2 }
  0x53   : > { %3139 = vmatprep.subr.bf16.mxu1 %v3413_v3 }
  0x54   : > { %776 = vmatmul.mubr.bf16.gmra.mxu0 %v3370_v50  ;;  %872 = vmatmul.mubr.bf16.gmra.mxu1 %v3406_v51 }
  0x55   : > { %783 = vmatprep.mubr.bf16.mxu0 %v3371_v52 }
  0x56   : > { %3140 = vmatpush3.bf16.msra.mxu1 %v3413_v3 }
  0x57   : > { %3141 = vmatprep.subr.bf16.mxu1 %v3414_v6 }
  0x5a   : > { %3142 = vmatpush3.bf16.msra.mxu1 %v3414_v6 }
  0x5c   : > { %784 = vmatmul.mubr.bf16.gmra.mxu0 %v3373_v53 }
  0x5d   : > { %791 = vmatprep.mubr.bf16.mxu0 %v3374_v54 }
  0x64   : > { %792 = vmatmul.mubr.bf16.gmra.mxu0 %v3376_v55 }
  0x65   : > { %799 = vmatprep.mubr.bf16.mxu0 %v3377_v56 }
  0x6c   : > { %800 = vmatmul.mubr.bf16.gmra.mxu0 %v3379_v57 }
  0x6d   : > { %807 = vmatprep.mubr.bf16.mxu0 %v3380_v58 }
  0x74   : > { %808 = vmatmul.mubr.bf16.gmra.mxu0 %v3382_v59 }
  0x75   : > { %815 = vmatprep.mubr.bf16.mxu0 %v3383_v60 }
  0x7c   : > { %816 = vmatmul.mubr.bf16.gmra.mxu0 %v3385_v61 }
  0x7d   : > { %823 = vmatprep.mubr.bf16.mxu0 %v3386_v62 }
  0x84   : > { %824 = vmatmul.mubr.bf16.gmra.mxu0 %v3388_v0 }
  0x85   : > { %831 = vmatprep.mubr.bf16.mxu0 %v3392_v1 }
  0x8c   : > { %832 = vmatmul.mubr.bf16.gmra.mxu0 %v3394_v4 }
  0x8d   : > { %839 = vmatprep.mubr.bf16.mxu0 %v3398_v5 }
  0x94   : > { %840 = vmatmul.mubr.bf16.gmra.mxu0 %v3400_v7 }
  0xfc   : > { %v2959_v8 = vpop.f32.mrf.mxu0  ;;  %v3031_v9 = vpop.f32.mrf.mxu1 }
  0xfe   : > { %v2960_v10 = vpop.f32.mrf.mxu0  ;;  %v3032_v11 = vpop.f32.mrf.mxu1 }
  0xff   : > { %v3033_v14 = vadd.f32 %v3032_v11, %v3031_v9  ;;  %v2961_v17 = vadd.f32 %v2960_v10, %v2959_v8 }
 0x100   : > { %v2962_v12 = vpop.f32.mrf.mxu0  ;;  %v3034_v13 = vpop.f32.mrf.mxu1 }
 0x102   : > { %v2963_v15 = vpop.f32.mrf.mxu0  ;;  %v3035_v16 = vpop.f32.mrf.mxu1 }
 0x103   : > { %v2964_v18 = vadd.f32 %v2963_v15, %v2962_v12  ;;  %v3036_v19 = vadd.f32 %v3035_v16, %v3034_v13 }
 0x104   : > { %v2965_v20 = vpop.f32.mrf.mxu0  ;;  %v3037_v21 = vpop.f32.mrf.mxu1 }
 0x105   : > { %v979_v22 = vpack.c.bf16 %v2964_v18, %v2961_v17  ;;  %v3840_v23 = vpack.c.bf16 %v3036_v19, %v3033_v14 }
 0x106   : > { %v2966_v24 = vpop.f32.mrf.mxu0  ;;  %v3038_v25 = vpop.f32.mrf.mxu1 }
 0x107   : > { %2852 = vst [vmem:[%s3842_s20] sm:$0xff] %v979_v22   ;;  %3143 = vmatprep.mubr.bf16.mxu1 %v979_v22  ;;  %2939 = vst [vmem:[%s3842_s20 + $0x60] sm:$0xff] %v3840_v23   ;;  %v3039_v28 = vadd.f32 %v3038_v25, %v3037_v21  ;;  %v2967_v31 = vadd.f32 %v2966_v24, %v2965_v20 }
 0x108   : > { %v2968_v26 = vpop.f32.mrf.mxu0  ;;  %v3040_v27 = vpop.f32.mrf.mxu1 }
 0x10a   : > { %v2969_v29 = vpop.f32.mrf.mxu0  ;;  %v3041_v30 = vpop.f32.mrf.mxu1 }
 0x10b   : > { %v2970_v32 = vadd.f32 %v2969_v29, %v2968_v26  ;;  %v3042_v33 = vadd.f32 %v3041_v30, %v3040_v27 }
 0x10c   : > { %v2971_v34 = vpop.f32.mrf.mxu0  ;;  %v3043_v35 = vpop.f32.mrf.mxu1 }
 0x10d   : > { %v980_v36 = vpack.c.bf16 %v2970_v32, %v2967_v31  ;;  %v3847_v37 = vpack.c.bf16 %v3042_v33, %v3039_v28 }
 0x10e   : > { %v2972_v38 = vpop.f32.mrf.mxu0  ;;  %v3044_v39 = vpop.f32.mrf.mxu1 }
 0x10f   : > { %2928 = vst [vmem:[%s3842_s20 + $0x8] sm:$0xff] %v980_v36   ;;  %3144 = vmatmul.mubr.bf16.vlgmr.msra.gmra.mxu1 %v980_v36  ;;  %2940 = vst [vmem:[%s3842_s20 + $0x68] sm:$0xff] %v3847_v37   ;;  %v3045_v42 = vadd.f32 %v3044_v39, %v3043_v35  ;;  %v2973_v45 = vadd.f32 %v2972_v38, %v2971_v34 }
 0x110   : > { %v2974_v40 = vpop.f32.mrf.mxu0  ;;  %v3046_v41 = vpop.f32.mrf.mxu1 }
 0x112   : > { %v2975_v43 = vpop.f32.mrf.mxu0  ;;  %v3047_v44 = vpop.f32.mrf.mxu1 }
 0x113   : > { %v2976_v46 = vadd.f32 %v2975_v43, %v2974_v40  ;;  %v3048_v47 = vadd.f32 %v3047_v44, %v3046_v41 }
 0x114   : > { %v2977_v48 = vpop.f32.mrf.mxu0  ;;  %v3049_v49 = vpop.f32.mrf.mxu1 }
 0x115   : > { %v981_v50 = vpack.c.bf16 %v2976_v46, %v2973_v45  ;;  %v3852_v51 = vpack.c.bf16 %v3048_v47, %v3045_v42 }
 0x116   : > { %v2978_v52 = vpop.f32.mrf.mxu0  ;;  %v3050_v53 = vpop.f32.mrf.mxu1 }
 0x117   : > { %2929 = vst [vmem:[%s3842_s20 + $0x10] sm:$0xff] %v981_v50   ;;  %3147 = vmatprep.mubr.bf16.mxu1 %v981_v50  ;;  %2941 = vst [vmem:[%s3842_s20 + $0x70] sm:$0xff] %v3852_v51   ;;  %v3051_v56 = vadd.f32 %v3050_v53, %v3049_v49  ;;  %v2979_v59 = vadd.f32 %v2978_v52, %v2977_v48 }
 0x118   : > { %v2980_v54 = vpop.f32.mrf.mxu0  ;;  %v3052_v55 = vpop.f32.mrf.mxu1 }
 0x11a   : > { %v2981_v57 = vpop.f32.mrf.mxu0  ;;  %v3053_v58 = vpop.f32.mrf.mxu1 }
 0x11b   : > { %v2982_v60 = vadd.f32 %v2981_v57, %v2980_v54  ;;  %v3054_v61 = vadd.f32 %v3053_v58, %v3052_v55 }
 0x11c   : > { %v2983_v62 = vpop.f32.mrf.mxu0 }
 0x11d   : > { %v982_v63 = vpack.c.bf16 %v2982_v60, %v2979_v59  ;;  %v3857_v0 = vpack.c.bf16 %v3054_v61, %v3051_v56 }
 0x11e   : > { %v2984_v1 = vpop.f32.mrf.mxu0 }
 0x11f   : > { %2930 = vst [vmem:[%s3842_s20 + $0x18] sm:$0xff] %v982_v63   ;;  %3148 = vmatmul.mubr.bf16.gmra.mxu1 %v982_v63  ;;  %2942 = vst [vmem:[%s3842_s20 + $0x78] sm:$0xff] %v3857_v0   ;;  %v2985_v4 = vadd.f32 %v2984_v1, %v2983_v62 }
 0x120   : > { %v2986_v2 = vpop.f32.mrf.mxu0 }
 0x122   : > { %v2987_v3 = vpop.f32.mrf.mxu0 }
 0x123   : > { %v2988_v5 = vadd.f32 %v2987_v3, %v2986_v2 }
 0x124   : > { %v2989_v6 = vpop.f32.mrf.mxu0 }
 0x125   : > { %v983_v7 = vpack.c.bf16 %v2988_v5, %v2985_v4 }
 0x126   : > { %v2990_v8 = vpop.f32.mrf.mxu0 }
 0x127   : > { %2931 = vst [vmem:[%s3842_s20 + $0x20] sm:$0xff] %v983_v7   ;;  %3151 = vmatprep.mubr.bf16.mxu1 %v983_v7  ;;  %v2991_v11 = vadd.f32 %v2990_v8, %v2989_v6 }
 0x128   : > { %v2992_v9 = vpop.f32.mrf.mxu0 }
 0x12a   : > { %v2993_v10 = vpop.f32.mrf.mxu0 }
 0x12b   : > { %v2994_v12 = vadd.f32 %v2993_v10, %v2992_v9 }
 0x12c   : > { %v2995_v13 = vpop.f32.mrf.mxu0 }
 0x12d   : > { %v984_v14 = vpack.c.bf16 %v2994_v12, %v2991_v11 }
 0x12e   : > { %v2996_v15 = vpop.f32.mrf.mxu0 }
 0x12f   : > { %2932 = vst [vmem:[%s3842_s20 + $0x28] sm:$0xff] %v984_v14   ;;  %3152 = vmatmul.mubr.bf16.gmra.mxu1 %v984_v14  ;;  %v2997_v18 = vadd.f32 %v2996_v15, %v2995_v13 }
 0x130   : > { %v2998_v16 = vpop.f32.mrf.mxu0 }
 0x132   : > { %v2999_v17 = vpop.f32.mrf.mxu0 }
 0x133   : > { %v3000_v19 = vadd.f32 %v2999_v17, %v2998_v16 }
 0x134   : > { %v3001_v20 = vpop.f32.mrf.mxu0 }
 0x135   : > { %v985_v21 = vpack.c.bf16 %v3000_v19, %v2997_v18 }
 0x136   : > { %v3002_v22 = vpop.f32.mrf.mxu0 }
 0x137   : > { %2933 = vst [vmem:[%s3842_s20 + $0x30] sm:$0xff] %v985_v21   ;;  %3155 = vmatprep.mubr.bf16.mxu1 %v985_v21  ;;  %v3003_v26 = vadd.f32 %v3002_v22, %v3001_v20 }
 0x138   : > { %v3004_v24 = vpop.f32.mrf.mxu0 }
 0x13a   : > { %v3005_v25 = vpop.f32.mrf.mxu0 }
 0x13b   : > { %v3006_v27 = vadd.f32 %v3005_v25, %v3004_v24 }
 0x13c   : > { %v3007_v28 = vpop.f32.mrf.mxu0 }
 0x13d   : > { %v986_v29 = vpack.c.bf16 %v3006_v27, %v3003_v26 }
 0x13e   : > { %v3008_v30 = vpop.f32.mrf.mxu0 }
 0x13f   : > { %2934 = vst [vmem:[%s3842_s20 + $0x38] sm:$0xff] %v986_v29   ;;  %3156 = vmatmul.mubr.bf16.gmra.mxu1 %v986_v29  ;;  %v3009_v33 = vadd.f32 %v3008_v30, %v3007_v28 }
 0x140   : > { %v3010_v31 = vpop.f32.mrf.mxu0 }
 0x142   : > { %v3011_v32 = vpop.f32.mrf.mxu0 }
 0x143   : > { %v3012_v34 = vadd.f32 %v3011_v32, %v3010_v31 }
 0x144   : > { %v3013_v35 = vpop.f32.mrf.mxu0 }
 0x145   : > { %v987_v36 = vpack.c.bf16 %v3012_v34, %v3009_v33 }
 0x146   : > { %v3014_v38 = vpop.f32.mrf.mxu0 }
 0x147   : > { %2935 = vst [vmem:[%s3842_s20 + $0x40] sm:$0xff] %v987_v36   ;;  %3159 = vmatprep.mubr.bf16.mxu1 %v987_v36  ;;  %v3015_v41 = vadd.f32 %v3014_v38, %v3013_v35 }
 0x148   : > { %v3016_v39 = vpop.f32.mrf.mxu0 }
 0x14a   : > { %v3017_v40 = vpop.f32.mrf.mxu0 }
 0x14b   : > { %v3018_v42 = vadd.f32 %v3017_v40, %v3016_v39 }
 0x14c   : > { %v3019_v43 = vpop.f32.mrf.mxu0 }
 0x14d   : > { %v988_v44 = vpack.c.bf16 %v3018_v42, %v3015_v41 }
 0x14e   : > { %v3020_v45 = vpop.f32.mrf.mxu0 }
 0x14f   : > { %2936 = vst [vmem:[%s3842_s20 + $0x48] sm:$0xff] %v988_v44   ;;  %3160 = vmatmul.mubr.bf16.gmra.mxu1 %v988_v44  ;;  %v3021_v48 = vadd.f32 %v3020_v45, %v3019_v43 }
 0x150   : > { %v3022_v46 = vpop.f32.mrf.mxu0 }
 0x152   : > { %v3023_v47 = vpop.f32.mrf.mxu0 }
 0x153   : > { %v3024_v49 = vadd.f32 %v3023_v47, %v3022_v46 }
 0x154   : > { %v3025_v50 = vpop.f32.mrf.mxu0 }
 0x155   : > { %v989_v52 = vpack.c.bf16 %v3024_v49, %v3021_v48 }
 0x156   : > { %v3026_v53 = vpop.f32.mrf.mxu0 }
 0x157   : > { %2937 = vst [vmem:[%s3842_s20 + $0x50] sm:$0xff] %v989_v52   ;;  %3163 = vmatprep.mubr.bf16.mxu1 %v989_v52  ;;  %v3027_v56 = vadd.f32 %v3026_v53, %v3025_v50 }
 0x158   : > { %v3028_v54 = vpop.f32.mrf.mxu0 }
 0x15a   : > { %v3029_v55 = vpop.f32.mrf.mxu0 }
 0x15b   : > { %v3030_v57 = vadd.f32 %v3029_v55, %v3028_v54 }
 0x15d   : > { %v990_v58 = vpack.c.bf16 %v3030_v57, %v3027_v56 }
 0x15f   : > { %2938 = vst [vmem:[%s3842_s20 + $0x58] sm:$0xff] %v990_v58   ;;  %3164 = vmatmul.mubr.bf16.gmra.mxu1 %v990_v58 }
 0x160   : > { %3167 = vmatprep.mubr.bf16.mxu1 %v3840_v23 }
 0x167   : > { %3168 = vmatmul.mubr.bf16.gmra.mxu1 %v3847_v37 }
 0x168   : > { %3171 = vmatprep.mubr.bf16.mxu1 %v3852_v51 }
 0x16f   : > { %3172 = vmatmul.mubr.bf16.gmra.mxu1 %v3857_v0 }
 0x1cf   : > { %v3874_v59 = vpop.f32.mrf.mxu1 }
 0x1d1   : > { %v3876_v60 = vpop.f32.mrf.mxu1 }
 0x1d3   : > { %v3878_v61 = vpop.f32.mrf.mxu1 }
 0x1d5   : > { %v3880_v62 = vpop.f32.mrf.mxu1 }
 0x1df   : > { %v3882_v63 = vpop.f32.mrf.mxu1 }
 0x1e1   : > { %v3884_v1 = vpop.f32.mrf.mxu1 }
 0x1e3   : > { %v3886_v2 = vpop.f32.mrf.mxu1 }
 0x1e5   : > { %v3888_v23 = vpop.f32.mrf.mxu1 }
 0x1ef   : > { %v3890_v37 = vpop.f32.mrf.mxu1 }
 0x1f1   : > { %v3892_v51 = vpop.f32.mrf.mxu1 }
 0x1f3   : > { %v3894_v0 = vpop.f32.mrf.mxu1 }
 0x1f5   : > { %v3896_v3 = vpop.f32.mrf.mxu1 }
 0x1ff   : > { %v3898_v4 = vpop.f32.mrf.mxu1 }
 0x201   : > { %v3900_v5 = vpop.f32.mrf.mxu1 }
 0x203   : > { %v3902_v6 = vpop.f32.mrf.mxu1 }
 0x205   : > { %v3904_v7 = vpop.f32.mrf.mxu1 }
 0x20f   : > { %v3906_v8 = vpop.f32.mrf.mxu1 }
 0x211   : > { %v3908_v9 = vpop.f32.mrf.mxu1 }
 0x213   : > { %v3910_v10 = vpop.f32.mrf.mxu1 }
 0x215   : > { %v3912_v11 = vpop.f32.mrf.mxu1 }
 0x21f   : > { %v3914_v12 = vpop.f32.mrf.mxu1 }
 0x221   : > { %v3916_v13 = vpop.f32.mrf.mxu1 }
 0x223   : > { %v3918_v14 = vpop.f32.mrf.mxu1 }
 0x225   : > { %v3920_v15 = vpop.f32.mrf.mxu1 }
 0x227   : > { %v3922_v16 = vpop.f32.mrf.mxu1 }
 0x229   : > { %v3924_v17 = vpop.f32.mrf.mxu1 }
 0x22b   : > { %v3926_v18 = vpop.f32.mrf.mxu1 }
 0x22d   : > { %v3928_v19 = vpop.f32.mrf.mxu1 }
 0x22f   : > { %v3930_v20 = vpop.f32.mrf.mxu1 }
 0x231   : > { %v3932_v21 = vpop.f32.mrf.mxu1  ;;  %1374 = sbr.rel (%p2773_p7) target bundleno = 825 (0x339), region = 60 }
 0x233   : > { %v3934_v22 = vpop.f32.mrf.mxu1 }
 0x235   : > { %v3936_v24 = vpop.f32.mrf.mxu1 }
 0x236   : > { %v3415_v25 = vld [vmem:[%s4605_s2 + $0x38] sm:$0xff]   ;;  %v3416_v26 = vld [vmem:[%s4605_s2 + $0x30] sm:$0xff]   ;;  %v3417_v27 = vld [vmem:[%s4605_s2 + $0x28] sm:$0xff]  }
 0x237   : > { %3175 = vmatprep.subr.bf16.mxu0 %v3415_v25  ;;  %3287 = vmatprep.subr.bf16.mxu1 %v3415_v25  ;;  %v3418_v28 = vld [vmem:[%s4605_s2 + $0x20] sm:$0xff]   ;;  %v3419_v31 = vld [vmem:[%s4605_s2 + $0x18] sm:$0xff]   ;;  %v3420_v32 = vld [vmem:[%s4605_s2 + $0x10] sm:$0xff]  }
 0x238   : > { %3176 = vmatpush3.bf16.msra.mxu0 %v3415_v25  ;;  %3295 = vmatpush3.bf16.msra.mxu1 %v3415_v25  ;;  %v3423_v29 = vld [vmem:[%s4604_s1] sm:$0xff]   ;;  %v3421_v33 = vld [vmem:[%s4605_s2 + $0x8] sm:$0xff]   ;;  %v3427_v38 = vld [vmem:[%s4604_s1 + $0x10] sm:$0xff]  }
 0x239   : > { %3177 = vmatprep.subr.bf16.mxu0 %v3416_v26  ;;  %3288 = vmatprep.subr.bf16.mxu1 %v3416_v26  ;;  %v3424_v30 = vld [vmem:[%s4604_s1 + $0x40] sm:$0xff]   ;;  %v3425_v35 = vld [vmem:[%s4604_s1 + $0x8] sm:$0xff]   ;;  %v3428_v39 = vld [vmem:[%s4604_s1 + $0x50] sm:$0xff]  }
 0x23a   : > { %3191 = vmatprep.mubr.bf16.mxu0 %v3423_v29  ;;  %3207 = vmatprep.mubr.bf16.mxu1 %v3424_v30  ;;  %v3422_v34 = vld [vmem:[%s4605_s2] sm:$0xff]   ;;  %v3426_v36 = vld [vmem:[%s4604_s1 + $0x48] sm:$0xff]   ;;  %v3429_v40 = vld [vmem:[%s4604_s1 + $0x18] sm:$0xff]  }
 0x23b   : > { %v3430_v41 = vld [vmem:[%s4604_s1 + $0x58] sm:$0xff]   ;;  %v3431_v42 = vld [vmem:[%s4604_s1 + $0x20] sm:$0xff]   ;;  %v3433_v44 = vld [vmem:[%s4604_s1 + $0x28] sm:$0xff]  }
 0x23c   : > { %3178 = vmatpush3.bf16.msra.mxu0 %v3416_v26  ;;  %3296 = vmatpush3.bf16.msra.mxu1 %v3416_v26  ;;  %v3432_v43 = vld [vmem:[%s4604_s1 + $0x60] sm:$0xff]   ;;  %v3434_v45 = vld [vmem:[%s4604_s1 + $0x68] sm:$0xff]   ;;  %v3435_v46 = vld [vmem:[%s4604_s1 + $0x30] sm:$0xff]  }
 0x23d   : > { %3179 = vmatprep.subr.bf16.mxu0 %v3417_v27  ;;  %3289 = vmatprep.subr.bf16.mxu1 %v3417_v27  ;;  %v3436_v47 = vld [vmem:[%s4604_s1 + $0x70] sm:$0xff]   ;;  %v3437_v48 = vld [vmem:[%s4604_s1 + $0x38] sm:$0xff]  }
 0x23e   : > { %v3438_v49 = vld [vmem:[%s4604_s1 + $0x78] sm:$0xff]  }
 0x240   : > { %3180 = vmatpush3.bf16.msra.mxu0 %v3417_v27  ;;  %3297 = vmatpush3.bf16.msra.mxu1 %v3417_v27 }
 0x241   : > { %3181 = vmatprep.subr.bf16.mxu0 %v3418_v28  ;;  %3290 = vmatprep.subr.bf16.mxu1 %v3418_v28 }
 0x244   : > { %3182 = vmatpush3.bf16.msra.mxu0 %v3418_v28  ;;  %3298 = vmatpush3.bf16.msra.mxu1 %v3418_v28 }
 0x245   : > { %3183 = vmatprep.subr.bf16.mxu0 %v3419_v31  ;;  %3291 = vmatprep.subr.bf16.mxu1 %v3419_v31 }
 0x248   : > { %3184 = vmatpush3.bf16.msra.mxu0 %v3419_v31  ;;  %3299 = vmatpush3.bf16.msra.mxu1 %v3419_v31 }
 0x249   : > { %3185 = vmatprep.subr.bf16.mxu0 %v3420_v32  ;;  %3292 = vmatprep.subr.bf16.mxu1 %v3420_v32 }
 0x24c   : > { %3186 = vmatpush3.bf16.msra.mxu0 %v3420_v32  ;;  %3300 = vmatpush3.bf16.msra.mxu1 %v3420_v32 }
 0x24d   : > { %3187 = vmatprep.subr.bf16.mxu0 %v3421_v33  ;;  %3293 = vmatprep.subr.bf16.mxu1 %v3421_v33 }
 0x250   : > { %3188 = vmatpush3.bf16.msra.mxu0 %v3421_v33  ;;  %3301 = vmatpush3.bf16.msra.mxu1 %v3421_v33 }
 0x251   : > { %3189 = vmatprep.subr.bf16.mxu0 %v3422_v34  ;;  %3294 = vmatprep.subr.bf16.mxu1 %v3422_v34 }
 0x254   : > { %3190 = vmatpush3.bf16.msra.mxu0 %v3422_v34  ;;  %3302 = vmatpush3.bf16.msra.mxu1 %v3422_v34 }
 0x257   : > { %3192 = vmatmul.mubr.bf16.vlgmr.msra.gmra.mxu0 %v3425_v35  ;;  %3208 = vmatmul.mubr.bf16.vlgmr.msra.gmra.mxu1 %v3426_v36 }
 0x258   : > { %3195 = vmatprep.mubr.bf16.mxu0 %v3427_v38  ;;  %3211 = vmatprep.mubr.bf16.mxu1 %v3428_v39 }
 0x25f   : > { %3196 = vmatmul.mubr.bf16.gmra.mxu0 %v3429_v40  ;;  %3212 = vmatmul.mubr.bf16.gmra.mxu1 %v3430_v41 }
 0x260   : > { %3199 = vmatprep.mubr.bf16.mxu0 %v3431_v42  ;;  %3215 = vmatprep.mubr.bf16.mxu1 %v3432_v43 }
 0x267   : > { %3200 = vmatmul.mubr.bf16.gmra.mxu0 %v3433_v44  ;;  %3216 = vmatmul.mubr.bf16.gmra.mxu1 %v3434_v45 }
 0x268   : > { %3203 = vmatprep.mubr.bf16.mxu0 %v3435_v46  ;;  %3219 = vmatprep.mubr.bf16.mxu1 %v3436_v47 }
 0x26f   : > { %3204 = vmatmul.mubr.bf16.gmra.mxu0 %v3437_v48  ;;  %3220 = vmatmul.mubr.bf16.gmra.mxu1 %v3438_v49 }
 0x317   : > { %v3193_v50 = vpop.f32.mrf.mxu0  ;;  %v3209_v52 = vpop.f32.mrf.mxu1 }
 0x318   : > { %v1732_v53 = vadd.f32 %v3193_v50, %v3874_v59  ;;  %v1748_v54 = vadd.f32 %v3209_v52, %v3906_v8 }
 0x319   : > { %v1603_v55 = vpop.f32.mrf.mxu0  ;;  %v1667_v56 = vpop.f32.mrf.mxu1 }
 0x31a   : > { %1765 = vst [vmem:[#allocation4 + $0xd8] sm:$0xff] %v1732_v53  ;;  %1781 = vst [vmem:[#allocation4 + $0x40] sm:$0xff] %v1748_v54  ;;  %v1730_v57 = vadd.f32 %v1603_v55, %v3876_v60  ;;  %v1746_v58 = vadd.f32 %v1667_v56, %v3908_v9 }
 0x31b   : > { %v3194_v25 = vpop.f32.mrf.mxu0  ;;  %v3210_v26 = vpop.f32.mrf.mxu1 }
 0x31c   : > { %1763 = vst [vmem:[#allocation4 + $0xb0] sm:$0xff] %v1730_v57  ;;  %1779 = vst [vmem:[#allocation4 + $0x38] sm:$0xff] %v1746_v58  ;;  %v1733_v27 = vadd.f32 %v3194_v25, %v3878_v61  ;;  %v1749_v28 = vadd.f32 %v3210_v26, %v3910_v10 }
 0x31d   : > { %v1606_v29 = vpop.f32.mrf.mxu0  ;;  %v1670_v30 = vpop.f32.mrf.mxu1 }
 0x31e   : > { %1766 = vst [vmem:[#allocation4 + $0x18] sm:$0xff] %v1733_v27  ;;  %1782 = vst [vmem:[#allocation4 + $0xc8] sm:$0xff] %v1749_v28  ;;  %v1731_v31 = vadd.f32 %v1606_v29, %v3880_v62  ;;  %v1747_v32 = vadd.f32 %v1670_v30, %v3912_v11 }
 0x31f   : > { %v3197_v33 = vpop.f32.mrf.mxu0  ;;  %v3213_v34 = vpop.f32.mrf.mxu1 }
 0x320   : > { %1764 = vst [vmem:[#allocation4] sm:$0xff] %v1731_v31  ;;  %1780 = vst [vmem:[#allocation4 + $0x58] sm:$0xff] %v1747_v32  ;;  %v1736_v35 = vadd.f32 %v3197_v33, %v3882_v63  ;;  %v1752_v36 = vadd.f32 %v3213_v34, %v3914_v12 }
 0x321   : > { %v1619_v38 = vpop.f32.mrf.mxu0  ;;  %v1683_v39 = vpop.f32.mrf.mxu1 }
 0x322   : > { %1769 = vst [vmem:[#allocation4 + $0x30] sm:$0xff] %v1736_v35  ;;  %1785 = vst [vmem:[#allocation4 + $0x70] sm:$0xff] %v1752_v36  ;;  %v1734_v40 = vadd.f32 %v1619_v38, %v3884_v1  ;;  %v1750_v41 = vadd.f32 %v1683_v39, %v3916_v13 }
 0x323   : > { %v3198_v42 = vpop.f32.mrf.mxu0  ;;  %v3214_v43 = vpop.f32.mrf.mxu1 }
 0x324   : > { %1767 = vst [vmem:[#allocation4 + $0x50] sm:$0xff] %v1734_v40  ;;  %1783 = vst [vmem:[#allocation4 + $0xe0] sm:$0xff] %v1750_v41  ;;  %v1737_v44 = vadd.f32 %v3198_v42, %v3886_v2  ;;  %v1753_v45 = vadd.f32 %v3214_v43, %v3918_v14 }
 0x325   : > { %v1622_v46 = vpop.f32.mrf.mxu0  ;;  %v1686_v47 = vpop.f32.mrf.mxu1 }
 0x326   : > { %1770 = vst [vmem:[#allocation4 + $0x48] sm:$0xff] %v1737_v44  ;;  %1786 = vst [vmem:[#allocation4 + $0xc0] sm:$0xff] %v1753_v45  ;;  %v1735_v48 = vadd.f32 %v1622_v46, %v3888_v23  ;;  %v1751_v49 = vadd.f32 %v1686_v47, %v3920_v15 }
 0x327   : > { %v3201_v50 = vpop.f32.mrf.mxu0  ;;  %v3217_v52 = vpop.f32.mrf.mxu1 }
 0x328   : > { %1768 = vst [vmem:[#allocation4 + $0x68] sm:$0xff] %v1735_v48  ;;  %1784 = vst [vmem:[#allocation4 + $0x90] sm:$0xff] %v1751_v49  ;;  %v1740_v53 = vadd.f32 %v3201_v50, %v3890_v37  ;;  %v1756_v54 = vadd.f32 %v3217_v52, %v3922_v16 }
 0x329   : > { %v1635_v55 = vpop.f32.mrf.mxu0  ;;  %v1699_v56 = vpop.f32.mrf.mxu1 }
 0x32a   : > { %1773 = vst [vmem:[#allocation4 + $0xe8] sm:$0xff] %v1740_v53  ;;  %1789 = vst [vmem:[#allocation4 + $0x10] sm:$0xff] %v1756_v54  ;;  %v1738_v57 = vadd.f32 %v1635_v55, %v3892_v51  ;;  %v1754_v58 = vadd.f32 %v1699_v56, %v3924_v17 }
 0x32b   : > { %v3202_v25 = vpop.f32.mrf.mxu0  ;;  %v3218_v26 = vpop.f32.mrf.mxu1 }
 0x32c   : > { %1771 = vst [vmem:[#allocation4 + $0x80] sm:$0xff] %v1738_v57  ;;  %1787 = vst [vmem:[#allocation4 + $0xa8] sm:$0xff] %v1754_v58  ;;  %v1741_v27 = vadd.f32 %v3202_v25, %v3894_v0  ;;  %v1757_v28 = vadd.f32 %v3218_v26, %v3926_v18 }
 0x32d   : > { %v1638_v29 = vpop.f32.mrf.mxu0  ;;  %v1702_v30 = vpop.f32.mrf.mxu1 }
 0x32e   : > { %1774 = vst [vmem:[#allocation4 + $0xb8] sm:$0xff] %v1741_v27  ;;  %1790 = vst [vmem:[#allocation4 + $0x28] sm:$0xff] %v1757_v28  ;;  %v1739_v31 = vadd.f32 %v1638_v29, %v3896_v3  ;;  %v1755_v32 = vadd.f32 %v1702_v30, %v3928_v19 }
 0x32f   : > { %v3205_v33 = vpop.f32.mrf.mxu0  ;;  %v3221_v34 = vpop.f32.mrf.mxu1 }
 0x330   : > { %1772 = vst [vmem:[#allocation4 + $0x88] sm:$0xff] %v1739_v31  ;;  %1788 = vst [vmem:[#allocation4 + $0xd0] sm:$0xff] %v1755_v32  ;;  %v1744_v35 = vadd.f32 %v3205_v33, %v3898_v4  ;;  %v1760_v36 = vadd.f32 %v3221_v34, %v3930_v20 }
 0x331   : > { %v1651_v38 = vpop.f32.mrf.mxu0  ;;  %v1715_v39 = vpop.f32.mrf.mxu1 }
 0x332   : > { %1777 = vst [vmem:[#allocation4 + $0x8] sm:$0xff] %v1744_v35  ;;  %1793 = vst [vmem:[#allocation4 + $0x20] sm:$0xff] %v1760_v36  ;;  %v1742_v40 = vadd.f32 %v1651_v38, %v3900_v5  ;;  %v1758_v41 = vadd.f32 %v1715_v39, %v3932_v21 }
 0x333   : > { %v3206_v42 = vpop.f32.mrf.mxu0  ;;  %v3222_v43 = vpop.f32.mrf.mxu1 }
 0x334   : > { %1775 = vst [vmem:[#allocation4 + $0x60] sm:$0xff] %v1742_v40  ;;  %1791 = vst [vmem:[#allocation4 + $0xa0] sm:$0xff] %v1758_v41  ;;  %v1745_v44 = vadd.f32 %v3206_v42, %v3902_v6  ;;  %v1761_v45 = vadd.f32 %v3222_v43, %v3934_v22 }
 0x335   : > { %v1654_v46 = vpop.f32.mrf.mxu0  ;;  %v1718_v47 = vpop.f32.mrf.mxu1 }
 0x336   : > { %1778 = vst [vmem:[#allocation4 + $0x78] sm:$0xff] %v1745_v44  ;;  %1794 = vst [vmem:[#allocation4 + $0x98] sm:$0xff] %v1761_v45  ;;  %v1743_v48 = vadd.f32 %v1654_v46, %v3904_v7  ;;  %v1759_v49 = vadd.f32 %v1718_v47, %v3936_v24 }
 0x338   : > { %1776 = vst [vmem:[#allocation4 + $0xf0] sm:$0xff] %v1743_v48  ;;  %1792 = vst [vmem:[#allocation4 + $0xf8] sm:$0xff] %v1759_v49 }
 0x339 PF: > { %p2798_p8 = scmp.le.s32.totalorder %s3589_s21, 0 }
 0x33b   : > { %1798 = sbr.rel (%p2798_p8) target bundleno = 851 (0x353), region = 64 }
 0x340   : > { %v1800_v50 = vld [vmem:[#allocation4 + $0xb0] sm:$0xff]  ;;  %v1801_v52 = vld [vmem:[#allocation4] sm:$0xff]  ;;  %v1802_v53 = vld [vmem:[#allocation4 + $0xd8] sm:$0xff] }
 0x341   : > { %v1832_v54 = vadd.f32 %v1800_v50, %v3876_v60  ;;  %v1833_v55 = vadd.f32 %v1801_v52, %v3880_v62  ;;  %v1834_v56 = vadd.f32 %v3874_v59, %v1802_v53  ;;  %v1803_v57 = vld [vmem:[#allocation4 + $0x18] sm:$0xff]  ;;  %v1804_v58 = vld [vmem:[#allocation4 + $0x50] sm:$0xff]  ;;  %v1805_v25 = vld [vmem:[#allocation4 + $0x68] sm:$0xff] }
 0x342   : > { %v1835_v26 = vadd.f32 %v3878_v61, %v1803_v57  ;;  %v1836_v27 = vadd.f32 %v1804_v58, %v3884_v1  ;;  %v1837_v28 = vadd.f32 %v1805_v25, %v3888_v23  ;;  %v1806_v29 = vld [vmem:[#allocation4 + $0x30] sm:$0xff]  ;;  %v1807_v30 = vld [vmem:[#allocation4 + $0x48] sm:$0xff]  ;;  %v1808_v31 = vld [vmem:[#allocation4 + $0x80] sm:$0xff] }
 0x343   : > { %1864 = vst [vmem:[#allocation4 + $0xb0] sm:$0xff] %v1832_v54  ;;  %1865 = vst [vmem:[#allocation4] sm:$0xff] %v1833_v55  ;;  %v1838_v60 = vadd.f32 %v3882_v63, %v1806_v29  ;;  %v1839_v62 = vadd.f32 %v3886_v2, %v1807_v30  ;;  %v1840_v59 = vadd.f32 %v1808_v31, %v3892_v51  ;;  %v1809_v32 = vld [vmem:[#allocation4 + $0x88] sm:$0xff]  ;;  %v1811_v34 = vld [vmem:[#allocation4 + $0xb8] sm:$0xff] }
 0x344   : > { %1866 = vst [vmem:[#allocation4 + $0xd8] sm:$0xff] %v1834_v56  ;;  %v1810_v33 = vld [vmem:[#allocation4 + $0xe8] sm:$0xff]  ;;  %1867 = vst [vmem:[#allocation4 + $0x18] sm:$0xff] %v1835_v26  ;;  %v1841_v61 = vadd.f32 %v1809_v32, %v3896_v3  ;;  %v1843_v23 = vadd.f32 %v3894_v0, %v1811_v34  ;;  %v1812_v35 = vld [vmem:[#allocation4 + $0x60] sm:$0xff] }
 0x345   : > { %1868 = vst [vmem:[#allocation4 + $0x50] sm:$0xff] %v1836_v27  ;;  %1869 = vst [vmem:[#allocation4 + $0x68] sm:$0xff] %v1837_v28  ;;  %v1842_v1 = vadd.f32 %v3890_v37, %v1810_v33  ;;  %v1813_v36 = vld [vmem:[#allocation4 + $0xf0] sm:$0xff]  ;;  %v1814_v38 = vld [vmem:[#allocation4 + $0x8] sm:$0xff]  ;;  %v1844_v63 = vadd.f32 %v1812_v35, %v3900_v5 }
 0x346   : > { %1870 = vst [vmem:[#allocation4 + $0x30] sm:$0xff] %v1838_v60  ;;  %1871 = vst [vmem:[#allocation4 + $0x48] sm:$0xff] %v1839_v62  ;;  %v1845_v2 = vadd.f32 %v1813_v36, %v3904_v7  ;;  %v1846_v51 = vadd.f32 %v3898_v4, %v1814_v38  ;;  %v1815_v39 = vld [vmem:[#allocation4 + $0x78] sm:$0xff]  ;;  %v1818_v42 = vld [vmem:[#allocation4 + $0x40] sm:$0xff] }
 0x347   : > { %1872 = vst [vmem:[#allocation4 + $0x80] sm:$0xff] %v1840_v59  ;;  %v1816_v40 = vld [vmem:[#allocation4 + $0x38] sm:$0xff]  ;;  %1873 = vst [vmem:[#allocation4 + $0x88] sm:$0xff] %v1841_v61  ;;  %v1847_v37 = vadd.f32 %v3902_v6, %v1815_v39  ;;  %v1819_v43 = vld [vmem:[#allocation4 + $0xc8] sm:$0xff]  ;;  %v1850_v4 = vadd.f32 %v3906_v8, %v1818_v42 }
 0x348   : > { %v1817_v41 = vld [vmem:[#allocation4 + $0x58] sm:$0xff]  ;;  %1874 = vst [vmem:[#allocation4 + $0xe8] sm:$0xff] %v1842_v1  ;;  %1875 = vst [vmem:[#allocation4 + $0xb8] sm:$0xff] %v1843_v23  ;;  %v1848_v0 = vadd.f32 %v1816_v40, %v3908_v9  ;;  %v1820_v44 = vld [vmem:[#allocation4 + $0xe0] sm:$0xff]  ;;  %v1851_v5 = vadd.f32 %v3910_v10, %v1819_v43 }
 0x349   : > { %v1849_v3 = vadd.f32 %v1817_v41, %v3912_v11  ;;  %1876 = vst [vmem:[#allocation4 + $0x60] sm:$0xff] %v1844_v63  ;;  %1877 = vst [vmem:[#allocation4 + $0xf0] sm:$0xff] %v1845_v2  ;;  %v1852_v7 = vadd.f32 %v1820_v44, %v3916_v13  ;;  %v1821_v45 = vld [vmem:[#allocation4 + $0x90] sm:$0xff]  ;;  %v1823_v47 = vld [vmem:[#allocation4 + $0xc0] sm:$0xff] }
 0x34a   : > { %1878 = vst [vmem:[#allocation4 + $0x8] sm:$0xff] %v1846_v51  ;;  %v1822_v46 = vld [vmem:[#allocation4 + $0x70] sm:$0xff]  ;;  %1879 = vst [vmem:[#allocation4 + $0x78] sm:$0xff] %v1847_v37  ;;  %v1853_v6 = vadd.f32 %v1821_v45, %v3920_v15  ;;  %v1855_v11 = vadd.f32 %v3918_v14, %v1823_v47  ;;  %v1824_v48 = vld [vmem:[#allocation4 + $0xa8] sm:$0xff] }
 0x34b   : > { %1880 = vst [vmem:[#allocation4 + $0x38] sm:$0xff] %v1848_v0  ;;  %1881 = vst [vmem:[#allocation4 + $0x58] sm:$0xff] %v1849_v3  ;;  %v1854_v9 = vadd.f32 %v3914_v12, %v1822_v46  ;;  %v1825_v49 = vld [vmem:[#allocation4 + $0xd0] sm:$0xff]  ;;  %v1856_v8 = vadd.f32 %v1824_v48, %v3924_v17  ;;  %v1827_v52 = vld [vmem:[#allocation4 + $0x28] sm:$0xff] }
 0x34c   : > { %v1826_v50 = vld [vmem:[#allocation4 + $0x10] sm:$0xff]  ;;  %1882 = vst [vmem:[#allocation4 + $0x40] sm:$0xff] %v1850_v4  ;;  %1883 = vst [vmem:[#allocation4 + $0xc8] sm:$0xff] %v1851_v5  ;;  %v1857_v10 = vadd.f32 %v1825_v49, %v3928_v19  ;;  %v1828_v53 = vld [vmem:[#allocation4 + $0xa0] sm:$0xff]  ;;  %v1859_v12 = vadd.f32 %v3926_v18, %v1827_v52 }
 0x34d   : > { %1884 = vst [vmem:[#allocation4 + $0xe0] sm:$0xff] %v1852_v7  ;;  %v1858_v13 = vadd.f32 %v3922_v16, %v1826_v50  ;;  %v1829_v54 = vld [vmem:[#allocation4 + $0xf8] sm:$0xff]  ;;  %1885 = vst [vmem:[#allocation4 + $0x90] sm:$0xff] %v1853_v6  ;;  %v1860_v14 = vadd.f32 %v1828_v53, %v3932_v21  ;;  %v1830_v55 = vld [vmem:[#allocation4 + $0x20] sm:$0xff] }
 0x34e   : > { %1886 = vst [vmem:[#allocation4 + $0x70] sm:$0xff] %v1854_v9  ;;  %1887 = vst [vmem:[#allocation4 + $0xc0] sm:$0xff] %v1855_v11  ;;  %v1861_v15 = vadd.f32 %v1829_v54, %v3936_v24  ;;  %v1831_v56 = vld [vmem:[#allocation4 + $0x98] sm:$0xff]  ;;  %v1862_v17 = vadd.f32 %v3930_v20, %v1830_v55 }
 0x34f   : > { %1888 = vst [vmem:[#allocation4 + $0xa8] sm:$0xff] %v1856_v8  ;;  %1889 = vst [vmem:[#allocation4 + $0xd0] sm:$0xff] %v1857_v10  ;;  %v1863_v16 = vadd.f32 %v3934_v22, %v1831_v56 }
 0x350   : > { %1890 = vst [vmem:[#allocation4 + $0x10] sm:$0xff] %v1858_v13  ;;  %1891 = vst [vmem:[#allocation4 + $0x28] sm:$0xff] %v1859_v12 }
 0x351   : > { %1892 = vst [vmem:[#allocation4 + $0xa0] sm:$0xff] %v1860_v14  ;;  %1893 = vst [vmem:[#allocation4 + $0xf8] sm:$0xff] %v1861_v15 }
 0x352   : > { %1894 = vst [vmem:[#allocation4 + $0x20] sm:$0xff] %v1862_v17  ;;  %1895 = vst [vmem:[#allocation4 + $0x98] sm:$0xff] %v1863_v16 }
 0x353 PF: > { %p2799_p9 = scmp.ne.s32.totalorder %s3589_s21, 1 }
 0x355   : > { %1899 = sbr.rel (%p2799_p9) target bundleno = 1462 (0x5b6), region = 68 }
 0x35a   : > { %v3439_v18 = vld [vmem:[%s4607_s4 + $0x38] sm:$0xff]   ;;  %v3440_v19 = vld [vmem:[%s4607_s4 + $0x30] sm:$0xff]   ;;  %v3441_v20 = vld [vmem:[%s4607_s4 + $0x28] sm:$0xff]  }
 0x35b   : > { %3223 = vmatprep.subr.bf16.mxu0 %v3439_v18  ;;  %3303 = vmatprep.subr.bf16.mxu1 %v3439_v18  ;;  %v3442_v21 = vld [vmem:[%s4607_s4 + $0x20] sm:$0xff]   ;;  %v1901_v22 = vld [vmem:[#allocation4 + $0xb0] sm:$0xff]  ;;  %v1917_v26 = vld [vmem:[#allocation4 + $0x38] sm:$0xff] }
 0x35c   : > { %3224 = vmatpush3.bf16.msra.mxu0 %v3439_v18  ;;  %3311 = vmatpush3.bf16.msra.mxu1 %v3439_v18  ;;  %v1902_v24 = vld [vmem:[#allocation4] sm:$0xff]  ;;  %v1918_v27 = vld [vmem:[#allocation4 + $0x58] sm:$0xff]  ;;  %v3444_v34 = vld [vmem:[%s4607_s4 + $0x10] sm:$0xff]  }
 0x35d   : > { %3225 = vmatprep.subr.bf16.mxu0 %v3440_v19  ;;  %3304 = vmatprep.subr.bf16.mxu1 %v3440_v19  ;;  %v4092_v57 = vld [vmem:[%s4606_s3] ss:$0 sm:$0xff]  ;;  %v3443_v60 = vld [vmem:[%s4607_s4 + $0x18] sm:$0xff]   ;;  %v1920_v35 = vld [vmem:[#allocation4 + $0xc8] sm:$0xff] }
 0x35e   : > { %v1940_v58 = vadd.f32 %v4092_v57, %v1901_v22  ;;  %v1941_v25 = vadd.f32 %v4092_v57, %v1902_v24  ;;  %v1956_v28 = vadd.f32 %v4092_v57, %v1917_v26  ;;  %v1957_v29 = vadd.f32 %v4092_v57, %v1918_v27  ;;  %v1903_v61 = vld [vmem:[#allocation4 + $0xd8] sm:$0xff]  ;;  %v1919_v23 = vld [vmem:[#allocation4 + $0x40] sm:$0xff]  ;;  %v1905_v36 = vld [vmem:[#allocation4 + $0x50] sm:$0xff] }
 0x35f   : > { %v1904_v1 = vld [vmem:[#allocation4 + $0x18] sm:$0xff]  ;;  %v1906_v38 = vld [vmem:[#allocation4 + $0x68] sm:$0xff]  ;;  %v1921_v2 = vld [vmem:[#allocation4 + $0xe0] sm:$0xff]  ;;  %v1942_v39 = vadd.f32 %v4092_v57, %v1903_v61  ;;  %v1958_v41 = vadd.f32 %v4092_v57, %v1919_v23  ;;  %v1959_v37 = vadd.f32 %v4092_v57, %v1920_v35  ;;  %v1944_v0 = vadd.f32 %v4092_v57, %v1905_v36 }
 0x360   : > { %3226 = vmatpush3.bf16.msra.mxu0 %v3440_v19  ;;  %3312 = vmatpush3.bf16.msra.mxu1 %v3440_v19  ;;  %v1972_v30 = vmax.f32 %v1940_v58, 0.0  ;;  %v1973_v31 = vmax.f32 %v1941_v25, 0.0  ;;  %v1988_v62 = vmax.f32 %v1956_v28, 0.0  ;;  %v1989_v59 = vmax.f32 %v1957_v29, 0.0  ;;  %v3445_v63 = vld [vmem:[%s4607_s4 + $0x8] sm:$0xff]   ;;  %v1922_v51 = vld [vmem:[#allocation4 + $0x90] sm:$0xff] }
 0x361   : > { %3227 = vmatprep.subr.bf16.mxu0 %v3441_v20  ;;  %3305 = vmatprep.subr.bf16.mxu1 %v3441_v20  ;;  %v1943_v40 = vadd.f32 %v4092_v57, %v1904_v1  ;;  %v1945_v3 = vadd.f32 %v4092_v57, %v1906_v38  ;;  %v1960_v42 = vadd.f32 %v4092_v57, %v1921_v2  ;;  %v3446_v44 = vld [vmem:[%s4607_s4] sm:$0xff]   ;;  %v1974_v4 = vmax.f32 %v1942_v39, 0.0  ;;  %v1907_v7 = vld [vmem:[#allocation4 + $0x30] sm:$0xff]  ;;  %v1908_v45 = vld [vmem:[#allocation4 + $0x48] sm:$0xff] }
 0x362   : > { %v2004_v32 = vpack.c.bf16 %v1973_v31, %v1972_v30  ;;  %v2012_v33 = vpack.c.bf16 %v1989_v59, %v1988_v62  ;;  %v1961_v43 = vadd.f32 %v4092_v57, %v1922_v51  ;;  %v1990_v46 = vmax.f32 %v1958_v41, 0.0  ;;  %v1923_v11 = vld [vmem:[#allocation4 + $0x70] sm:$0xff]  ;;  %v1924_v48 = vld [vmem:[#allocation4 + $0xc0] sm:$0xff]  ;;  %v1910_v10 = vld [vmem:[#allocation4 + $0x88] sm:$0xff] }
 0x363   : > { %v1975_v5 = vmax.f32 %v1943_v40, 0.0  ;;  %v1991_v47 = vmax.f32 %v1959_v37, 0.0  ;;  %v1976_v6 = vmax.f32 %v1944_v0, 0.0  ;;  %v1977_v9 = vmax.f32 %v1945_v3, 0.0  ;;  %v1909_v8 = vld [vmem:[#allocation4 + $0x80] sm:$0xff]  ;;  %v1925_v52 = vld [vmem:[#allocation4 + $0xa8] sm:$0xff] }
 0x364   : > { %3228 = vmatpush3.bf16.msra.mxu0 %v3441_v20  ;;  %3313 = vmatpush3.bf16.msra.mxu1 %v3441_v20  ;;  %v1992_v49 = vmax.f32 %v1960_v42, 0.0  ;;  %v1993_v50 = vmax.f32 %v1961_v43, 0.0  ;;  %v1946_v13 = vadd.f32 %v4092_v57, %v1907_v7  ;;  %v1926_v53 = vld [vmem:[#allocation4 + $0xd0] sm:$0xff]  ;;  %v1947_v12 = vadd.f32 %v4092_v57, %v1908_v45  ;;  %v1911_v27 = vld [vmem:[#allocation4 + $0xe8] sm:$0xff]  ;;  %v1912_v28 = vld [vmem:[#allocation4 + $0xb8] sm:$0xff] }
 0x365   : > { %3229 = vmatprep.subr.bf16.mxu0 %v3442_v21  ;;  %3306 = vmatprep.subr.bf16.mxu1 %v3442_v21  ;;  %v2005_v54 = vpack.c.bf16 %v1975_v5, %v1974_v4  ;;  %v1962_v14 = vadd.f32 %v4092_v57, %v1923_v11  ;;  %v1963_v15 = vadd.f32 %v4092_v57, %v1924_v48  ;;  %v1927_v31 = vld [vmem:[#allocation4 + $0x10] sm:$0xff]  ;;  %v1913_v62 = vld [vmem:[#allocation4 + $0x60] sm:$0xff]  ;;  %v1915_v42 = vld [vmem:[#allocation4 + $0x8] sm:$0xff] }
 0x366   : > { %3239 = vmatprep.mubr.bf16.mxu0 %v2004_v32  ;;  %3255 = vmatprep.mubr.bf16.mxu1 %v2012_v33  ;;  %v2013_v55 = vpack.c.bf16 %v1991_v47, %v1990_v46  ;;  %v2006_v56 = vpack.c.bf16 %v1977_v9, %v1976_v6  ;;  %v1948_v17 = vadd.f32 %v4092_v57, %v1909_v8  ;;  %v1979_v22 = vmax.f32 %v1947_v12, 0.0  ;;  %v1914_v59 = vld [vmem:[#allocation4 + $0xf0] sm:$0xff]  ;;  %v1929_v32 = vld [vmem:[#allocation4 + $0xa0] sm:$0xff]  ;;  %v1930_v33 = vld [vmem:[#allocation4 + $0xf8] sm:$0xff] }
 0x367   : > { %v1949_v16 = vadd.f32 %v4092_v57, %v1910_v10  ;;  %v2014_v18 = vpack.c.bf16 %v1993_v50, %v1992_v49  ;;  %v1964_v19 = vadd.f32 %v4092_v57, %v1925_v52  ;;  %v1965_v20 = vadd.f32 %v4092_v57, %v1926_v53  ;;  %v1916_v43 = vld [vmem:[#allocation4 + $0x78] sm:$0xff]  ;;  %v1931_v45 = vld [vmem:[#allocation4 + $0x20] sm:$0xff] }
 0x368   : > { %3230 = vmatpush3.bf16.msra.mxu0 %v3442_v21  ;;  %3314 = vmatpush3.bf16.msra.mxu1 %v3442_v21  ;;  %v1978_v21 = vmax.f32 %v1946_v13, 0.0  ;;  %v1994_v24 = vmax.f32 %v1962_v14, 0.0  ;;  %v1995_v58 = vmax.f32 %v1963_v15, 0.0  ;;  %v1980_v25 = vmax.f32 %v1948_v17, 0.0  ;;  %v1932_v46 = vld [vmem:[#allocation4 + $0x98] sm:$0xff] }
 0x369   : > { %3231 = vmatprep.subr.bf16.mxu0 %v3443_v60  ;;  %3307 = vmatprep.subr.bf16.mxu1 %v3443_v60  ;;  %v1981_v26 = vmax.f32 %v1949_v16, 0.0  ;;  %v1996_v29 = vmax.f32 %v1964_v19, 0.0  ;;  %v1997_v30 = vmax.f32 %v1965_v20, 0.0  ;;  %v1950_v1 = vadd.f32 %v4092_v57, %v1911_v27 }
 0x36a   : > { %v2015_v61 = vpack.c.bf16 %v1995_v58, %v1994_v24  ;;  %v1951_v23 = vadd.f32 %v4092_v57, %v1912_v28  ;;  %v1966_v36 = vadd.f32 %v4092_v57, %v1927_v31  ;;  %v1953_v51 = vadd.f32 %v4092_v57, %v1914_v59 }
 0x36b   : > { %v2008_v35 = vpack.c.bf16 %v1981_v26, %v1980_v25  ;;  %v2016_v2 = vpack.c.bf16 %v1997_v30, %v1996_v29  ;;  %v1968_v39 = vadd.f32 %v4092_v57, %v1929_v32  ;;  %v1969_v40 = vadd.f32 %v4092_v57, %v1930_v33 }
 0x36c   : > { %3232 = vmatpush3.bf16.msra.mxu0 %v3443_v60  ;;  %3315 = vmatpush3.bf16.msra.mxu1 %v3443_v60  ;;  %v1928_v60 = vld [vmem:[#allocation4 + $0x28] sm:$0xff]  ;;  %v1982_v41 = vmax.f32 %v1950_v1, 0.0  ;;  %v1983_v37 = vmax.f32 %v1951_v23, 0.0  ;;  %v1998_v0 = vmax.f32 %v1966_v36, 0.0  ;;  %v1985_v4 = vmax.f32 %v1953_v51, 0.0 }
 0x36d   : > { %3233 = vmatprep.subr.bf16.mxu0 %v3444_v34  ;;  %3308 = vmatprep.subr.bf16.mxu1 %v3444_v34  ;;  %v1967_v38 = vadd.f32 %v4092_v57, %v1928_v60  ;;  %v2000_v5 = vmax.f32 %v1968_v39, 0.0  ;;  %v2001_v7 = vmax.f32 %v1969_v40, 0.0  ;;  %v1954_v6 = vadd.f32 %v4092_v57, %v1915_v42 }
 0x36e   : > { %v2009_v47 = vpack.c.bf16 %v1983_v37, %v1982_v41  ;;  %v1955_v11 = vadd.f32 %v4092_v57, %v1916_v43  ;;  %v1970_v48 = vadd.f32 %v4092_v57, %v1931_v45  ;;  %v1971_v49 = vadd.f32 %v4092_v57, %v1932_v46 }
 0x36f   : > { %v1999_v3 = vmax.f32 %v1967_v38, 0.0  ;;  %v2018_v8 = vpack.c.bf16 %v2001_v7, %v2000_v5  ;;  %v1986_v10 = vmax.f32 %v1954_v6, 0.0  ;;  %v2252_v14 = vlaneseq }
 0x370   : > { %3234 = vmatpush3.bf16.msra.mxu0 %v3444_v34  ;;  %3316 = vmatpush3.bf16.msra.mxu1 %v3444_v34  ;;  %v2007_v34 = vpack.c.bf16 %v1979_v22, %v1978_v21  ;;  %v1987_v13 = vmax.f32 %v1955_v11, 0.0  ;;  %v2002_v52 = vmax.f32 %v1970_v48, 0.0  ;;  %v2003_v53 = vmax.f32 %v1971_v49, 0.0 }
 0x371   : > { %3235 = vmatprep.subr.bf16.mxu0 %v3445_v63  ;;  %3309 = vmatprep.subr.bf16.mxu1 %v3445_v63  ;;  %v2017_v9 = vpack.c.bf16 %v1999_v3, %v1998_v0  ;;  %v4138_v15 = vand.u32 127, %v2252_v14 }
 0x372   : > { %v2019_v12 = vpack.c.bf16 %v2003_v53, %v2002_v52 }
 0x373   : > { %vm2254_vm0 = vcmp.lt.s32.totalorder %v4138_v15, 8 }
 0x374   : > { %3236 = vmatpush3.bf16.msra.mxu0 %v3445_v63  ;;  %3317 = vmatpush3.bf16.msra.mxu1 %v3445_v63  ;;  %v1952_v63 = vadd.f32 %v4092_v57, %v1913_v62  ;;  %v4143_v57 = vld [vmem:[%s4608_s5] ss:$0 sm:$0xff] }
 0x375   : > { %3237 = vmatprep.subr.bf16.mxu0 %v3446_v44  ;;  %3310 = vmatprep.subr.bf16.mxu1 %v3446_v44 }
 0x378   : > { %3238 = vmatpush3.bf16.msra.mxu0 %v3446_v44  ;;  %3318 = vmatpush3.bf16.msra.mxu1 %v3446_v44  ;;  %v1984_v44 = vmax.f32 %v1952_v63, 0.0 }
 0x37a   : > { %v2010_v50 = vpack.c.bf16 %v1985_v4, %v1984_v44 }
 0x37b   : > { %3240 = vmatmul.mubr.bf16.vlgmr.msra.gmra.mxu0 %v2005_v54  ;;  %3256 = vmatmul.mubr.bf16.vlgmr.msra.gmra.mxu1 %v2013_v55  ;;  %v2011_v54 = vpack.c.bf16 %v1987_v13, %v1986_v10 }
 0x37c   : > { %3243 = vmatprep.mubr.bf16.mxu0 %v2006_v56  ;;  %3259 = vmatprep.mubr.bf16.mxu1 %v2014_v18 }
 0x383   : > { %3244 = vmatmul.mubr.bf16.gmra.mxu0 %v2007_v34  ;;  %3260 = vmatmul.mubr.bf16.gmra.mxu1 %v2015_v61 }
 0x384   : > { %3247 = vmatprep.mubr.bf16.mxu0 %v2008_v35  ;;  %3263 = vmatprep.mubr.bf16.mxu1 %v2016_v2 }
 0x38b   : > { %3248 = vmatmul.mubr.bf16.gmra.mxu0 %v2009_v47  ;;  %3264 = vmatmul.mubr.bf16.gmra.mxu1 %v2017_v9 }
 0x38c   : > { %3251 = vmatprep.mubr.bf16.mxu0 %v2010_v50  ;;  %3267 = vmatprep.mubr.bf16.mxu1 %v2018_v8 }
 0x393   : > { %3252 = vmatmul.mubr.bf16.gmra.mxu0 %v2011_v54  ;;  %3268 = vmatmul.mubr.bf16.gmra.mxu1 %v2019_v12 }
 0x43b   : > { %v3241_v55 = vpop.f32.mrf.mxu0  ;;  %v3257_v56 = vpop.f32.mrf.mxu1 }
 0x43c   : > { %v2134_v17 = vadd.f32 %v3241_v55, %v4143_v57  ;;  %v2198_v16 = vadd.f32 %v3257_v56, %v4143_v57 }
 0x43d   : > { %v2125_v18 = vpop.f32.mrf.mxu0  ;;  %v2189_v19 = vpop.f32.mrf.mxu1 }
 0x43e   : > { %v2126_v20 = vadd.f32 %v4143_v57, %v2125_v18  ;;  %v4151_v21 = vsel %vm2254_vm0, %v2198_v16, -1e+30  ;;  %v4155_v22 = vsel %vm2254_vm0, %v2134_v17, -1e+30  ;;  %v2190_v28 = vadd.f32 %v4143_v57, %v2189_v19 }
 0x43f   : > { %2323 = vmax.xlane.f32.xlu0 %v4151_v21  ;;  %v3258_v24 = vpop.f32.mrf.mxu1  ;;  %2291 = vmax.xlane.f32.xlu1 %v4155_v22  ;;  %v3242_v58 = vpop.f32.mrf.mxu0 }
 0x440   : > { %v2137_v25 = vadd.f32 %v3242_v58, %v4143_v57  ;;  %v2201_v29 = vadd.f32 %v3258_v24, %v4143_v57  ;;  %v4168_v31 = vsel %vm2254_vm0, %v2126_v20, -1e+30  ;;  %v4180_v61 = vsel %vm2254_vm0, %v2190_v28, -1e+30 }
 0x441   : > { %v2128_v26 = vpop.f32.mrf.mxu0  ;;  %v2192_v27 = vpop.f32.mrf.mxu1 }
 0x442   : > { %v4164_v30 = vsel %vm2254_vm0, %v2137_v25, -1e+30  ;;  %v2129_v32 = vadd.f32 %v4143_v57, %v2128_v26  ;;  %v2193_v33 = vadd.f32 %v4143_v57, %v2192_v27  ;;  %v4176_v34 = vsel %vm2254_vm0, %v2201_v29, -1e+30 }
 0x443   : > { %2293 = vmax.xlane.f32.xlu1 %v4164_v30  ;;  %2287 = vmax.xlane.f32.xlu0 %v4168_v31  ;;  %v3245_v60 = vpop.f32.mrf.mxu0  ;;  %v3261_v62 = vpop.f32.mrf.mxu1 }
 0x444   : > { %v2150_v35 = vadd.f32 %v3245_v60, %v4143_v57  ;;  %v4188_v38 = vsel %vm2254_vm0, %v2193_v33, -1e+30  ;;  %v4192_v63 = vsel %vm2254_vm0, %v2129_v32, -1e+30  ;;  %v2214_v51 = vadd.f32 %v3261_v62, %v4143_v57 }
 0x445   : > { %v2141_v59 = vpop.f32.mrf.mxu0  ;;  %v2205_v23 = vpop.f32.mrf.mxu1 }
 0x446   : > { %v4204_v41 = vsel %vm2254_vm0, %v2150_v35, -1e+30  ;;  %v4214_v42 = vsel %vm2254_vm0, %v2214_v51, -1e+30  ;;  %v2142_v44 = vadd.f32 %v4143_v57, %v2141_v59  ;;  %v2206_v45 = vadd.f32 %v4143_v57, %v2205_v23 }
 0x447   : > { %2325 = vmax.xlane.f32.xlu1 %v4176_v34  ;;  %2319 = vmax.xlane.f32.xlu0 %v4180_v61  ;;  %v3246_v1 = vpop.f32.mrf.mxu0  ;;  %v3262_v2 = vpop.f32.mrf.mxu1 }
 0x448   : > { %v2153_v36 = vadd.f32 %v3246_v1, %v4143_v57  ;;  %v2217_v39 = vadd.f32 %v3262_v2, %v4143_v57  ;;  %v4228_v6 = vsel %vm2254_vm0, %v2142_v44, -1e+30  ;;  %v4240_v8 = vsel %vm2254_vm0, %v2206_v45, -1e+30 }
 0x449   : > { %v2144_v37 = vpop.f32.mrf.mxu0  ;;  %v2208_v43 = vpop.f32.mrf.mxu1 }
 0x44a   : > { %v4200_v40 = vsel %vm2254_vm0, %v2153_v36, -1e+30  ;;  %v4210_v3 = vsel %vm2254_vm0, %v2217_v39, -1e+30  ;;  %v2145_v4 = vadd.f32 %v4143_v57, %v2144_v37  ;;  %v2209_v46 = vadd.f32 %v4143_v57, %v2208_v43 }
 0x44b   : > { %2321 = vmax.xlane.f32.xlu1 %v4188_v38  ;;  %2289 = vmax.xlane.f32.xlu0 %v4192_v63  ;;  %v3249_v0 = vpop.f32.mrf.mxu0  ;;  %v3265_v7 = vpop.f32.mrf.mxu1 }
 0x44c   : > { %v4224_v47 = vsel %vm2254_vm0, %v2145_v4, -1e+30  ;;  %v2166_v48 = vadd.f32 %v3249_v0, %v4143_v57  ;;  %v4236_v50 = vsel %vm2254_vm0, %v2209_v46, -1e+30  ;;  %v2230_v13 = vadd.f32 %v3265_v7, %v4143_v57 }
 0x44d   : > { %v2157_v5 = vpop.f32.mrf.mxu0  ;;  %v2221_v11 = vpop.f32.mrf.mxu1 }
 0x44e   : > { %v4252_v54 = vsel %vm2254_vm0, %v2166_v48, -1e+30  ;;  %v4262_v56 = vsel %vm2254_vm0, %v2230_v13, -1e+30  ;;  %v2158_v16 = vadd.f32 %v4143_v57, %v2157_v5  ;;  %v2222_v24 = vadd.f32 %v4143_v57, %v2221_v11 }
 0x44f   : > { %2301 = vmax.xlane.f32.xlu1 %v4200_v40  ;;  %2299 = vmax.xlane.f32.xlu0 %v4204_v41  ;;  %v3250_v9 = vpop.f32.mrf.mxu0  ;;  %v3266_v10 = vpop.f32.mrf.mxu1 }
 0x450   : > { %v2169_v49 = vadd.f32 %v3250_v9, %v4143_v57  ;;  %v2233_v52 = vadd.f32 %v3266_v10, %v4143_v57  ;;  %v4276_v26 = vsel %vm2254_vm0, %v2158_v16, -1e+30  ;;  %v4288_v59 = vsel %vm2254_vm0, %v2222_v24, -1e+30 }
 0x451   : > { %v2160_v12 = vpop.f32.mrf.mxu0  ;;  %v2224_v17 = vpop.f32.mrf.mxu1 }
 0x452   : > { %v4248_v53 = vsel %vm2254_vm0, %v2169_v49, -1e+30  ;;  %v4258_v55 = vsel %vm2254_vm0, %v2233_v52, -1e+30  ;;  %v2161_v18 = vadd.f32 %v4143_v57, %v2160_v12  ;;  %v2225_v58 = vadd.f32 %v4143_v57, %v2224_v17 }
 0x453   : > { %2333 = vmax.xlane.f32.xlu1 %v4210_v3  ;;  %2331 = vmax.xlane.f32.xlu0 %v4214_v42  ;;  %v3253_v14 = vpop.f32.mrf.mxu0  ;;  %v3269_v20 = vpop.f32.mrf.mxu1 }
 0x454   : > { %v4272_v25 = vsel %vm2254_vm0, %v2161_v18, -1e+30  ;;  %v2182_v29 = vadd.f32 %v3253_v14, %v4143_v57  ;;  %v4284_v62 = vsel %vm2254_vm0, %v2225_v58, -1e+30  ;;  %v2246_v43 = vadd.f32 %v3269_v20, %v4143_v57 }
 0x455   : > { %v2173_v19 = vpop.f32.mrf.mxu0  ;;  %v2237_v28 = vpop.f32.mrf.mxu1 }
 0x456   : > { %v4298_v23 = vsel %vm2254_vm0, %v2182_v29, -1e+30  ;;  %v2174_v35 = vadd.f32 %v4143_v57, %v2173_v19  ;;  %v2238_v51 = vadd.f32 %v4143_v57, %v2237_v28  ;;  %v4334_v45 = vsel %vm2254_vm0, %v2246_v43, -1e+30 }
 0x457   : > { %2297 = vmax.xlane.f32.xlu1 %v4224_v47  ;;  %2295 = vmax.xlane.f32.xlu0 %v4228_v6  ;;  %v3254_v27 = vpop.f32.mrf.mxu0  ;;  %v3270_v33 = vpop.f32.mrf.mxu1 }
 0x458   : > { %v2185_v60 = vadd.f32 %v3254_v27, %v4143_v57  ;;  %v4312_v0 = vsel %vm2254_vm0, %v2174_v35, -1e+30  ;;  %v2249_v44 = vadd.f32 %v3270_v33, %v4143_v57  ;;  %v4324_v5 = vsel %vm2254_vm0, %v2238_v51, -1e+30 }
 0x459   : > { %v2176_v32 = vpop.f32.mrf.mxu0  ;;  %v2240_v2 = vpop.f32.mrf.mxu1 }
 0x45a   : > { %v4294_v1 = vsel %vm2254_vm0, %v2185_v60, -1e+30  ;;  %v2177_v36 = vadd.f32 %v4143_v57, %v2176_v32  ;;  %v2241_v39 = vadd.f32 %v4143_v57, %v2240_v2  ;;  %v4330_v7 = vsel %vm2254_vm0, %v2249_v44, -1e+30 }
 0x45b   : > { %2329 = vmax.xlane.f32.xlu1 %v4236_v50  ;;  %2327 = vmax.xlane.f32.xlu0 %v4240_v8 }
 0x45c   : > { %v4308_v37 = vsel %vm2254_vm0, %v2177_v36, -1e+30  ;;  %v4320_v4 = vsel %vm2254_vm0, %v2241_v39, -1e+30 }
 0x45f   : > { %2309 = vmax.xlane.f32.xlu1 %v4248_v53  ;;  %2307 = vmax.xlane.f32.xlu0 %v4252_v54 }
 0x463   : > { %2341 = vmax.xlane.f32.xlu1 %v4258_v55  ;;  %2339 = vmax.xlane.f32.xlu0 %v4262_v56 }
 0x467   : > { %2305 = vmax.xlane.f32.xlu1 %v4272_v25  ;;  %2303 = vmax.xlane.f32.xlu0 %v4276_v26 }
 0x46b   : > { %2337 = vmax.xlane.f32.xlu1 %v4284_v62  ;;  %2335 = vmax.xlane.f32.xlu0 %v4288_v59 }
 0x46f   : > { %2317 = vmax.xlane.f32.xlu1 %v4294_v1  ;;  %2315 = vmax.xlane.f32.xlu0 %v4298_v23 }
 0x473   : > { %2313 = vmax.xlane.f32.xlu1 %v4308_v37  ;;  %2311 = vmax.xlane.f32.xlu0 %v4312_v0 }
 0x477   : > { %2345 = vmax.xlane.f32.xlu1 %v4320_v4  ;;  %2343 = vmax.xlane.f32.xlu0 %v4324_v5 }
 0x47b   : > { %2349 = vmax.xlane.f32.xlu1 %v4330_v7  ;;  %2347 = vmax.xlane.f32.xlu0 %v4334_v45 }
 0x4c8   : > { %v2324_v57 = vpop.xlane.xlu0 %2323  ;;  %v2292_v46 = vpop.xlane.xlu1 %2291 }
 0x4c9   : > { %v2353_v9 = vsub.f32 %v4155_v22, %v2292_v46  ;;  %v2369_v11 = vsub.f32 %v4151_v21, %v2324_v57 }
 0x4cb   : > { %v2387_v48 = vmul.f32 1.442695, %v2353_v9  ;;  %v2419_v52 = vmul.f32 1.442695, %v2369_v11 }
 0x4cc   : > { %v2294_v49 = vpop.xlane.xlu1 %2293  ;;  %v2288_v10 = vpop.xlane.xlu0 %2287 }
 0x4cd   : > { %v2354_v13 = vsub.f32 %v4164_v30, %v2294_v49  ;;  %3447 = vpow2.f32 %v2387_v48  ;;  %v2351_v15 = vsub.f32 %v4168_v31, %v2288_v10 }
 0x4cf   : > { %v2389_v12 = vmul.f32 1.442695, %v2354_v13  ;;  %v2383_v22 = vmul.f32 1.442695, %v2351_v15 }
 0x4d0   : > { %v2326_v14 = vpop.xlane.xlu1 %2325  ;;  %v2320_v17 = vpop.xlane.xlu0 %2319 }
 0x4d1   : > { %3449 = vpow2.f32 %v2389_v12  ;;  %v2370_v16 = vsub.f32 %v4176_v34, %v2326_v14  ;;  %v2367_v18 = vsub.f32 %v4180_v61, %v2320_v17 }
 0x4d2   : > { %3451 = vpow2.f32 %v2419_v52 }
 0x4d3   : > { %v2421_v21 = vmul.f32 1.442695, %v2370_v16  ;;  %v2415_v24 = vmul.f32 1.442695, %v2367_v18 }
 0x4d4   : > { %v2322_v19 = vpop.xlane.xlu1 %2321  ;;  %v2290_v20 = vpop.xlane.xlu0 %2289 }
 0x4d5   : > { %3453 = vpow2.f32 %v2421_v21  ;;  %v2368_v30 = vsub.f32 %v4188_v38, %v2322_v19  ;;  %v2352_v58 = vsub.f32 %v4192_v63, %v2290_v20 }
 0x4d6   : > { %3455 = vpow2.f32 %v2383_v22 }
 0x4d7   : > { %v2385_v31 = vmul.f32 1.442695, %v2352_v58  ;;  %3457 = vpow2.f32 %v2415_v24  ;;  %v2417_v29 = vmul.f32 1.442695, %v2368_v30 }
 0x4d8   : > { %v2302_v27 = vpop.xlane.xlu1 %2301  ;;  %v2300_v28 = vpop.xlane.xlu0 %2299 }
 0x4d9   : > { %v2358_v34 = vsub.f32 %v4200_v40, %v2302_v27  ;;  %v2357_v61 = vsub.f32 %v4204_v41, %v2300_v28  ;;  %3459 = vpow2.f32 %v2385_v31 }
 0x4da   : > { %v4348_v60 = vpop.eup %3447  ;;  %3461 = vpow2.f32 %v2417_v29 }
 0x4db   : > { %v2395_v32 = vmul.f32 1.442695, %v2357_v61  ;;  %2451 = vadd.xlane.f32.xlu0 %v4348_v60  ;;  %v2397_v63 = vmul.f32 1.442695, %v2358_v34 }
 0x4dc   : > { %v2334_v33 = vpop.xlane.xlu1 %2333  ;;  %v2332_v38 = vpop.xlane.xlu0 %2331 }
 0x4dd   : > { %v2374_v35 = vsub.f32 %v4210_v3, %v2334_v33  ;;  %v2373_v36 = vsub.f32 %v4214_v42, %v2332_v38  ;;  %3463 = vpow2.f32 %v2395_v32 }
 0x4de   : > { %v4353_v2 = vpop.eup %3449  ;;  %3465 = vpow2.f32 %v2397_v63 }
 0x4df   : > { %v4355_v40 = vpop.eup %3451  ;;  %v2427_v41 = vmul.f32 1.442695, %v2373_v36  ;;  %2453 = vadd.xlane.f32.xlu1 %v4353_v2  ;;  %v2429_v43 = vmul.f32 1.442695, %v2374_v35 }
 0x4e0   : > { %2483 = vadd.xlane.f32.xlu0 %v4355_v40  ;;  %v2298_v51 = vpop.xlane.xlu1 %2297  ;;  %v2296_v39 = vpop.xlane.xlu0 %2295 }
 0x4e1   : > { %v2356_v44 = vsub.f32 %v4224_v47, %v2298_v51  ;;  %v2355_v3 = vsub.f32 %v4228_v6, %v2296_v39  ;;  %3467 = vpow2.f32 %v2427_v41 }
 0x4e2   : > { %v4361_v57 = vpop.eup %3453  ;;  %3469 = vpow2.f32 %v2429_v43 }
 0x4e3   : > { %v4363_v42 = vpop.eup %3455  ;;  %v2391_v46 = vmul.f32 1.442695, %v2355_v3  ;;  %2485 = vadd.xlane.f32.xlu1 %v4361_v57  ;;  %v2393_v48 = vmul.f32 1.442695, %v2356_v44 }
 0x4e4   : > { %2447 = vadd.xlane.f32.xlu0 %v4363_v42  ;;  %v2330_v9 = vpop.xlane.xlu1 %2329  ;;  %v2328_v11 = vpop.xlane.xlu0 %2327 }
 0x4e5   : > { %v2372_v49 = vsub.f32 %v4236_v50, %v2330_v9  ;;  %v2371_v47 = vsub.f32 %v4240_v8, %v2328_v11  ;;  %v4369_v10 = vpop.eup %3457  ;;  %3471 = vpow2.f32 %v2391_v46 }
 0x4e6   : > { %v4371_v6 = vpop.eup %3459  ;;  %3473 = vpow2.f32 %v2393_v48 }
 0x4e7   : > { %v2423_v13 = vmul.f32 1.442695, %v2371_v47  ;;  %2449 = vadd.xlane.f32.xlu1 %v4371_v6  ;;  %v2425_v12 = vmul.f32 1.442695, %v2372_v49  ;;  %v4377_v17 = vpop.eup %3461 }
 0x4e8   : > { %2479 = vadd.xlane.f32.xlu0 %v4369_v10  ;;  %v2310_v52 = vpop.xlane.xlu1 %2309  ;;  %v2308_v15 = vpop.xlane.xlu0 %2307 }
 0x4e9   : > { %v2362_v14 = vsub.f32 %v4248_v53, %v2310_v52  ;;  %v2361_v50 = vsub.f32 %v4252_v54, %v2308_v15  ;;  %3475 = vpow2.f32 %v2423_v13 }
 0x4ea   : > { %v4379_v8 = vpop.eup %3463  ;;  %3477 = vpow2.f32 %v2425_v12 }
 0x4eb   : > { %v2403_v16 = vmul.f32 1.442695, %v2361_v50  ;;  %2481 = vadd.xlane.f32.xlu1 %v4377_v17  ;;  %v2405_v21 = vmul.f32 1.442695, %v2362_v14  ;;  %v4385_v20 = vpop.eup %3465 }
 0x4ec   : > { %2459 = vadd.xlane.f32.xlu0 %v4379_v8  ;;  %v2342_v18 = vpop.xlane.xlu1 %2341  ;;  %v2340_v22 = vpop.xlane.xlu0 %2339 }
 0x4ed   : > { %v2378_v19 = vsub.f32 %v4258_v55, %v2342_v18  ;;  %v2377_v53 = vsub.f32 %v4262_v56, %v2340_v22  ;;  %3479 = vpow2.f32 %v2403_v16 }
 0x4ee   : > { %v4387_v54 = vpop.eup %3467  ;;  %3481 = vpow2.f32 %v2405_v21 }
 0x4ef   : > { %v2435_v24 = vmul.f32 1.442695, %v2377_v53  ;;  %2461 = vadd.xlane.f32.xlu1 %v4385_v20  ;;  %v2437_v31 = vmul.f32 1.442695, %v2378_v19  ;;  %v4393_v28 = vpop.eup %3469 }
 0x4f0   : > { %2491 = vadd.xlane.f32.xlu0 %v4387_v54  ;;  %v2306_v30 = vpop.xlane.xlu1 %2305  ;;  %v2304_v58 = vpop.xlane.xlu0 %2303 }
 0x4f1   : > { %v2360_v27 = vsub.f32 %v4272_v25, %v2306_v30  ;;  %v2359_v55 = vsub.f32 %v4276_v26, %v2304_v58  ;;  %3483 = vpow2.f32 %v2435_v24 }
 0x4f2   : > { %v4395_v56 = vpop.eup %3471  ;;  %3485 = vpow2.f32 %v2437_v31 }
 0x4f3   : > { %v2399_v29 = vmul.f32 1.442695, %v2359_v55  ;;  %2493 = vadd.xlane.f32.xlu1 %v4393_v28  ;;  %v2401_v32 = vmul.f32 1.442695, %v2360_v27  ;;  %v4401_v38 = vpop.eup %3473 }
 0x4f4   : > { %2455 = vadd.xlane.f32.xlu0 %v4395_v56  ;;  %v2338_v34 = vpop.xlane.xlu1 %2337  ;;  %v2336_v61 = vpop.xlane.xlu0 %2335 }
 0x4f5   : > { %v2376_v33 = vsub.f32 %v4284_v62, %v2338_v34  ;;  %v2375_v25 = vsub.f32 %v4288_v59, %v2336_v61  ;;  %3487 = vpow2.f32 %v2399_v29 }
 0x4f6   : > { %v4403_v26 = vpop.eup %3475  ;;  %3489 = vpow2.f32 %v2401_v32 }
 0x4f7   : > { %v2431_v63 = vmul.f32 1.442695, %v2375_v25  ;;  %2457 = vadd.xlane.f32.xlu1 %v4401_v38  ;;  %v2433_v41 = vmul.f32 1.442695, %v2376_v33  ;;  %v4409_v39 = vpop.eup %3477 }
 0x4f8   : > { %2487 = vadd.xlane.f32.xlu0 %v4403_v26  ;;  %v2318_v35 = vpop.xlane.xlu1 %2317  ;;  %v2316_v36 = vpop.xlane.xlu0 %2315 }
 0x4f9   : > { %v2366_v51 = vsub.f32 %v4294_v1, %v2318_v35  ;;  %v2365_v62 = vsub.f32 %v4298_v23, %v2316_v36  ;;  %3491 = vpow2.f32 %v2431_v63 }
 0x4fa   : > { %v4411_v59 = vpop.eup %3479  ;;  %3493 = vpow2.f32 %v2433_v41 }
 0x4fb   : > { %v2411_v43 = vmul.f32 1.442695, %v2365_v62  ;;  %2489 = vadd.xlane.f32.xlu1 %v4409_v39  ;;  %v2413_v46 = vmul.f32 1.442695, %v2366_v51  ;;  %v4417_v11 = vpop.eup %3481 }
 0x4fc   : > { %2467 = vadd.xlane.f32.xlu0 %v4411_v59  ;;  %v2314_v44 = vpop.xlane.xlu1 %2313  ;;  %v2312_v3 = vpop.xlane.xlu0 %2311 }
 0x4fd   : > { %v2364_v9 = vsub.f32 %v4308_v37, %v2314_v44  ;;  %v2363_v1 = vsub.f32 %v4312_v0, %v2312_v3  ;;  %3495 = vpow2.f32 %v2411_v43 }
 0x4fe   : > { %v4419_v23 = vpop.eup %3483  ;;  %3497 = vpow2.f32 %v2413_v46 }
 0x4ff   : > { %v2407_v48 = vmul.f32 1.442695, %v2363_v1  ;;  %2469 = vadd.xlane.f32.xlu1 %v4417_v11  ;;  %v2409_v13 = vmul.f32 1.442695, %v2364_v9  ;;  %v4425_v15 = vpop.eup %3485 }
 0x500   : > { %2499 = vadd.xlane.f32.xlu0 %v4419_v23  ;;  %v2346_v49 = vpop.xlane.xlu1 %2345  ;;  %v2344_v47 = vpop.xlane.xlu0 %2343 }
 0x501   : > { %v2380_v52 = vsub.f32 %v4320_v4, %v2346_v49  ;;  %v2379_v37 = vsub.f32 %v4324_v5, %v2344_v47  ;;  %3499 = vpow2.f32 %v2407_v48 }
 0x502   : > { %v4427_v0 = vpop.eup %3487  ;;  %3501 = vpow2.f32 %v2409_v13 }
 0x503   : > { %v2439_v12 = vmul.f32 1.442695, %v2379_v37  ;;  %2501 = vadd.xlane.f32.xlu1 %v4425_v15  ;;  %v2441_v16 = vmul.f32 1.442695, %v2380_v52  ;;  %v4432_v22 = vpop.eup %3489 }
 0x504   : > { %2463 = vadd.xlane.f32.xlu0 %v4427_v0  ;;  %v2350_v14 = vpop.xlane.xlu1 %2349  ;;  %v2348_v50 = vpop.xlane.xlu0 %2347 }
 0x505   : > { %v2381_v18 = vsub.f32 %v4334_v45, %v2348_v50  ;;  %3503 = vpow2.f32 %v2439_v12  ;;  %v2382_v4 = vsub.f32 %v4330_v7, %v2350_v14 }
 0x506   : > { %v4435_v5 = vpop.eup %3491  ;;  %3505 = vpow2.f32 %v2441_v16 }
 0x507   : > { %v2443_v21 = vmul.f32 1.442695, %v2381_v18  ;;  %2465 = vadd.xlane.f32.xlu1 %v4432_v22  ;;  %v4439_v19 = vpop.eup %3493  ;;  %v2445_v53 = vmul.f32 1.442695, %v2382_v4 }
 0x508   : > { %2495 = vadd.xlane.f32.xlu0 %v4435_v5 }
 0x509   : > { %3507 = vpow2.f32 %v2443_v21 }
 0x50a   : > { %v4441_v24 = vpop.eup %3495  ;;  %3509 = vpow2.f32 %v2445_v53 }
 0x50b   : > { %2497 = vadd.xlane.f32.xlu1 %v4439_v19  ;;  %v4445_v45 = vpop.eup %3497 }
 0x50c   : > { %2475 = vadd.xlane.f32.xlu0 %v4441_v24 }
 0x50e   : > { %v4447_v7 = vpop.eup %3499 }
 0x50f   : > { %2477 = vadd.xlane.f32.xlu1 %v4445_v45  ;;  %v4451_v30 = vpop.eup %3501 }
 0x510   : > { %2471 = vadd.xlane.f32.xlu0 %v4447_v7 }
 0x512   : > { %v4453_v58 = vpop.eup %3503 }
 0x513   : > { %2473 = vadd.xlane.f32.xlu1 %v4451_v30  ;;  %v4457_v31 = vpop.eup %3505 }
 0x514   : > { %2503 = vadd.xlane.f32.xlu0 %v4453_v58 }
 0x516   : > { %v4459_v27 = vpop.eup %3507 }
 0x517   : > { %2505 = vadd.xlane.f32.xlu1 %v4457_v31  ;;  %v4463_v55 = vpop.eup %3509 }
 0x518   : > { %2507 = vadd.xlane.f32.xlu0 %v4459_v27 }
 0x51b   : > { %2509 = vadd.xlane.f32.xlu1 %v4463_v55 }
 0x564   : > { %v2452_v29 = vpop.xlane.xlu0 %2451 }
 0x565   : > { %3511 = vrcp.f32 %v2452_v29 }
 0x568   : > { %v2454_v34 = vpop.xlane.xlu1 %2453 }
 0x569   : > { %3513 = vrcp.f32 %v2454_v34  ;;  %v2484_v61 = vpop.xlane.xlu0 %2483 }
 0x56a   : > { %3515 = vrcp.f32 %v2484_v61 }
 0x56c   : > { %v2486_v32 = vpop.xlane.xlu1 %2485 }
 0x56d   : > { %3517 = vrcp.f32 %v2486_v32  ;;  %v2448_v33 = vpop.xlane.xlu0 %2447 }
 0x56e   : > { %3519 = vrcp.f32 %v2448_v33 }
 0x570   : > { %v2450_v25 = vpop.xlane.xlu1 %2449 }
 0x571   : > { %v2480_v63 = vpop.xlane.xlu0 %2479  ;;  %3521 = vrcp.f32 %v2450_v25 }
 0x572   : > { %v3512_v35 = vpop.eup %3511  ;;  %3523 = vrcp.f32 %v2480_v63 }
 0x573   : > { %v2516_v36 = vmul.f32 %v3512_v35, %v4348_v60 }
 0x574   : > { %v2482_v41 = vpop.xlane.xlu1 %2481 }
 0x575   : > { %v2460_v51 = vpop.xlane.xlu0 %2459  ;;  %2578 = vst [vmem:[%s4609_s6 + $0x10] sm:$0xff] %v2516_v36  ;;  %3525 = vrcp.f32 %v2482_v41 }
 0x576   : > { %v3514_v62 = vpop.eup %3513  ;;  %3527 = vrcp.f32 %v2460_v51 }
 0x577   : > { %v3516_v43 = vpop.eup %3515  ;;  %v2518_v44 = vmul.f32 %v3514_v62, %v4353_v2 }
 0x578   : > { %v2548_v3 = vmul.f32 %v3516_v43, %v4355_v40  ;;  %v2462_v46 = vpop.xlane.xlu1 %2461 }
 0x579   : > { %2579 = vst [vmem:[%s4609_s6 + $0x18] sm:$0xff] %v2518_v44  ;;  %v2492_v60 = vpop.xlane.xlu0 %2491  ;;  %3529 = vrcp.f32 %v2462_v46 }
 0x57a   : > { %v3518_v9 = vpop.eup %3517  ;;  %2594 = vst [vmem:[%s4609_s6 + $0x90] sm:$0xff] %v2548_v3  ;;  %3531 = vrcp.f32 %v2492_v60 }
 0x57b   : > { %v3520_v1 = vpop.eup %3519  ;;  %v2550_v48 = vmul.f32 %v3518_v9, %v4361_v57 }
 0x57c   : > { %v2512_v2 = vmul.f32 %v3520_v1, %v4363_v42  ;;  %v2494_v40 = vpop.xlane.xlu1 %2493 }
 0x57d   : > { %2595 = vst [vmem:[%s4609_s6 + $0x98] sm:$0xff] %v2550_v48  ;;  %v2456_v49 = vpop.xlane.xlu0 %2455  ;;  %3533 = vrcp.f32 %v2494_v40 }
 0x57e   : > { %2576 = vst [vmem:[%s4609_s6] sm:$0xff] %v2512_v2  ;;  %v3522_v47 = vpop.eup %3521  ;;  %3535 = vrcp.f32 %v2456_v49 }
 0x57f   : > { %v3524_v13 = vpop.eup %3523  ;;  %v2514_v52 = vmul.f32 %v3522_v47, %v4371_v6 }
 0x580   : > { %v2544_v57 = vmul.f32 %v3524_v13, %v4369_v10  ;;  %v2458_v37 = vpop.xlane.xlu1 %2457 }
 0x581   : > { %v2488_v42 = vpop.xlane.xlu0 %2487  ;;  %2577 = vst [vmem:[%s4609_s6 + $0x8] sm:$0xff] %v2514_v52  ;;  %3537 = vrcp.f32 %v2458_v37 }
 0x582   : > { %v3526_v12 = vpop.eup %3525  ;;  %2592 = vst [vmem:[%s4609_s6 + $0x80] sm:$0xff] %v2544_v57  ;;  %3539 = vrcp.f32 %v2488_v42 }
 0x583   : > { %v3528_v14 = vpop.eup %3527  ;;  %v2546_v50 = vmul.f32 %v3526_v12, %v4377_v17 }
 0x584   : > { %v2524_v6 = vmul.f32 %v3528_v14, %v4379_v8  ;;  %v2490_v16 = vpop.xlane.xlu1 %2489 }
 0x585   : > { %v2468_v10 = vpop.xlane.xlu0 %2467  ;;  %2593 = vst [vmem:[%s4609_s6 + $0x88] sm:$0xff] %v2546_v50  ;;  %3541 = vrcp.f32 %v2490_v16 }
 0x586   : > { %v3530_v18 = vpop.eup %3529  ;;  %2582 = vst [vmem:[%s4609_s6 + $0x30] sm:$0xff] %v2524_v6  ;;  %3543 = vrcp.f32 %v2468_v10 }
 0x587   : > { %v3532_v4 = vpop.eup %3531  ;;  %v2526_v21 = vmul.f32 %v3530_v18, %v4385_v20 }
 0x588   : > { %v2556_v17 = vmul.f32 %v3532_v4, %v4387_v54  ;;  %v2470_v53 = vpop.xlane.xlu1 %2469 }
 0x589   : > { %v2500_v8 = vpop.xlane.xlu0 %2499  ;;  %2583 = vst [vmem:[%s4609_s6 + $0x38] sm:$0xff] %v2526_v21  ;;  %3545 = vrcp.f32 %v2470_v53 }
 0x58a   : > { %v3534_v29 = vpop.eup %3533  ;;  %2598 = vst [vmem:[%s4609_s6 + $0xb0] sm:$0xff] %v2556_v17  ;;  %3547 = vrcp.f32 %v2500_v8 }
 0x58b   : > { %v3536_v34 = vpop.eup %3535  ;;  %v2558_v61 = vmul.f32 %v3534_v29, %v4393_v28 }
 0x58c   : > { %v2520_v20 = vmul.f32 %v3536_v34, %v4395_v56  ;;  %v2502_v32 = vpop.xlane.xlu1 %2501 }
 0x58d   : > { %v2464_v54 = vpop.xlane.xlu0 %2463  ;;  %2599 = vst [vmem:[%s4609_s6 + $0xb8] sm:$0xff] %v2558_v61  ;;  %3549 = vrcp.f32 %v2502_v32 }
 0x58e   : > { %v3538_v33 = vpop.eup %3537  ;;  %2580 = vst [vmem:[%s4609_s6 + $0x20] sm:$0xff] %v2520_v20  ;;  %3551 = vrcp.f32 %v2464_v54 }
 0x58f   : > { %v3540_v25 = vpop.eup %3539  ;;  %v2522_v63 = vmul.f32 %v3538_v33, %v4401_v38 }
 0x590   : > { %v2552_v28 = vmul.f32 %v3540_v25, %v4403_v26  ;;  %v2466_v35 = vpop.xlane.xlu1 %2465 }
 0x591   : > { %v2496_v56 = vpop.xlane.xlu0 %2495  ;;  %2581 = vst [vmem:[%s4609_s6 + $0x28] sm:$0xff] %v2522_v63  ;;  %3553 = vrcp.f32 %v2466_v35 }
 0x592   : > { %v3542_v36 = vpop.eup %3541  ;;  %2596 = vst [vmem:[%s4609_s6 + $0xa0] sm:$0xff] %v2552_v28  ;;  %3555 = vrcp.f32 %v2496_v56 }
 0x593   : > { %v3544_v41 = vpop.eup %3543  ;;  %v2554_v51 = vmul.f32 %v3542_v36, %v4409_v39 }
 0x594   : > { %v2532_v38 = vmul.f32 %v3544_v41, %v4411_v59  ;;  %v2498_v62 = vpop.xlane.xlu1 %2497 }
 0x595   : > { %v2476_v26 = vpop.xlane.xlu0 %2475  ;;  %2597 = vst [vmem:[%s4609_s6 + $0xa8] sm:$0xff] %v2554_v51  ;;  %3557 = vrcp.f32 %v2498_v62 }
 0x596   : > { %v3546_v43 = vpop.eup %3545  ;;  %2586 = vst [vmem:[%s4609_s6 + $0x50] sm:$0xff] %v2532_v38  ;;  %3559 = vrcp.f32 %v2476_v26 }
 0x597   : > { %v3548_v44 = vpop.eup %3547  ;;  %v2534_v3 = vmul.f32 %v3546_v43, %v4417_v11 }
 0x598   : > { %v2564_v39 = vmul.f32 %v3548_v44, %v4419_v23  ;;  %v2478_v46 = vpop.xlane.xlu1 %2477 }
 0x599   : > { %v2472_v59 = vpop.xlane.xlu0 %2471  ;;  %2587 = vst [vmem:[%s4609_s6 + $0x58] sm:$0xff] %v2534_v3  ;;  %3561 = vrcp.f32 %v2478_v46 }
 0x59a   : > { %v3550_v60 = vpop.eup %3549  ;;  %2602 = vst [vmem:[%s4609_s6 + $0xd0] sm:$0xff] %v2564_v39  ;;  %3563 = vrcp.f32 %v2472_v59 }
 0x59b   : > { %v3552_v9 = vpop.eup %3551  ;;  %v2566_v1 = vmul.f32 %v3550_v60, %v4425_v15 }
 0x59c   : > { %v2528_v11 = vmul.f32 %v3552_v9, %v4427_v0  ;;  %v2474_v48 = vpop.xlane.xlu1 %2473 }
 0x59d   : > { %v2504_v23 = vpop.xlane.xlu0 %2503  ;;  %2603 = vst [vmem:[%s4609_s6 + $0xd8] sm:$0xff] %v2566_v1  ;;  %3565 = vrcp.f32 %v2474_v48 }
 0x59e   : > { %v3554_v2 = vpop.eup %3553  ;;  %2584 = vst [vmem:[%s4609_s6 + $0x40] sm:$0xff] %v2528_v11  ;;  %3567 = vrcp.f32 %v2504_v23 }
 0x59f   : > { %v3556_v40 = vpop.eup %3555  ;;  %v2530_v49 = vmul.f32 %v3554_v2, %v4432_v22 }
 0x5a0   : > { %v2560_v15 = vmul.f32 %v3556_v40, %v4435_v5  ;;  %v2506_v47 = vpop.xlane.xlu1 %2505 }
 0x5a1   : > { %v2508_v0 = vpop.xlane.xlu0 %2507  ;;  %2585 = vst [vmem:[%s4609_s6 + $0x48] sm:$0xff] %v2530_v49  ;;  %3569 = vrcp.f32 %v2506_v47 }
 0x5a2   : > { %v3558_v13 = vpop.eup %3557  ;;  %2600 = vst [vmem:[%s4609_s6 + $0xc0] sm:$0xff] %v2560_v15  ;;  %3571 = vrcp.f32 %v2508_v0 }
 0x5a3   : > { %v3560_v52 = vpop.eup %3559  ;;  %v2562_v57 = vmul.f32 %v3558_v13, %v4439_v19 }
 0x5a4   : > { %v2540_v22 = vmul.f32 %v3560_v52, %v4441_v24  ;;  %v2510_v37 = vpop.xlane.xlu1 %2509 }
 0x5a5   : > { %2601 = vst [vmem:[%s4609_s6 + $0xc8] sm:$0xff] %v2562_v57  ;;  %3573 = vrcp.f32 %v2510_v37 }
 0x5a6   : > { %v3562_v5 = vpop.eup %3561  ;;  %2590 = vst [vmem:[%s4609_s6 + $0x70] sm:$0xff] %v2540_v22 }
 0x5a7   : > { %v3564_v42 = vpop.eup %3563  ;;  %v2542_v12 = vmul.f32 %v3562_v5, %v4445_v45 }
 0x5a8   : > { %v2536_v14 = vmul.f32 %v3564_v42, %v4447_v7 }
 0x5a9   : > { %2591 = vst [vmem:[%s4609_s6 + $0x78] sm:$0xff] %v2542_v12 }
 0x5aa   : > { %v3566_v19 = vpop.eup %3565  ;;  %2588 = vst [vmem:[%s4609_s6 + $0x60] sm:$0xff] %v2536_v14 }
 0x5ab   : > { %v3568_v24 = vpop.eup %3567  ;;  %v2538_v50 = vmul.f32 %v3566_v19, %v4451_v30 }
 0x5ac   : > { %v2568_v6 = vmul.f32 %v3568_v24, %v4453_v58 }
 0x5ad   : > { %2589 = vst [vmem:[%s4609_s6 + $0x68] sm:$0xff] %v2538_v50 }
 0x5ae   : > { %v3570_v45 = vpop.eup %3569  ;;  %2604 = vst [vmem:[%s4609_s6 + $0xe0] sm:$0xff] %v2568_v6 }
 0x5af   : > { %v3572_v7 = vpop.eup %3571  ;;  %v2570_v16 = vmul.f32 %v3570_v45, %v4457_v31 }
 0x5b0   : > { %v2572_v10 = vmul.f32 %v3572_v7, %v4459_v27 }
 0x5b1   : > { %2605 = vst [vmem:[%s4609_s6 + $0xe8] sm:$0xff] %v2570_v16 }
 0x5b2   : > { %v3574_v30 = vpop.eup %3573  ;;  %2606 = vst [vmem:[%s4609_s6 + $0xf0] sm:$0xff] %v2572_v10 }
 0x5b3   : > { %v2574_v58 = vmul.f32 %v3574_v30, %v4463_v55 }
 0x5b5   : > { %2607 = vst [vmem:[%s4609_s6 + $0xf8] sm:$0xff] %v2574_v58 }
 0x5b6 PF: > { %s16_s23 = sadd.s32 1, %s3597_s23   ;;  %s4610_s21 = smov %s3593_s22 }
 0x5b7   : > { %p13_p10 = scmp.ge.s32.totalorder %s16_s23, 4   ;;  %s4611_s22 = smov %s4613_s24 }
 0x5b9   :  { %15 = sbr.rel (!%p13_p10) target bundleno = 2 (0x2), region = 100 }

// kernel: higher_order_gcn_2layer.2
= control target key start
LH: loop header
LB: loop body
LE: loop exit
PB: predicated region body
PF: predicated region fallthrough
CT: control target
= control target key end

     0   :  { %s3054_s15 = smov 0   ;;  %s3056_s16 = smov 0   ;;  %s3591_s0 = inlined_call_operand.vmem [shape: bf16[256,256], index: 0, kind: input, shape index: {}]   ;;  %s3592_s1 = inlined_call_operand.vmem [shape: bf16[256,128], index: 1, kind: input, shape index: {}]   ;;  %s3593_s2 = inlined_call_operand.vmem [shape: bf16[3,128,128], index: 2, kind: input, shape index: {}]   ;;  %s3594_s3 = inlined_call_operand.vmem [shape: f32[1,128], index: 3, kind: input, shape index: {}]   ;;  %s3595_s4 = inlined_call_operand.vmem [shape: bf16[256,128], index: 4, kind: output, shape index: {}]  }
   0x1   :  { %s3058_s17 = smov 0  }
   0x2 LB: > { %s33_s18 = sadd.s32 1, %s3023_s16  ;;  %p2162_p0 = scmp.ge.s32.totalorder %s3027_s17, 1  ;;  %s3027_s17 = sphi %s3058_s17, %s14_s17   ;;  %s3023_s16 = sphi %s3056_s16, %s3597_s16   ;;  %s3019_s15 = sphi %s3054_s15, %s3596_s15  }
   0x3   : > { %p35_p1 = scmp.ge.s32.totalorder %s33_s18, 2  ;;  %p166_p2 = scmp.lt.s32.totalorder %s3027_s17, 3 }
   0x5   : > { %s3599_s18 = smov (%p35_p1, %s33_s18), 0  ;;  %p167_p3 = pnand %p2162_p0, %p166_p2 }
   0x6   : > { %p183_p4 = scmp.lt.s32.totalorder (!%p167_p3), %s3019_s15, 0  ;;  %s184_s19 = ssub.s32 (!%p167_p3), 0, %s3019_s15 }
   0x7   : > { %170 = sbr.rel (%p167_p3) target bundleno = 884 (0x374), region = 36  ;;  %s2163_s20 = smin.u32 (!%p167_p3), %s3019_s15, %s184_s19 }
   0x8   : > { %p197_p5 = scmp.eq.s32.totalorder (!%p167_p3), %s3019_s15, 0  ;;  %s186_s21 = sand.u32 (!%p167_p3), 1, %s2163_s20  }
   0x9   : > { %s187_s22 = ssub.s32 (!%p167_p3), 0, %s186_s21 }
   0xc   : > { %s3601_s22 = smov (!%p183_p4, %s187_s22), %s186_s21  ;;  %205 = sbr.rel (!%p197_p5) target bundleno = 21 (0x15), region = 40  ;;  %v206_v0 = vld [vmem:[%s3592_s1] sm:$0xff] (%p197_p5)   ;;  %v208_v1 = vld [vmem:[%s3592_s1 + $0x8] sm:$0xff] (%p197_p5)   ;;  %v210_v2 = vld [vmem:[%s3592_s1 + $0x10] sm:$0xff] (%p197_p5)  }
   0xd   : > { %p2165_p6 = scmp.lt.s32.totalorder %s3601_s22, 0  ;;  %s193_s23 = sadd.s32 2, %s3601_s22  ;;  %238 = vst [vmem:[#allocation2] sm:$0xff] (%p197_p5), %v206_v0   ;;  %240 = vst [vmem:[#allocation2 + $0x8] sm:$0xff] (%p197_p5), %v208_v1   ;;  %v212_v3 = vld [vmem:[%s3592_s1 + $0x18] sm:$0xff] (%p197_p5)   ;;  %v214_v4 = vld [vmem:[%s3592_s1 + $0x20] sm:$0xff] (%p197_p5)  }
   0xe   : > { %242 = vst [vmem:[#allocation2 + $0x10] sm:$0xff] (%p197_p5), %v210_v2   ;;  %v216_v5 = vld [vmem:[%s3592_s1 + $0x28] sm:$0xff] (%p197_p5)   ;;  %244 = vst [vmem:[#allocation2 + $0x18] sm:$0xff] (%p197_p5), %v212_v3   ;;  %v218_v6 = vld [vmem:[%s3592_s1 + $0x30] sm:$0xff] (%p197_p5)  }
   0xf   : > { %s3603_s23 = smov (!%p2165_p6, %s193_s23), %s3601_s22  ;;  %246 = vst [vmem:[#allocation2 + $0x20] sm:$0xff] (%p197_p5), %v214_v4   ;;  %248 = vst [vmem:[#allocation2 + $0x28] sm:$0xff] (%p197_p5), %v216_v5   ;;  %v220_v7 = vld [vmem:[%s3592_s1 + $0x38] sm:$0xff] (%p197_p5)   ;;  %v222_v8 = vld [vmem:[%s3592_s1 + $0x40] sm:$0xff] (%p197_p5)  }
  0x10   : > { %s195_s24 = ssub.s32 1, %s3603_s23  ;;  %250 = vst [vmem:[#allocation2 + $0x30] sm:$0xff] (%p197_p5), %v218_v6   ;;  %252 = vst [vmem:[#allocation2 + $0x38] sm:$0xff] (%p197_p5), %v220_v7   ;;  %v224_v9 = vld [vmem:[%s3592_s1 + $0x48] sm:$0xff] (%p197_p5)   ;;  %v226_v10 = vld [vmem:[%s3592_s1 + $0x50] sm:$0xff] (%p197_p5)  }
  0x11   : > { %254 = vst [vmem:[#allocation2 + $0x40] sm:$0xff] %v222_v8   ;;  %v228_v11 = vld [vmem:[%s3592_s1 + $0x58] sm:$0xff]   ;;  %256 = vst [vmem:[#allocation2 + $0x48] sm:$0xff] %v224_v9   ;;  %v230_v12 = vld [vmem:[%s3592_s1 + $0x60] sm:$0xff]  }
  0x12   : > { %258 = vst [vmem:[#allocation2 + $0x50] sm:$0xff] %v226_v10   ;;  %260 = vst [vmem:[#allocation2 + $0x58] sm:$0xff] %v228_v11   ;;  %v232_v13 = vld [vmem:[%s3592_s1 + $0x68] sm:$0xff]   ;;  %v234_v14 = vld [vmem:[%s3592_s1 + $0x70] sm:$0xff]  }
  0x13   : > { %262 = vst [vmem:[#allocation2 + $0x60] sm:$0xff] %v230_v12   ;;  %264 = vst [vmem:[#allocation2 + $0x68] sm:$0xff] %v232_v13   ;;  %v236_v15 = vld [vmem:[%s3592_s1 + $0x78] sm:$0xff]  }
  0x14   : > { %266 = vst [vmem:[#allocation2 + $0x70] sm:$0xff] %v234_v14   ;;  %268 = vst [vmem:[#allocation2 + $0x78] sm:$0xff] %v236_v15  }
  0x15 PF: > { %s2341_s11 = sshll.u32 %s3603_s23, 7  ;;  %v2927_v16 = vld [vmem:[%s3591_s0 + $0x4] ss:$8 sps:$4 sm:$0xff]   ;;  %v2925_v34 = vld [vmem:[%s3591_s0] ss:$8 sps:$4 sm:$0xff]   ;;  %s2252_s29 = sshll.u32 %s3019_s15, 6 }
  0x16   : > { %s3133_s14 = scalar_lea.vmem [#allocation2], %s2341_s11  ;;  %697 = vmatprep.mubr.bf16.mxu0 %v2927_v16  ;;  %v2957_v33 = vld [vmem:[%s3591_s0 + $0xc4] ss:$8 sps:$4 sm:$0xff]   ;;  %v2928_v35 = vld [vmem:[%s3591_s0 + $0x14] ss:$8 sps:$4 sm:$0xff]   ;;  %s3170_s8 = scalar_lea.vmem %s3593_s2, %s2252_s29 }
  0x17   : > { %v2955_v36 = vld [vmem:[%s3591_s0 + $0xc0] ss:$8 sps:$4 sm:$0xff]   ;;  %793 = vmatprep.mubr.bf16.mxu1 %v2957_v33  ;;  %v2961_v37 = vld [vmem:[%s3591_s0 + $0xd4] ss:$8 sps:$4 sm:$0xff]   ;;  %v2930_v38 = vld [vmem:[%s3591_s0 + $0x10] ss:$8 sps:$4 sm:$0xff]  }
  0x18   : > { %v2963_v39 = vld [vmem:[%s3591_s0 + $0xd0] ss:$8 sps:$4 sm:$0xff]   ;;  %v2931_v41 = vld [vmem:[%s3591_s0 + $0x24] ss:$8 sps:$4 sm:$0xff]   ;;  %v2933_v46 = vld [vmem:[%s3591_s0 + $0x20] ss:$8 sps:$4 sm:$0xff]  }
  0x19   : > { %v2973_v40 = vld [vmem:[%s3170_s8 + $0x78] sm:$0xff]   ;;  %v2974_v42 = vld [vmem:[%s3170_s8 + $0x70] sm:$0xff]   ;;  %v2967_v43 = vld [vmem:[%s3591_s0 + $0xe4] ss:$8 sps:$4 sm:$0xff]   ;;  %s2374_s29 = sshll.u32 %s195_s24, 7  ;;  %p2277_p7 = scmp.ne.s32.totalorder %s3019_s15, 0 }
  0x1a   : > { %v2975_v44 = vld [vmem:[%s3170_s8 + $0x68] sm:$0xff]   ;;  %v2976_v45 = vld [vmem:[%s3170_s8 + $0x60] sm:$0xff]   ;;  %v2934_v48 = vld [vmem:[%s3591_s0 + $0x34] ss:$8 sps:$4 sm:$0xff]  }
  0x1b   : > { %v2909_v17 = vld [vmem:[%s3133_s14 + $0x78] sm:$0xff]   ;;  %v2911_v19 = vld [vmem:[%s3133_s14 + $0x70] sm:$0xff]   ;;  %v2913_v21 = vld [vmem:[%s3133_s14 + $0x68] sm:$0xff]  }
  0x1c   : > { %v2910_v18 = vld [vmem:[%s3133_s14 + $0x38] sm:$0xff]   ;;  %2597 = vmatprep.subr.bf16.mxu0 %v2909_v17  ;;  %2853 = vmatprep.subr.bf16.mxu1 %v2909_v17  ;;  %v2912_v20 = vld [vmem:[%s3133_s14 + $0x30] sm:$0xff]   ;;  %v2914_v22 = vld [vmem:[%s3133_s14 + $0x28] sm:$0xff]  }
  0x1d   : > { %2598 = vmatpush3.bf16.msra.mxu0 %v2910_v18  ;;  %2861 = vmatpush3.bf16.msra.mxu1 %v2910_v18  ;;  %v2915_v23 = vld [vmem:[%s3133_s14 + $0x60] sm:$0xff]   ;;  %v2917_v25 = vld [vmem:[%s3133_s14 + $0x58] sm:$0xff]   ;;  %v2919_v27 = vld [vmem:[%s3133_s14 + $0x50] sm:$0xff]  }
  0x1e   : > { %2599 = vmatprep.subr.bf16.mxu0 %v2911_v19  ;;  %2854 = vmatprep.subr.bf16.mxu1 %v2911_v19  ;;  %v2916_v24 = vld [vmem:[%s3133_s14 + $0x20] sm:$0xff]   ;;  %v2918_v26 = vld [vmem:[%s3133_s14 + $0x18] sm:$0xff]   ;;  %v2920_v28 = vld [vmem:[%s3133_s14 + $0x10] sm:$0xff]  }
  0x1f   : > { %v2921_v29 = vld [vmem:[%s3133_s14 + $0x48] sm:$0xff]   ;;  %v2923_v31 = vld [vmem:[%s3133_s14 + $0x40] sm:$0xff]   ;;  %v2970_v49 = vld [vmem:[%s3591_s0 + $0xf4] ss:$8 sps:$4 sm:$0xff]  }
  0x20   : > { %v2922_v30 = vld [vmem:[%s3133_s14 + $0x8] sm:$0xff]   ;;  %v2924_v32 = vld [vmem:[%s3133_s14] sm:$0xff]   ;;  %v2936_v50 = vld [vmem:[%s3591_s0 + $0x30] ss:$8 sps:$4 sm:$0xff]  }
  0x21   : > { %2600 = vmatpush3.bf16.msra.mxu0 %v2912_v20  ;;  %2862 = vmatpush3.bf16.msra.mxu1 %v2912_v20  ;;  %v2969_v47 = vld [vmem:[%s3591_s0 + $0xe0] ss:$8 sps:$4 sm:$0xff]   ;;  %v2972_v51 = vld [vmem:[%s3591_s0 + $0xf0] ss:$8 sps:$4 sm:$0xff]   ;;  %v2937_v52 = vld [vmem:[%s3591_s0 + $0x44] ss:$8 sps:$4 sm:$0xff]  }
  0x22   : > { %2601 = vmatprep.subr.bf16.mxu0 %v2913_v21  ;;  %2855 = vmatprep.subr.bf16.mxu1 %v2913_v21  ;;  %v2939_v53 = vld [vmem:[%s3591_s0 + $0x40] ss:$8 sps:$4 sm:$0xff]   ;;  %v2940_v54 = vld [vmem:[%s3591_s0 + $0x54] ss:$8 sps:$4 sm:$0xff]   ;;  %v2942_v55 = vld [vmem:[%s3591_s0 + $0x50] ss:$8 sps:$4 sm:$0xff]  }
  0x23   : > { %v2943_v56 = vld [vmem:[%s3591_s0 + $0x64] ss:$8 sps:$4 sm:$0xff]   ;;  %v2945_v57 = vld [vmem:[%s3591_s0 + $0x60] ss:$8 sps:$4 sm:$0xff]   ;;  %v2946_v58 = vld [vmem:[%s3591_s0 + $0x74] ss:$8 sps:$4 sm:$0xff]  }
  0x24   : > { %v2948_v59 = vld [vmem:[%s3591_s0 + $0x70] ss:$8 sps:$4 sm:$0xff]   ;;  %v2949_v60 = vld [vmem:[%s3591_s0 + $0x84] ss:$8 sps:$4 sm:$0xff]   ;;  %v2951_v61 = vld [vmem:[%s3591_s0 + $0x80] ss:$8 sps:$4 sm:$0xff]  }
  0x25   : > { %2602 = vmatpush3.bf16.msra.mxu0 %v2914_v22  ;;  %2863 = vmatpush3.bf16.msra.mxu1 %v2914_v22  ;;  %v2952_v62 = vld [vmem:[%s3591_s0 + $0x94] ss:$8 sps:$4 sm:$0xff]   ;;  %v2954_v0 = vld [vmem:[%s3591_s0 + $0x90] ss:$8 sps:$4 sm:$0xff]   ;;  %v2958_v1 = vld [vmem:[%s3591_s0 + $0xa4] ss:$8 sps:$4 sm:$0xff]  }
  0x26   : > { %2603 = vmatprep.subr.bf16.mxu0 %v2915_v23  ;;  %2856 = vmatprep.subr.bf16.mxu1 %v2915_v23  ;;  %v2977_v63 = vld [vmem:[%s3170_s8 + $0x58] sm:$0xff]   ;;  %v2978_v2 = vld [vmem:[%s3170_s8 + $0x50] sm:$0xff]   ;;  %v2979_v3 = vld [vmem:[%s3170_s8 + $0x48] sm:$0xff]  }
  0x27   : > { %v2960_v4 = vld [vmem:[%s3591_s0 + $0xa0] ss:$8 sps:$4 sm:$0xff]   ;;  %v2964_v5 = vld [vmem:[%s3591_s0 + $0xb4] ss:$8 sps:$4 sm:$0xff]   ;;  %v2966_v7 = vld [vmem:[%s3591_s0 + $0xb0] ss:$8 sps:$4 sm:$0xff]  }
  0x28   : > { %v2980_v6 = vld [vmem:[%s3170_s8 + $0x40] sm:$0xff]   ;;  %s3262_s8 = scalar_lea.vmem [#allocation2], %s2374_s29 }
  0x29   : > { %2604 = vmatpush3.bf16.msra.mxu0 %v2916_v24  ;;  %2864 = vmatpush3.bf16.msra.mxu1 %v2916_v24 }
  0x2a   : > { %2605 = vmatprep.subr.bf16.mxu0 %v2917_v25  ;;  %2857 = vmatprep.subr.bf16.mxu1 %v2917_v25 }
  0x2d   : > { %2606 = vmatpush3.bf16.msra.mxu0 %v2918_v26  ;;  %2865 = vmatpush3.bf16.msra.mxu1 %v2918_v26 }
  0x2e   : > { %2607 = vmatprep.subr.bf16.mxu0 %v2919_v27  ;;  %2858 = vmatprep.subr.bf16.mxu1 %v2919_v27 }
  0x31   : > { %2608 = vmatpush3.bf16.msra.mxu0 %v2920_v28  ;;  %2866 = vmatpush3.bf16.msra.mxu1 %v2920_v28 }
  0x32   : > { %2609 = vmatprep.subr.bf16.mxu0 %v2921_v29  ;;  %2859 = vmatprep.subr.bf16.mxu1 %v2921_v29 }
  0x35   : > { %2610 = vmatpush3.bf16.msra.mxu0 %v2922_v30  ;;  %2867 = vmatpush3.bf16.msra.mxu1 %v2922_v30 }
  0x36   : > { %2611 = vmatprep.subr.bf16.mxu0 %v2923_v31  ;;  %2860 = vmatprep.subr.bf16.mxu1 %v2923_v31 }
  0x39   : > { %2612 = vmatpush3.bf16.msra.mxu0 %v2924_v32  ;;  %2868 = vmatpush3.bf16.msra.mxu1 %v2924_v32 }
  0x3a   : > { %2757 = vmatprep.subr.bf16.mxu1 %v2973_v40 }
  0x3c   : > { %698 = vmatmul.mubr.bf16.vlgmr.msra.gmra.mxu0 %v2925_v34  ;;  %794 = vmatmul.mubr.bf16.vlgmr.msra.gmra.mxu1 %v2955_v36 }
  0x3d   : > { %705 = vmatprep.mubr.bf16.mxu0 %v2928_v35  ;;  %801 = vmatprep.mubr.bf16.mxu1 %v2961_v37 }
  0x3e   : > { %2758 = vmatpush3.bf16.msra.mxu1 %v2973_v40 }
  0x3f   : > { %2759 = vmatprep.subr.bf16.mxu1 %v2974_v42 }
  0x42   : > { %2760 = vmatpush3.bf16.msra.mxu1 %v2974_v42 }
  0x43   : > { %2761 = vmatprep.subr.bf16.mxu1 %v2975_v44 }
  0x44   : > { %706 = vmatmul.mubr.bf16.gmra.mxu0 %v2930_v38  ;;  %802 = vmatmul.mubr.bf16.gmra.mxu1 %v2963_v39 }
  0x45   : > { %713 = vmatprep.mubr.bf16.mxu0 %v2931_v41  ;;  %809 = vmatprep.mubr.bf16.mxu1 %v2967_v43 }
  0x46   : > { %2762 = vmatpush3.bf16.msra.mxu1 %v2975_v44 }
  0x47   : > { %2763 = vmatprep.subr.bf16.mxu1 %v2976_v45 }
  0x4a   : > { %2764 = vmatpush3.bf16.msra.mxu1 %v2976_v45 }
  0x4b   : > { %2765 = vmatprep.subr.bf16.mxu1 %v2977_v63 }
  0x4c   : > { %714 = vmatmul.mubr.bf16.gmra.mxu0 %v2933_v46  ;;  %810 = vmatmul.mubr.bf16.gmra.mxu1 %v2969_v47 }
  0x4d   : > { %721 = vmatprep.mubr.bf16.mxu0 %v2934_v48  ;;  %817 = vmatprep.mubr.bf16.mxu1 %v2970_v49 }
  0x4e   : > { %2766 = vmatpush3.bf16.msra.mxu1 %v2977_v63 }
  0x4f   : > { %2767 = vmatprep.subr.bf16.mxu1 %v2978_v2 }
  0x52   : > { %2768 = vmatpush3.bf16.msra.mxu1 %v2978_v2 }
  0x53   : > { %2769 = vmatprep.subr.bf16.mxu1 %v2979_v3 }
  0x54   : > { %722 = vmatmul.mubr.bf16.gmra.mxu0 %v2936_v50  ;;  %818 = vmatmul.mubr.bf16.gmra.mxu1 %v2972_v51 }
  0x55   : > { %729 = vmatprep.mubr.bf16.mxu0 %v2937_v52 }
  0x56   : > { %2770 = vmatpush3.bf16.msra.mxu1 %v2979_v3 }
  0x57   : > { %2771 = vmatprep.subr.bf16.mxu1 %v2980_v6 }
  0x5a   : > { %2772 = vmatpush3.bf16.msra.mxu1 %v2980_v6 }
  0x5c   : > { %730 = vmatmul.mubr.bf16.gmra.mxu0 %v2939_v53 }
  0x5d   : > { %737 = vmatprep.mubr.bf16.mxu0 %v2940_v54 }
  0x64   : > { %738 = vmatmul.mubr.bf16.gmra.mxu0 %v2942_v55 }
  0x65   : > { %745 = vmatprep.mubr.bf16.mxu0 %v2943_v56 }
  0x6c   : > { %746 = vmatmul.mubr.bf16.gmra.mxu0 %v2945_v57 }
  0x6d   : > { %753 = vmatprep.mubr.bf16.mxu0 %v2946_v58 }
  0x74   : > { %754 = vmatmul.mubr.bf16.gmra.mxu0 %v2948_v59 }
  0x75   : > { %761 = vmatprep.mubr.bf16.mxu0 %v2949_v60 }
  0x7c   : > { %762 = vmatmul.mubr.bf16.gmra.mxu0 %v2951_v61 }
  0x7d   : > { %769 = vmatprep.mubr.bf16.mxu0 %v2952_v62 }
  0x84   : > { %770 = vmatmul.mubr.bf16.gmra.mxu0 %v2954_v0 }
  0x85   : > { %777 = vmatprep.mubr.bf16.mxu0 %v2958_v1 }
  0x8c   : > { %778 = vmatmul.mubr.bf16.gmra.mxu0 %v2960_v4 }
  0x8d   : > { %785 = vmatprep.mubr.bf16.mxu0 %v2964_v5 }
  0x94   : > { %786 = vmatmul.mubr.bf16.gmra.mxu0 %v2966_v7 }
  0xfc   : > { %v2613_v8 = vpop.f32.mrf.mxu0  ;;  %v2685_v9 = vpop.f32.mrf.mxu1 }
  0xfe   : > { %v2614_v10 = vpop.f32.mrf.mxu0  ;;  %v2686_v11 = vpop.f32.mrf.mxu1 }
  0xff   : > { %v2687_v14 = vadd.f32 %v2686_v11, %v2685_v9  ;;  %v2615_v17 = vadd.f32 %v2614_v10, %v2613_v8 }
 0x100   : > { %v2616_v12 = vpop.f32.mrf.mxu0  ;;  %v2688_v13 = vpop.f32.mrf.mxu1 }
 0x102   : > { %v2617_v15 = vpop.f32.mrf.mxu0  ;;  %v2689_v16 = vpop.f32.mrf.mxu1 }
 0x103   : > { %v2618_v18 = vadd.f32 %v2617_v15, %v2616_v12  ;;  %v2690_v19 = vadd.f32 %v2689_v16, %v2688_v13 }
 0x104   : > { %v2619_v20 = vpop.f32.mrf.mxu0  ;;  %v2691_v21 = vpop.f32.mrf.mxu1 }
 0x105   : > { %v925_v22 = vpack.c.bf16 %v2618_v18, %v2615_v17  ;;  %v3260_v23 = vpack.c.bf16 %v2690_v19, %v2687_v14 }
 0x106   : > { %v2620_v24 = vpop.f32.mrf.mxu0  ;;  %v2692_v25 = vpop.f32.mrf.mxu1 }
 0x107   : > { %2411 = vst [vmem:[%s3262_s8] sm:$0xff] %v925_v22   ;;  %2773 = vmatprep.mubr.bf16.mxu1 %v925_v22  ;;  %2578 = vst [vmem:[%s3262_s8 + $0x60] sm:$0xff] %v3260_v23   ;;  %v2693_v28 = vadd.f32 %v2692_v25, %v2691_v21  ;;  %v2621_v31 = vadd.f32 %v2620_v24, %v2619_v20 }
 0x108   : > { %v2622_v26 = vpop.f32.mrf.mxu0  ;;  %v2694_v27 = vpop.f32.mrf.mxu1 }
 0x10a   : > { %v2623_v29 = vpop.f32.mrf.mxu0  ;;  %v2695_v30 = vpop.f32.mrf.mxu1 }
 0x10b   : > { %v2624_v32 = vadd.f32 %v2623_v29, %v2622_v26  ;;  %v2696_v33 = vadd.f32 %v2695_v30, %v2694_v27 }
 0x10c   : > { %v2625_v34 = vpop.f32.mrf.mxu0  ;;  %v2697_v35 = vpop.f32.mrf.mxu1 }
 0x10d   : > { %v926_v36 = vpack.c.bf16 %v2624_v32, %v2621_v31  ;;  %v3267_v37 = vpack.c.bf16 %v2696_v33, %v2693_v28 }
 0x10e   : > { %v2626_v38 = vpop.f32.mrf.mxu0  ;;  %v2698_v39 = vpop.f32.mrf.mxu1 }
 0x10f   : > { %2567 = vst [vmem:[%s3262_s8 + $0x8] sm:$0xff] %v926_v36   ;;  %2774 = vmatmul.mubr.bf16.vlgmr.msra.gmra.mxu1 %v926_v36  ;;  %2579 = vst [vmem:[%s3262_s8 + $0x68] sm:$0xff] %v3267_v37   ;;  %v2699_v42 = vadd.f32 %v2698_v39, %v2697_v35  ;;  %v2627_v45 = vadd.f32 %v2626_v38, %v2625_v34 }
 0x110   : > { %v2628_v40 = vpop.f32.mrf.mxu0  ;;  %v2700_v41 = vpop.f32.mrf.mxu1 }
 0x112   : > { %v2629_v43 = vpop.f32.mrf.mxu0  ;;  %v2701_v44 = vpop.f32.mrf.mxu1 }
 0x113   : > { %v2630_v46 = vadd.f32 %v2629_v43, %v2628_v40  ;;  %v2702_v47 = vadd.f32 %v2701_v44, %v2700_v41 }
 0x114   : > { %v2631_v48 = vpop.f32.mrf.mxu0  ;;  %v2703_v49 = vpop.f32.mrf.mxu1 }
 0x115   : > { %v927_v50 = vpack.c.bf16 %v2630_v46, %v2627_v45  ;;  %v3272_v51 = vpack.c.bf16 %v2702_v47, %v2699_v42 }
 0x116   : > { %v2632_v52 = vpop.f32.mrf.mxu0  ;;  %v2704_v53 = vpop.f32.mrf.mxu1 }
 0x117   : > { %2568 = vst [vmem:[%s3262_s8 + $0x10] sm:$0xff] %v927_v50   ;;  %2777 = vmatprep.mubr.bf16.mxu1 %v927_v50  ;;  %2580 = vst [vmem:[%s3262_s8 + $0x70] sm:$0xff] %v3272_v51   ;;  %v2705_v56 = vadd.f32 %v2704_v53, %v2703_v49  ;;  %v2633_v59 = vadd.f32 %v2632_v52, %v2631_v48 }
 0x118   : > { %v2634_v54 = vpop.f32.mrf.mxu0  ;;  %v2706_v55 = vpop.f32.mrf.mxu1 }
 0x11a   : > { %v2635_v57 = vpop.f32.mrf.mxu0  ;;  %v2707_v58 = vpop.f32.mrf.mxu1 }
 0x11b   : > { %v2636_v60 = vadd.f32 %v2635_v57, %v2634_v54  ;;  %v2708_v61 = vadd.f32 %v2707_v58, %v2706_v55 }
 0x11c   : > { %v2637_v62 = vpop.f32.mrf.mxu0 }
 0x11d   : > { %v928_v63 = vpack.c.bf16 %v2636_v60, %v2633_v59  ;;  %v3277_v0 = vpack.c.bf16 %v2708_v61, %v2705_v56 }
 0x11e   : > { %v2638_v1 = vpop.f32.mrf.mxu0 }
 0x11f   : > { %2569 = vst [vmem:[%s3262_s8 + $0x18] sm:$0xff] %v928_v63   ;;  %2778 = vmatmul.mubr.bf16.gmra.mxu1 %v928_v63  ;;  %2581 = vst [vmem:[%s3262_s8 + $0x78] sm:$0xff] %v3277_v0   ;;  %v2639_v4 = vadd.f32 %v2638_v1, %v2637_v62 }
 0x120   : > { %v2640_v2 = vpop.f32.mrf.mxu0 }
 0x122   : > { %v2641_v3 = vpop.f32.mrf.mxu0 }
 0x123   : > { %v2642_v5 = vadd.f32 %v2641_v3, %v2640_v2 }
 0x124   : > { %v2643_v6 = vpop.f32.mrf.mxu0 }
 0x125   : > { %v929_v7 = vpack.c.bf16 %v2642_v5, %v2639_v4 }
 0x126   : > { %v2644_v8 = vpop.f32.mrf.mxu0 }
 0x127   : > { %2570 = vst [vmem:[%s3262_s8 + $0x20] sm:$0xff] %v929_v7   ;;  %2781 = vmatprep.mubr.bf16.mxu1 %v929_v7  ;;  %v2645_v11 = vadd.f32 %v2644_v8, %v2643_v6 }
 0x128   : > { %v2646_v9 = vpop.f32.mrf.mxu0 }
 0x12a   : > { %v2647_v10 = vpop.f32.mrf.mxu0 }
 0x12b   : > { %v2648_v12 = vadd.f32 %v2647_v10, %v2646_v9 }
 0x12c   : > { %v2649_v13 = vpop.f32.mrf.mxu0 }
 0x12d   : > { %v930_v14 = vpack.c.bf16 %v2648_v12, %v2645_v11 }
 0x12e   : > { %v2650_v15 = vpop.f32.mrf.mxu0 }
 0x12f   : > { %2571 = vst [vmem:[%s3262_s8 + $0x28] sm:$0xff] %v930_v14   ;;  %2782 = vmatmul.mubr.bf16.gmra.mxu1 %v930_v14  ;;  %v2651_v18 = vadd.f32 %v2650_v15, %v2649_v13 }
 0x130   : > { %v2652_v16 = vpop.f32.mrf.mxu0 }
 0x132   : > { %v2653_v17 = vpop.f32.mrf.mxu0 }
 0x133   : > { %v2654_v19 = vadd.f32 %v2653_v17, %v2652_v16 }
 0x134   : > { %v2655_v20 = vpop.f32.mrf.mxu0 }
 0x135   : > { %v931_v21 = vpack.c.bf16 %v2654_v19, %v2651_v18 }
 0x136   : > { %v2656_v22 = vpop.f32.mrf.mxu0 }
 0x137   : > { %2572 = vst [vmem:[%s3262_s8 + $0x30] sm:$0xff] %v931_v21   ;;  %2785 = vmatprep.mubr.bf16.mxu1 %v931_v21  ;;  %v2657_v26 = vadd.f32 %v2656_v22, %v2655_v20 }
 0x138   : > { %v2658_v24 = vpop.f32.mrf.mxu0 }
 0x13a   : > { %v2659_v25 = vpop.f32.mrf.mxu0 }
 0x13b   : > { %v2660_v27 = vadd.f32 %v2659_v25, %v2658_v24 }
 0x13c   : > { %v2661_v28 = vpop.f32.mrf.mxu0 }
 0x13d   : > { %v932_v29 = vpack.c.bf16 %v2660_v27, %v2657_v26 }
 0x13e   : > { %v2662_v30 = vpop.f32.mrf.mxu0 }
 0x13f   : > { %2573 = vst [vmem:[%s3262_s8 + $0x38] sm:$0xff] %v932_v29   ;;  %2786 = vmatmul.mubr.bf16.gmra.mxu1 %v932_v29  ;;  %v2663_v33 = vadd.f32 %v2662_v30, %v2661_v28 }
 0x140   : > { %v2664_v31 = vpop.f32.mrf.mxu0 }
 0x142   : > { %v2665_v32 = vpop.f32.mrf.mxu0 }
 0x143   : > { %v2666_v34 = vadd.f32 %v2665_v32, %v2664_v31 }
 0x144   : > { %v2667_v35 = vpop.f32.mrf.mxu0 }
 0x145   : > { %v933_v36 = vpack.c.bf16 %v2666_v34, %v2663_v33 }
 0x146   : > { %v2668_v38 = vpop.f32.mrf.mxu0 }
 0x147   : > { %2574 = vst [vmem:[%s3262_s8 + $0x40] sm:$0xff] %v933_v36   ;;  %2789 = vmatprep.mubr.bf16.mxu1 %v933_v36  ;;  %v2669_v41 = vadd.f32 %v2668_v38, %v2667_v35 }
 0x148   : > { %v2670_v39 = vpop.f32.mrf.mxu0 }
 0x14a   : > { %v2671_v40 = vpop.f32.mrf.mxu0 }
 0x14b   : > { %v2672_v42 = vadd.f32 %v2671_v40, %v2670_v39 }
 0x14c   : > { %v2673_v43 = vpop.f32.mrf.mxu0 }
 0x14d   : > { %v934_v44 = vpack.c.bf16 %v2672_v42, %v2669_v41 }
 0x14e   : > { %v2674_v45 = vpop.f32.mrf.mxu0 }
 0x14f   : > { %2575 = vst [vmem:[%s3262_s8 + $0x48] sm:$0xff] %v934_v44   ;;  %2790 = vmatmul.mubr.bf16.gmra.mxu1 %v934_v44  ;;  %v2675_v48 = vadd.f32 %v2674_v45, %v2673_v43 }
 0x150   : > { %v2676_v46 = vpop.f32.mrf.mxu0 }
 0x152   : > { %v2677_v47 = vpop.f32.mrf.mxu0 }
 0x153   : > { %v2678_v49 = vadd.f32 %v2677_v47, %v2676_v46 }
 0x154   : > { %v2679_v50 = vpop.f32.mrf.mxu0 }
 0x155   : > { %v935_v52 = vpack.c.bf16 %v2678_v49, %v2675_v48 }
 0x156   : > { %v2680_v53 = vpop.f32.mrf.mxu0 }
 0x157   : > { %2576 = vst [vmem:[%s3262_s8 + $0x50] sm:$0xff] %v935_v52   ;;  %2793 = vmatprep.mubr.bf16.mxu1 %v935_v52  ;;  %v2681_v56 = vadd.f32 %v2680_v53, %v2679_v50 }
 0x158   : > { %v2682_v54 = vpop.f32.mrf.mxu0 }
 0x15a   : > { %v2683_v55 = vpop.f32.mrf.mxu0 }
 0x15b   : > { %v2684_v57 = vadd.f32 %v2683_v55, %v2682_v54 }
 0x15d   : > { %v936_v58 = vpack.c.bf16 %v2684_v57, %v2681_v56 }
 0x15f   : > { %2577 = vst [vmem:[%s3262_s8 + $0x58] sm:$0xff] %v936_v58   ;;  %2794 = vmatmul.mubr.bf16.gmra.mxu1 %v936_v58 }
 0x160   : > { %2797 = vmatprep.mubr.bf16.mxu1 %v3260_v23 }
 0x167   : > { %2798 = vmatmul.mubr.bf16.gmra.mxu1 %v3267_v37 }
 0x168   : > { %2801 = vmatprep.mubr.bf16.mxu1 %v3272_v51 }
 0x16f   : > { %2802 = vmatmul.mubr.bf16.gmra.mxu1 %v3277_v0 }
 0x1cf   : > { %v3294_v59 = vpop.f32.mrf.mxu1 }
 0x1d1   : > { %v3296_v60 = vpop.f32.mrf.mxu1 }
 0x1d3   : > { %v3298_v61 = vpop.f32.mrf.mxu1 }
 0x1d5   : > { %v3300_v62 = vpop.f32.mrf.mxu1 }
 0x1df   : > { %v3302_v63 = vpop.f32.mrf.mxu1 }
 0x1e1   : > { %v3304_v1 = vpop.f32.mrf.mxu1 }
 0x1e3   : > { %v3306_v2 = vpop.f32.mrf.mxu1 }
 0x1e5   : > { %v3308_v23 = vpop.f32.mrf.mxu1 }
 0x1ef   : > { %v3310_v37 = vpop.f32.mrf.mxu1 }
 0x1f1   : > { %v3312_v51 = vpop.f32.mrf.mxu1 }
 0x1f3   : > { %v3314_v0 = vpop.f32.mrf.mxu1 }
 0x1f5   : > { %v3316_v3 = vpop.f32.mrf.mxu1 }
 0x1ff   : > { %v3318_v4 = vpop.f32.mrf.mxu1 }
 0x201   : > { %v3320_v5 = vpop.f32.mrf.mxu1 }
 0x203   : > { %v3322_v6 = vpop.f32.mrf.mxu1 }
 0x205   : > { %v3324_v7 = vpop.f32.mrf.mxu1 }
 0x20f   : > { %v3326_v8 = vpop.f32.mrf.mxu1 }
 0x211   : > { %v3328_v9 = vpop.f32.mrf.mxu1 }
 0x213   : > { %v3330_v10 = vpop.f32.mrf.mxu1 }
 0x215   : > { %v3332_v11 = vpop.f32.mrf.mxu1 }
 0x21f   : > { %v3334_v12 = vpop.f32.mrf.mxu1 }
 0x221   : > { %v3336_v13 = vpop.f32.mrf.mxu1 }
 0x223   : > { %v3338_v14 = vpop.f32.mrf.mxu1 }
 0x225   : > { %v3340_v15 = vpop.f32.mrf.mxu1 }
 0x227   : > { %v3342_v16 = vpop.f32.mrf.mxu1 }
 0x229   : > { %v3344_v17 = vpop.f32.mrf.mxu1 }
 0x22b   : > { %v3346_v18 = vpop.f32.mrf.mxu1 }
 0x22d   : > { %v3348_v19 = vpop.f32.mrf.mxu1 }
 0x22f   : > { %v3350_v20 = vpop.f32.mrf.mxu1 }
 0x231   : > { %v3352_v21 = vpop.f32.mrf.mxu1  ;;  %1320 = sbr.rel (%p2277_p7) target bundleno = 825 (0x339), region = 52 }
 0x233   : > { %v3354_v22 = vpop.f32.mrf.mxu1 }
 0x235   : > { %v3356_v24 = vpop.f32.mrf.mxu1 }
 0x236   : > { %v2981_v25 = vld [vmem:[%s3593_s2 + $0x38] sm:$0xff]   ;;  %v2982_v26 = vld [vmem:[%s3593_s2 + $0x30] sm:$0xff]   ;;  %v2983_v27 = vld [vmem:[%s3593_s2 + $0x28] sm:$0xff]  }
 0x237   : > { %2805 = vmatprep.subr.bf16.mxu0 %v2981_v25  ;;  %2869 = vmatprep.subr.bf16.mxu1 %v2981_v25  ;;  %v2984_v28 = vld [vmem:[%s3593_s2 + $0x20] sm:$0xff]   ;;  %v2985_v31 = vld [vmem:[%s3593_s2 + $0x18] sm:$0xff]   ;;  %v2986_v32 = vld [vmem:[%s3593_s2 + $0x10] sm:$0xff]  }
 0x238   : > { %2806 = vmatpush3.bf16.msra.mxu0 %v2981_v25  ;;  %2877 = vmatpush3.bf16.msra.mxu1 %v2981_v25  ;;  %v2989_v29 = vld [vmem:[%s3592_s1] sm:$0xff]   ;;  %v2987_v33 = vld [vmem:[%s3593_s2 + $0x8] sm:$0xff]   ;;  %v2993_v38 = vld [vmem:[%s3592_s1 + $0x10] sm:$0xff]  }
 0x239   : > { %2807 = vmatprep.subr.bf16.mxu0 %v2982_v26  ;;  %2870 = vmatprep.subr.bf16.mxu1 %v2982_v26  ;;  %v2990_v30 = vld [vmem:[%s3592_s1 + $0x40] sm:$0xff]   ;;  %v2991_v35 = vld [vmem:[%s3592_s1 + $0x8] sm:$0xff]   ;;  %v2994_v39 = vld [vmem:[%s3592_s1 + $0x50] sm:$0xff]  }
 0x23a   : > { %2821 = vmatprep.mubr.bf16.mxu0 %v2989_v29  ;;  %2837 = vmatprep.mubr.bf16.mxu1 %v2990_v30  ;;  %v2988_v34 = vld [vmem:[%s3593_s2] sm:$0xff]   ;;  %v2992_v36 = vld [vmem:[%s3592_s1 + $0x48] sm:$0xff]   ;;  %v2995_v40 = vld [vmem:[%s3592_s1 + $0x18] sm:$0xff]  }
 0x23b   : > { %v2996_v41 = vld [vmem:[%s3592_s1 + $0x58] sm:$0xff]   ;;  %v2997_v42 = vld [vmem:[%s3592_s1 + $0x20] sm:$0xff]   ;;  %v2999_v44 = vld [vmem:[%s3592_s1 + $0x28] sm:$0xff]  }
 0x23c   : > { %2808 = vmatpush3.bf16.msra.mxu0 %v2982_v26  ;;  %2878 = vmatpush3.bf16.msra.mxu1 %v2982_v26  ;;  %v2998_v43 = vld [vmem:[%s3592_s1 + $0x60] sm:$0xff]   ;;  %v3000_v45 = vld [vmem:[%s3592_s1 + $0x68] sm:$0xff]   ;;  %v3001_v46 = vld [vmem:[%s3592_s1 + $0x30] sm:$0xff]  }
 0x23d   : > { %2809 = vmatprep.subr.bf16.mxu0 %v2983_v27  ;;  %2871 = vmatprep.subr.bf16.mxu1 %v2983_v27  ;;  %v3002_v47 = vld [vmem:[%s3592_s1 + $0x70] sm:$0xff]   ;;  %v3003_v48 = vld [vmem:[%s3592_s1 + $0x38] sm:$0xff]  }
 0x23e   : > { %v3004_v49 = vld [vmem:[%s3592_s1 + $0x78] sm:$0xff]  }
 0x240   : > { %2810 = vmatpush3.bf16.msra.mxu0 %v2983_v27  ;;  %2879 = vmatpush3.bf16.msra.mxu1 %v2983_v27 }
 0x241   : > { %2811 = vmatprep.subr.bf16.mxu0 %v2984_v28  ;;  %2872 = vmatprep.subr.bf16.mxu1 %v2984_v28 }
 0x244   : > { %2812 = vmatpush3.bf16.msra.mxu0 %v2984_v28  ;;  %2880 = vmatpush3.bf16.msra.mxu1 %v2984_v28 }
 0x245   : > { %2813 = vmatprep.subr.bf16.mxu0 %v2985_v31  ;;  %2873 = vmatprep.subr.bf16.mxu1 %v2985_v31 }
 0x248   : > { %2814 = vmatpush3.bf16.msra.mxu0 %v2985_v31  ;;  %2881 = vmatpush3.bf16.msra.mxu1 %v2985_v31 }
 0x249   : > { %2815 = vmatprep.subr.bf16.mxu0 %v2986_v32  ;;  %2874 = vmatprep.subr.bf16.mxu1 %v2986_v32 }
 0x24c   : > { %2816 = vmatpush3.bf16.msra.mxu0 %v2986_v32  ;;  %2882 = vmatpush3.bf16.msra.mxu1 %v2986_v32 }
 0x24d   : > { %2817 = vmatprep.subr.bf16.mxu0 %v2987_v33  ;;  %2875 = vmatprep.subr.bf16.mxu1 %v2987_v33 }
 0x250   : > { %2818 = vmatpush3.bf16.msra.mxu0 %v2987_v33  ;;  %2883 = vmatpush3.bf16.msra.mxu1 %v2987_v33 }
 0x251   : > { %2819 = vmatprep.subr.bf16.mxu0 %v2988_v34  ;;  %2876 = vmatprep.subr.bf16.mxu1 %v2988_v34 }
 0x254   : > { %2820 = vmatpush3.bf16.msra.mxu0 %v2988_v34  ;;  %2884 = vmatpush3.bf16.msra.mxu1 %v2988_v34 }
 0x257   : > { %2822 = vmatmul.mubr.bf16.vlgmr.msra.gmra.mxu0 %v2991_v35  ;;  %2838 = vmatmul.mubr.bf16.vlgmr.msra.gmra.mxu1 %v2992_v36 }
 0x258   : > { %2825 = vmatprep.mubr.bf16.mxu0 %v2993_v38  ;;  %2841 = vmatprep.mubr.bf16.mxu1 %v2994_v39 }
 0x25f   : > { %2826 = vmatmul.mubr.bf16.gmra.mxu0 %v2995_v40  ;;  %2842 = vmatmul.mubr.bf16.gmra.mxu1 %v2996_v41 }
 0x260   : > { %2829 = vmatprep.mubr.bf16.mxu0 %v2997_v42  ;;  %2845 = vmatprep.mubr.bf16.mxu1 %v2998_v43 }
 0x267   : > { %2830 = vmatmul.mubr.bf16.gmra.mxu0 %v2999_v44  ;;  %2846 = vmatmul.mubr.bf16.gmra.mxu1 %v3000_v45 }
 0x268   : > { %2833 = vmatprep.mubr.bf16.mxu0 %v3001_v46  ;;  %2849 = vmatprep.mubr.bf16.mxu1 %v3002_v47 }
 0x26f   : > { %2834 = vmatmul.mubr.bf16.gmra.mxu0 %v3003_v48  ;;  %2850 = vmatmul.mubr.bf16.gmra.mxu1 %v3004_v49 }
 0x317   : > { %v2823_v50 = vpop.f32.mrf.mxu0  ;;  %v2839_v52 = vpop.f32.mrf.mxu1 }
 0x318   : > { %v1678_v53 = vadd.f32 %v2823_v50, %v3294_v59  ;;  %v1694_v54 = vadd.f32 %v2839_v52, %v3326_v8 }
 0x319   : > { %v1549_v55 = vpop.f32.mrf.mxu0  ;;  %v1613_v56 = vpop.f32.mrf.mxu1 }
 0x31a   : > { %1711 = vst [vmem:[#allocation4 + $0xd8] sm:$0xff] %v1678_v53  ;;  %1727 = vst [vmem:[#allocation4 + $0x40] sm:$0xff] %v1694_v54  ;;  %v1676_v57 = vadd.f32 %v1549_v55, %v3296_v60  ;;  %v1692_v58 = vadd.f32 %v1613_v56, %v3328_v9 }
 0x31b   : > { %v2824_v25 = vpop.f32.mrf.mxu0  ;;  %v2840_v26 = vpop.f32.mrf.mxu1 }
 0x31c   : > { %1709 = vst [vmem:[#allocation4 + $0xb0] sm:$0xff] %v1676_v57  ;;  %1725 = vst [vmem:[#allocation4 + $0x38] sm:$0xff] %v1692_v58  ;;  %v1679_v27 = vadd.f32 %v2824_v25, %v3298_v61  ;;  %v1695_v28 = vadd.f32 %v2840_v26, %v3330_v10 }
 0x31d   : > { %v1552_v29 = vpop.f32.mrf.mxu0  ;;  %v1616_v30 = vpop.f32.mrf.mxu1 }
 0x31e   : > { %1712 = vst [vmem:[#allocation4 + $0x18] sm:$0xff] %v1679_v27  ;;  %1728 = vst [vmem:[#allocation4 + $0xc8] sm:$0xff] %v1695_v28  ;;  %v1677_v31 = vadd.f32 %v1552_v29, %v3300_v62  ;;  %v1693_v32 = vadd.f32 %v1616_v30, %v3332_v11 }
 0x31f   : > { %v2827_v33 = vpop.f32.mrf.mxu0  ;;  %v2843_v34 = vpop.f32.mrf.mxu1 }
 0x320   : > { %1710 = vst [vmem:[#allocation4] sm:$0xff] %v1677_v31  ;;  %1726 = vst [vmem:[#allocation4 + $0x58] sm:$0xff] %v1693_v32  ;;  %v1682_v35 = vadd.f32 %v2827_v33, %v3302_v63  ;;  %v1698_v36 = vadd.f32 %v2843_v34, %v3334_v12 }
 0x321   : > { %v1565_v38 = vpop.f32.mrf.mxu0  ;;  %v1629_v39 = vpop.f32.mrf.mxu1 }
 0x322   : > { %1715 = vst [vmem:[#allocation4 + $0x30] sm:$0xff] %v1682_v35  ;;  %1731 = vst [vmem:[#allocation4 + $0x70] sm:$0xff] %v1698_v36  ;;  %v1680_v40 = vadd.f32 %v1565_v38, %v3304_v1  ;;  %v1696_v41 = vadd.f32 %v1629_v39, %v3336_v13 }
 0x323   : > { %v2828_v42 = vpop.f32.mrf.mxu0  ;;  %v2844_v43 = vpop.f32.mrf.mxu1 }
 0x324   : > { %1713 = vst [vmem:[#allocation4 + $0x50] sm:$0xff] %v1680_v40  ;;  %1729 = vst [vmem:[#allocation4 + $0xe0] sm:$0xff] %v1696_v41  ;;  %v1683_v44 = vadd.f32 %v2828_v42, %v3306_v2  ;;  %v1699_v45 = vadd.f32 %v2844_v43, %v3338_v14 }
 0x325   : > { %v1568_v46 = vpop.f32.mrf.mxu0  ;;  %v1632_v47 = vpop.f32.mrf.mxu1 }
 0x326   : > { %1716 = vst [vmem:[#allocation4 + $0x48] sm:$0xff] %v1683_v44  ;;  %1732 = vst [vmem:[#allocation4 + $0xc0] sm:$0xff] %v1699_v45  ;;  %v1681_v48 = vadd.f32 %v1568_v46, %v3308_v23  ;;  %v1697_v49 = vadd.f32 %v1632_v47, %v3340_v15 }
 0x327   : > { %v2831_v50 = vpop.f32.mrf.mxu0  ;;  %v2847_v52 = vpop.f32.mrf.mxu1 }
 0x328   : > { %1714 = vst [vmem:[#allocation4 + $0x68] sm:$0xff] %v1681_v48  ;;  %1730 = vst [vmem:[#allocation4 + $0x90] sm:$0xff] %v1697_v49  ;;  %v1686_v53 = vadd.f32 %v2831_v50, %v3310_v37  ;;  %v1702_v54 = vadd.f32 %v2847_v52, %v3342_v16 }
 0x329   : > { %v1581_v55 = vpop.f32.mrf.mxu0  ;;  %v1645_v56 = vpop.f32.mrf.mxu1 }
 0x32a   : > { %1719 = vst [vmem:[#allocation4 + $0xe8] sm:$0xff] %v1686_v53  ;;  %1735 = vst [vmem:[#allocation4 + $0x10] sm:$0xff] %v1702_v54  ;;  %v1684_v57 = vadd.f32 %v1581_v55, %v3312_v51  ;;  %v1700_v58 = vadd.f32 %v1645_v56, %v3344_v17 }
 0x32b   : > { %v2832_v25 = vpop.f32.mrf.mxu0  ;;  %v2848_v26 = vpop.f32.mrf.mxu1 }
 0x32c   : > { %1717 = vst [vmem:[#allocation4 + $0x80] sm:$0xff] %v1684_v57  ;;  %1733 = vst [vmem:[#allocation4 + $0xa8] sm:$0xff] %v1700_v58  ;;  %v1687_v27 = vadd.f32 %v2832_v25, %v3314_v0  ;;  %v1703_v28 = vadd.f32 %v2848_v26, %v3346_v18 }
 0x32d   : > { %v1584_v29 = vpop.f32.mrf.mxu0  ;;  %v1648_v30 = vpop.f32.mrf.mxu1 }
 0x32e   : > { %1720 = vst [vmem:[#allocation4 + $0xb8] sm:$0xff] %v1687_v27  ;;  %1736 = vst [vmem:[#allocation4 + $0x28] sm:$0xff] %v1703_v28  ;;  %v1685_v31 = vadd.f32 %v1584_v29, %v3316_v3  ;;  %v1701_v32 = vadd.f32 %v1648_v30, %v3348_v19 }
 0x32f   : > { %v2835_v33 = vpop.f32.mrf.mxu0  ;;  %v2851_v34 = vpop.f32.mrf.mxu1 }
 0x330   : > { %1718 = vst [vmem:[#allocation4 + $0x88] sm:$0xff] %v1685_v31  ;;  %1734 = vst [vmem:[#allocation4 + $0xd0] sm:$0xff] %v1701_v32  ;;  %v1690_v35 = vadd.f32 %v2835_v33, %v3318_v4  ;;  %v1706_v36 = vadd.f32 %v2851_v34, %v3350_v20 }
 0x331   : > { %v1597_v38 = vpop.f32.mrf.mxu0  ;;  %v1661_v39 = vpop.f32.mrf.mxu1 }
 0x332   : > { %1723 = vst [vmem:[#allocation4 + $0x8] sm:$0xff] %v1690_v35  ;;  %1739 = vst [vmem:[#allocation4 + $0x20] sm:$0xff] %v1706_v36  ;;  %v1688_v40 = vadd.f32 %v1597_v38, %v3320_v5  ;;  %v1704_v41 = vadd.f32 %v1661_v39, %v3352_v21 }
 0x333   : > { %v2836_v42 = vpop.f32.mrf.mxu0  ;;  %v2852_v43 = vpop.f32.mrf.mxu1 }
 0x334   : > { %1721 = vst [vmem:[#allocation4 + $0x60] sm:$0xff] %v1688_v40  ;;  %1737 = vst [vmem:[#allocation4 + $0xa0] sm:$0xff] %v1704_v41  ;;  %v1691_v44 = vadd.f32 %v2836_v42, %v3322_v6  ;;  %v1707_v45 = vadd.f32 %v2852_v43, %v3354_v22 }
 0x335   : > { %v1600_v46 = vpop.f32.mrf.mxu0  ;;  %v1664_v47 = vpop.f32.mrf.mxu1 }
 0x336   : > { %1724 = vst [vmem:[#allocation4 + $0x78] sm:$0xff] %v1691_v44  ;;  %1740 = vst [vmem:[#allocation4 + $0x98] sm:$0xff] %v1707_v45  ;;  %v1689_v48 = vadd.f32 %v1600_v46, %v3324_v7  ;;  %v1705_v49 = vadd.f32 %v1664_v47, %v3356_v24 }
 0x338   : > { %1722 = vst [vmem:[#allocation4 + $0xf0] sm:$0xff] %v1689_v48  ;;  %1738 = vst [vmem:[#allocation4 + $0xf8] sm:$0xff] %v1705_v49 }
 0x339 PF: > { %p2302_p8 = scmp.le.s32.totalorder %s3019_s15, 0 }
 0x33b   : > { %1744 = sbr.rel (%p2302_p8) target bundleno = 851 (0x353), region = 56 }
 0x340   : > { %v1746_v50 = vld [vmem:[#allocation4 + $0xb0] sm:$0xff]  ;;  %v1747_v52 = vld [vmem:[#allocation4] sm:$0xff]  ;;  %v1748_v53 = vld [vmem:[#allocation4 + $0xd8] sm:$0xff] }
 0x341   : > { %v1778_v54 = vadd.f32 %v1746_v50, %v3296_v60  ;;  %v1779_v55 = vadd.f32 %v1747_v52, %v3300_v62  ;;  %v1780_v56 = vadd.f32 %v3294_v59, %v1748_v53  ;;  %v1749_v57 = vld [vmem:[#allocation4 + $0x18] sm:$0xff]  ;;  %v1750_v58 = vld [vmem:[#allocation4 + $0x50] sm:$0xff]  ;;  %v1751_v25 = vld [vmem:[#allocation4 + $0x68] sm:$0xff] }
 0x342   : > { %v1781_v26 = vadd.f32 %v3298_v61, %v1749_v57  ;;  %v1782_v27 = vadd.f32 %v1750_v58, %v3304_v1  ;;  %v1783_v28 = vadd.f32 %v1751_v25, %v3308_v23  ;;  %v1752_v29 = vld [vmem:[#allocation4 + $0x30] sm:$0xff]  ;;  %v1753_v30 = vld [vmem:[#allocation4 + $0x48] sm:$0xff]  ;;  %v1754_v31 = vld [vmem:[#allocation4 + $0x80] sm:$0xff] }
 0x343   : > { %1810 = vst [vmem:[#allocation4 + $0xb0] sm:$0xff] %v1778_v54  ;;  %1811 = vst [vmem:[#allocation4] sm:$0xff] %v1779_v55  ;;  %v1784_v60 = vadd.f32 %v3302_v63, %v1752_v29  ;;  %v1785_v62 = vadd.f32 %v3306_v2, %v1753_v30  ;;  %v1786_v59 = vadd.f32 %v1754_v31, %v3312_v51  ;;  %v1755_v32 = vld [vmem:[#allocation4 + $0x88] sm:$0xff]  ;;  %v1757_v34 = vld [vmem:[#allocation4 + $0xb8] sm:$0xff] }
 0x344   : > { %1812 = vst [vmem:[#allocation4 + $0xd8] sm:$0xff] %v1780_v56  ;;  %v1756_v33 = vld [vmem:[#allocation4 + $0xe8] sm:$0xff]  ;;  %1813 = vst [vmem:[#allocation4 + $0x18] sm:$0xff] %v1781_v26  ;;  %v1787_v61 = vadd.f32 %v1755_v32, %v3316_v3  ;;  %v1789_v23 = vadd.f32 %v3314_v0, %v1757_v34  ;;  %v1758_v35 = vld [vmem:[#allocation4 + $0x60] sm:$0xff] }
 0x345   : > { %1814 = vst [vmem:[#allocation4 + $0x50] sm:$0xff] %v1782_v27  ;;  %1815 = vst [vmem:[#allocation4 + $0x68] sm:$0xff] %v1783_v28  ;;  %v1788_v1 = vadd.f32 %v3310_v37, %v1756_v33  ;;  %v1759_v36 = vld [vmem:[#allocation4 + $0xf0] sm:$0xff]  ;;  %v1760_v38 = vld [vmem:[#allocation4 + $0x8] sm:$0xff]  ;;  %v1790_v63 = vadd.f32 %v1758_v35, %v3320_v5 }
 0x346   : > { %1816 = vst [vmem:[#allocation4 + $0x30] sm:$0xff] %v1784_v60  ;;  %1817 = vst [vmem:[#allocation4 + $0x48] sm:$0xff] %v1785_v62  ;;  %v1791_v2 = vadd.f32 %v1759_v36, %v3324_v7  ;;  %v1792_v51 = vadd.f32 %v3318_v4, %v1760_v38  ;;  %v1761_v39 = vld [vmem:[#allocation4 + $0x78] sm:$0xff]  ;;  %v1764_v42 = vld [vmem:[#allocation4 + $0x40] sm:$0xff] }
 0x347   : > { %1818 = vst [vmem:[#allocation4 + $0x80] sm:$0xff] %v1786_v59  ;;  %v1762_v40 = vld [vmem:[#allocation4 + $0x38] sm:$0xff]  ;;  %1819 = vst [vmem:[#allocation4 + $0x88] sm:$0xff] %v1787_v61  ;;  %v1793_v37 = vadd.f32 %v3322_v6, %v1761_v39  ;;  %v1765_v43 = vld [vmem:[#allocation4 + $0xc8] sm:$0xff]  ;;  %v1796_v4 = vadd.f32 %v3326_v8, %v1764_v42 }
 0x348   : > { %v1763_v41 = vld [vmem:[#allocation4 + $0x58] sm:$0xff]  ;;  %1820 = vst [vmem:[#allocation4 + $0xe8] sm:$0xff] %v1788_v1  ;;  %1821 = vst [vmem:[#allocation4 + $0xb8] sm:$0xff] %v1789_v23  ;;  %v1794_v0 = vadd.f32 %v1762_v40, %v3328_v9  ;;  %v1766_v44 = vld [vmem:[#allocation4 + $0xe0] sm:$0xff]  ;;  %v1797_v5 = vadd.f32 %v3330_v10, %v1765_v43 }
 0x349   : > { %v1795_v3 = vadd.f32 %v1763_v41, %v3332_v11  ;;  %1822 = vst [vmem:[#allocation4 + $0x60] sm:$0xff] %v1790_v63  ;;  %1823 = vst [vmem:[#allocation4 + $0xf0] sm:$0xff] %v1791_v2  ;;  %v1798_v7 = vadd.f32 %v1766_v44, %v3336_v13  ;;  %v1767_v45 = vld [vmem:[#allocation4 + $0x90] sm:$0xff]  ;;  %v1769_v47 = vld [vmem:[#allocation4 + $0xc0] sm:$0xff] }
 0x34a   : > { %1824 = vst [vmem:[#allocation4 + $0x8] sm:$0xff] %v1792_v51  ;;  %v1768_v46 = vld [vmem:[#allocation4 + $0x70] sm:$0xff]  ;;  %1825 = vst [vmem:[#allocation4 + $0x78] sm:$0xff] %v1793_v37  ;;  %v1799_v6 = vadd.f32 %v1767_v45, %v3340_v15  ;;  %v1801_v11 = vadd.f32 %v3338_v14, %v1769_v47  ;;  %v1770_v48 = vld [vmem:[#allocation4 + $0xa8] sm:$0xff] }
 0x34b   : > { %1826 = vst [vmem:[#allocation4 + $0x38] sm:$0xff] %v1794_v0  ;;  %1827 = vst [vmem:[#allocation4 + $0x58] sm:$0xff] %v1795_v3  ;;  %v1800_v9 = vadd.f32 %v3334_v12, %v1768_v46  ;;  %v1771_v49 = vld [vmem:[#allocation4 + $0xd0] sm:$0xff]  ;;  %v1802_v8 = vadd.f32 %v1770_v48, %v3344_v17  ;;  %v1773_v52 = vld [vmem:[#allocation4 + $0x28] sm:$0xff] }
 0x34c   : > { %v1772_v50 = vld [vmem:[#allocation4 + $0x10] sm:$0xff]  ;;  %1828 = vst [vmem:[#allocation4 + $0x40] sm:$0xff] %v1796_v4  ;;  %1829 = vst [vmem:[#allocation4 + $0xc8] sm:$0xff] %v1797_v5  ;;  %v1803_v10 = vadd.f32 %v1771_v49, %v3348_v19  ;;  %v1774_v53 = vld [vmem:[#allocation4 + $0xa0] sm:$0xff]  ;;  %v1805_v12 = vadd.f32 %v3346_v18, %v1773_v52 }
 0x34d   : > { %1830 = vst [vmem:[#allocation4 + $0xe0] sm:$0xff] %v1798_v7  ;;  %v1804_v13 = vadd.f32 %v3342_v16, %v1772_v50  ;;  %v1775_v54 = vld [vmem:[#allocation4 + $0xf8] sm:$0xff]  ;;  %1831 = vst [vmem:[#allocation4 + $0x90] sm:$0xff] %v1799_v6  ;;  %v1806_v14 = vadd.f32 %v1774_v53, %v3352_v21  ;;  %v1776_v55 = vld [vmem:[#allocation4 + $0x20] sm:$0xff] }
 0x34e   : > { %1832 = vst [vmem:[#allocation4 + $0x70] sm:$0xff] %v1800_v9  ;;  %1833 = vst [vmem:[#allocation4 + $0xc0] sm:$0xff] %v1801_v11  ;;  %v1807_v15 = vadd.f32 %v1775_v54, %v3356_v24  ;;  %v1777_v56 = vld [vmem:[#allocation4 + $0x98] sm:$0xff]  ;;  %v1808_v17 = vadd.f32 %v3350_v20, %v1776_v55 }
 0x34f   : > { %1834 = vst [vmem:[#allocation4 + $0xa8] sm:$0xff] %v1802_v8  ;;  %1835 = vst [vmem:[#allocation4 + $0xd0] sm:$0xff] %v1803_v10  ;;  %v1809_v16 = vadd.f32 %v3354_v22, %v1777_v56 }
 0x350   : > { %1836 = vst [vmem:[#allocation4 + $0x10] sm:$0xff] %v1804_v13  ;;  %1837 = vst [vmem:[#allocation4 + $0x28] sm:$0xff] %v1805_v12 }
 0x351   : > { %1838 = vst [vmem:[#allocation4 + $0xa0] sm:$0xff] %v1806_v14  ;;  %1839 = vst [vmem:[#allocation4 + $0xf8] sm:$0xff] %v1807_v15 }
 0x352   : > { %1840 = vst [vmem:[#allocation4 + $0x20] sm:$0xff] %v1808_v17  ;;  %1841 = vst [vmem:[#allocation4 + $0x98] sm:$0xff] %v1809_v16 }
 0x353 PF: > { %p2303_p9 = scmp.ne.s32.totalorder %s3019_s15, 1 }
 0x355   : > { %1845 = sbr.rel (%p2303_p9) target bundleno = 884 (0x374), region = 60 }
 0x35a   : > { %v1847_v18 = vld [vmem:[#allocation4 + $0xb0] sm:$0xff]  ;;  %v1848_v19 = vld [vmem:[#allocation4] sm:$0xff]  ;;  %v1849_v24 = vld [vmem:[#allocation4 + $0xd8] sm:$0xff] }
 0x35b   : > { %v3500_v21 = vld [vmem:[%s3594_s3] ss:$0 sm:$0xff]  ;;  %v1850_v57 = vld [vmem:[#allocation4 + $0x18] sm:$0xff]  ;;  %v1851_v58 = vld [vmem:[#allocation4 + $0x50] sm:$0xff] }
 0x35c   : > { %v1886_v20 = vadd.f32 %v3500_v21, %v1847_v18  ;;  %v1887_v22 = vadd.f32 %v3500_v21, %v1848_v19  ;;  %v1888_v25 = vadd.f32 %v3500_v21, %v1849_v24  ;;  %v1889_v26 = vadd.f32 %v3500_v21, %v1850_v57  ;;  %v1852_v27 = vld [vmem:[#allocation4 + $0x68] sm:$0xff]  ;;  %v1853_v29 = vld [vmem:[#allocation4 + $0x30] sm:$0xff]  ;;  %v1855_v32 = vld [vmem:[#allocation4 + $0x80] sm:$0xff] }
 0x35d   : > { %v1890_v28 = vadd.f32 %v3500_v21, %v1851_v58  ;;  %v1854_v30 = vld [vmem:[#allocation4 + $0x48] sm:$0xff]  ;;  %v1891_v62 = vadd.f32 %v3500_v21, %v1852_v27  ;;  %v1892_v59 = vadd.f32 %v3500_v21, %v1853_v29  ;;  %v1858_v36 = vld [vmem:[#allocation4 + $0xb8] sm:$0xff]  ;;  %v1859_v38 = vld [vmem:[#allocation4 + $0x60] sm:$0xff]  ;;  %v1894_v39 = vadd.f32 %v3500_v21, %v1855_v32 }
 0x35e   : > { %v1918_v31 = vmax.f32 %v1886_v20, 0.0  ;;  %v1919_v60 = vmax.f32 %v1887_v22, 0.0  ;;  %v1856_v33 = vld [vmem:[#allocation4 + $0x88] sm:$0xff]  ;;  %v1920_v61 = vmax.f32 %v1888_v25, 0.0  ;;  %v1921_v1 = vmax.f32 %v1889_v26, 0.0  ;;  %v1860_v40 = vld [vmem:[#allocation4 + $0xf0] sm:$0xff] }
 0x35f   : > { %v1857_v34 = vld [vmem:[#allocation4 + $0xe8] sm:$0xff]  ;;  %v1922_v23 = vmax.f32 %v1890_v28, 0.0  ;;  %v1893_v35 = vadd.f32 %v3500_v21, %v1854_v30  ;;  %v1923_v2 = vmax.f32 %v1891_v62, 0.0  ;;  %v1924_v51 = vmax.f32 %v1892_v59, 0.0  ;;  %v1862_v43 = vld [vmem:[#allocation4 + $0x78] sm:$0xff]  ;;  %v1865_v48 = vld [vmem:[#allocation4 + $0x40] sm:$0xff] }
 0x360   : > { %v2490_v63 = vpack.c.bf16 %v1919_v60, %v1918_v31  ;;  %v2495_v41 = vpack.c.bf16 %v1921_v1, %v1920_v61  ;;  %v1895_v0 = vadd.f32 %v3500_v21, %v1856_v33  ;;  %v1896_v3 = vadd.f32 %v3500_v21, %v1857_v34  ;;  %v1861_v42 = vld [vmem:[#allocation4 + $0x8] sm:$0xff]  ;;  %v1863_v45 = vld [vmem:[#allocation4 + $0x38] sm:$0xff]  ;;  %v1867_v14 = vld [vmem:[#allocation4 + $0xe0] sm:$0xff] }
 0x361   : > { %v1925_v37 = vmax.f32 %v1893_v35, 0.0  ;;  %v2500_v44 = vpack.c.bf16 %v1923_v2, %v1922_v23  ;;  %v1926_v4 = vmax.f32 %v1894_v39, 0.0  ;;  %v1897_v5 = vadd.f32 %v3500_v21, %v1858_v36  ;;  %v1864_v46 = vld [vmem:[#allocation4 + $0x58] sm:$0xff]  ;;  %v1866_v13 = vld [vmem:[#allocation4 + $0xc8] sm:$0xff]  ;;  %v1868_v15 = vld [vmem:[#allocation4 + $0x90] sm:$0xff] }
 0x362   : > { %2491 = vst [vmem:[%s3595_s4] sm:$0xff] %v2490_v63   ;;  %v1898_v7 = vadd.f32 %v3500_v21, %v1859_v38  ;;  %2582 = vst [vmem:[%s3595_s4 + $0x8] sm:$0xff] %v2495_v41   ;;  %v1927_v6 = vmax.f32 %v1895_v0, 0.0  ;;  %v1928_v9 = vmax.f32 %v1896_v3, 0.0  ;;  %v1899_v11 = vadd.f32 %v3500_v21, %v1860_v40  ;;  %v1869_v18 = vld [vmem:[#allocation4 + $0x70] sm:$0xff]  ;;  %v1870_v19 = vld [vmem:[#allocation4 + $0xc0] sm:$0xff] }
 0x363   : > { %v2505_v47 = vpack.c.bf16 %v1925_v37, %v1924_v51  ;;  %2583 = vst [vmem:[%s3595_s4 + $0x10] sm:$0xff] %v2500_v44   ;;  %v1929_v49 = vmax.f32 %v1897_v5, 0.0  ;;  %v1900_v8 = vadd.f32 %v3500_v21, %v1861_v42  ;;  %v1901_v10 = vadd.f32 %v3500_v21, %v1862_v43  ;;  %v1871_v58 = vld [vmem:[#allocation4 + $0xa8] sm:$0xff]  ;;  %v1872_v25 = vld [vmem:[#allocation4 + $0xd0] sm:$0xff]  ;;  %v1875_v23 = vld [vmem:[#allocation4 + $0xa0] sm:$0xff] }
 0x364   : > { %v1930_v50 = vmax.f32 %v1898_v7, 0.0  ;;  %v2510_v52 = vpack.c.bf16 %v1927_v6, %v1926_v4  ;;  %v1931_v53 = vmax.f32 %v1899_v11, 0.0  ;;  %v1902_v54 = vadd.f32 %v3500_v21, %v1863_v45  ;;  %v1873_v30 = vld [vmem:[#allocation4 + $0x10] sm:$0xff]  ;;  %v1874_v32 = vld [vmem:[#allocation4 + $0x28] sm:$0xff]  ;;  %v1876_v35 = vld [vmem:[#allocation4 + $0xf8] sm:$0xff] }
 0x365   : > { %2584 = vst [vmem:[%s3595_s4 + $0x18] sm:$0xff] %v2505_v47   ;;  %v1903_v12 = vadd.f32 %v3500_v21, %v1864_v46  ;;  %v2515_v55 = vpack.c.bf16 %v1929_v49, %v1928_v9  ;;  %v1932_v56 = vmax.f32 %v1900_v8, 0.0  ;;  %v1933_v17 = vmax.f32 %v1901_v10, 0.0  ;;  %v1877_v51 = vld [vmem:[#allocation4 + $0x20] sm:$0xff]  ;;  %v1878_v39 = vld [vmem:[#allocation4 + $0x98] sm:$0xff] }
 0x366   : > { %v1904_v16 = vadd.f32 %v3500_v21, %v1865_v48  ;;  %2585 = vst [vmem:[%s3595_s4 + $0x20] sm:$0xff] %v2510_v52   ;;  %v2520_v20 = vpack.c.bf16 %v1931_v53, %v1930_v50  ;;  %v1934_v22 = vmax.f32 %v1902_v54, 0.0  ;;  %v1905_v57 = vadd.f32 %v3500_v21, %v1866_v13 }
 0x367   : > { %v1935_v24 = vmax.f32 %v1903_v12, 0.0  ;;  %2586 = vst [vmem:[%s3595_s4 + $0x28] sm:$0xff] %v2515_v55   ;;  %v2525_v26 = vpack.c.bf16 %v1933_v17, %v1932_v56  ;;  %v1906_v28 = vadd.f32 %v3500_v21, %v1867_v14  ;;  %v1907_v29 = vadd.f32 %v3500_v21, %v1868_v15 }
 0x368   : > { %v1936_v27 = vmax.f32 %v1904_v16, 0.0  ;;  %2587 = vst [vmem:[%s3595_s4 + $0x30] sm:$0xff] %v2520_v20   ;;  %v1937_v60 = vmax.f32 %v1905_v57, 0.0  ;;  %v1908_v62 = vadd.f32 %v3500_v21, %v1869_v18  ;;  %v1909_v59 = vadd.f32 %v3500_v21, %v1870_v19 }
 0x369   : > { %v2530_v31 = vpack.c.bf16 %v1935_v24, %v1934_v22  ;;  %2588 = vst [vmem:[%s3595_s4 + $0x38] sm:$0xff] %v2525_v26   ;;  %v1938_v33 = vmax.f32 %v1906_v28, 0.0  ;;  %v1939_v34 = vmax.f32 %v1907_v29, 0.0  ;;  %v1910_v61 = vadd.f32 %v3500_v21, %v1871_v58 }
 0x36a   : > { %v1911_v1 = vadd.f32 %v3500_v21, %v1872_v25  ;;  %v2535_v36 = vpack.c.bf16 %v1937_v60, %v1936_v27  ;;  %v1940_v38 = vmax.f32 %v1908_v62, 0.0  ;;  %v1941_v63 = vmax.f32 %v1909_v59, 0.0 }
 0x36b   : > { %2589 = vst [vmem:[%s3595_s4 + $0x40] sm:$0xff] %v2530_v31   ;;  %v1912_v2 = vadd.f32 %v3500_v21, %v1873_v30  ;;  %v2540_v40 = vpack.c.bf16 %v1939_v34, %v1938_v33  ;;  %v1942_v41 = vmax.f32 %v1910_v61, 0.0  ;;  %v1913_v0 = vadd.f32 %v3500_v21, %v1874_v32 }
 0x36c   : > { %v1943_v37 = vmax.f32 %v1911_v1, 0.0  ;;  %2590 = vst [vmem:[%s3595_s4 + $0x48] sm:$0xff] %v2535_v36   ;;  %v2545_v3 = vpack.c.bf16 %v1941_v63, %v1940_v38  ;;  %v1914_v43 = vadd.f32 %v3500_v21, %v1875_v23  ;;  %v1915_v44 = vadd.f32 %v3500_v21, %v1876_v35 }
 0x36d   : > { %v1944_v42 = vmax.f32 %v1912_v2, 0.0  ;;  %2591 = vst [vmem:[%s3595_s4 + $0x50] sm:$0xff] %v2540_v40   ;;  %v1945_v5 = vmax.f32 %v1913_v0, 0.0  ;;  %v1916_v7 = vadd.f32 %v3500_v21, %v1877_v51  ;;  %v1917_v45 = vadd.f32 %v3500_v21, %v1878_v39 }
 0x36e   : > { %v2550_v4 = vpack.c.bf16 %v1943_v37, %v1942_v41  ;;  %2592 = vst [vmem:[%s3595_s4 + $0x58] sm:$0xff] %v2545_v3   ;;  %v1946_v46 = vmax.f32 %v1914_v43, 0.0  ;;  %v1947_v47 = vmax.f32 %v1915_v44, 0.0 }
 0x36f   : > { %v2555_v6 = vpack.c.bf16 %v1945_v5, %v1944_v42  ;;  %v1948_v9 = vmax.f32 %v1916_v7, 0.0  ;;  %v1949_v11 = vmax.f32 %v1917_v45, 0.0 }
 0x370   : > { %2593 = vst [vmem:[%s3595_s4 + $0x60] sm:$0xff] %v2550_v4   ;;  %v2560_v48 = vpack.c.bf16 %v1947_v47, %v1946_v46 }
 0x371   : > { %2594 = vst [vmem:[%s3595_s4 + $0x68] sm:$0xff] %v2555_v6   ;;  %v2565_v49 = vpack.c.bf16 %v1949_v11, %v1948_v9 }
 0x372   : > { %2595 = vst [vmem:[%s3595_s4 + $0x70] sm:$0xff] %v2560_v48  }
 0x373   : > { %2596 = vst [vmem:[%s3595_s4 + $0x78] sm:$0xff] %v2565_v49  }
 0x374 PF: > { %s14_s17 = sadd.s32 1, %s3027_s17   ;;  %s3596_s15 = smov %s3023_s16 }
 0x375   : > { %p11_p10 = scmp.ge.s32.totalorder %s14_s17, 4   ;;  %s3597_s16 = smov %s3599_s18 }
 0x377   :  { %13 = sbr.rel (!%p11_p10) target bundleno = 2 (0x2), region = 92 }

</bundles_post_ra>
